<compile_context>
chip_gen: v5e
topology: v5e:2x2
jax: 0.10.0
libtpu: 0.0.40
codegen_flags: <defaults>
</compile_context>

<pallas_src>
import functools
import math

import jax
import jax.numpy as jnp
from jax import lax
from jax.experimental import pallas as pl
from jax.experimental.pallas import tpu as pltpu


# ----------------------------- config -------------------------------------

CFG = dict(
    feature_dim=16,
    d_model=32,
    d_k=8,
    d_v=8,
    n_heads=4,
    d_ff=64,
    enc_n_layers=2,
    num_patch_h=4,
    num_patch_w=4,
    dropout=0.0,   # eval-mode -> identity
)
LN_EPS = 1e-5       # PyTorch nn.LayerNorm default
LANE = 128          # lane width of the packed weight slabs


# --------------------- position embedding (constant) -----------------------

def position_embedding_sine(num_patch_h, num_patch_w, d_model):
    """Faithful port of PositionEmbeddingSine (normalize=False)."""
    num_pos_feats = d_model // 2
    temperature = 10000.0
    not_mask = jnp.ones((1, num_patch_h, num_patch_w), jnp.float32)
    y_embed = jnp.cumsum(not_mask, axis=1)
    x_embed = jnp.cumsum(not_mask, axis=2)
    dim_t = jnp.arange(num_pos_feats, dtype=jnp.float32)
    dim_t = temperature ** (2.0 * jnp.floor(dim_t / 2.0) / num_pos_feats)
    pos_x = x_embed[:, :, :, None] / dim_t
    pos_y = y_embed[:, :, :, None] / dim_t
    pos_x = jnp.stack(
        (jnp.sin(pos_x[:, :, :, 0::2]), jnp.cos(pos_x[:, :, :, 1::2])), axis=4
    ).reshape(1, num_patch_h, num_patch_w, num_pos_feats)
    pos_y = jnp.stack(
        (jnp.sin(pos_y[:, :, :, 0::2]), jnp.cos(pos_y[:, :, :, 1::2])), axis=4
    ).reshape(1, num_patch_h, num_patch_w, num_pos_feats)
    pos = jnp.concatenate((pos_y, pos_x), axis=3)          # (1, H, W, d_model)
    # permute(0,3,1,2).flatten(2).permute(0,2,1) == row-major flatten of (H,W)
    return pos.reshape(1, num_patch_h * num_patch_w, d_model)  # (1, S, d_model)


# ----------------------------- fused kernel --------------------------------

def _layer_norm(x, g, b):
    # g, b are (1, D) rows -> explicit sublane broadcast.
    mu = jnp.mean(x, axis=-1, keepdims=True)
    var = jnp.mean(jnp.square(x - mu), axis=-1, keepdims=True)
    return (x - mu) * lax.rsqrt(var + LN_EPS) * g + b


def encoder_kernel(
    x_ref, pos_ref, src_w_ref, wmat_ref, rows_ref,   # inputs
    out_ref, attn_ref,                               # outputs
    ctx_sc,                                          # VMEM scratch
    *, n_layers, n_heads, d_k, d_v, d_model, d_ff, bb, seq,
):
    """Whole Encoder forward for `bb` batch elements folded into sublanes."""
    H, D = n_heads, d_model
    qk_cols = H * d_k                 # lane offset of K heads inside qkv
    v_off = 2 * qk_cols              # lane offset of V heads inside qkv
    # row offsets inside the per-layer wmat slab
    r_wo = D
    r_w1 = D + H * d_v
    r_w2 = r_w1 + D

    def row(idx, width):
        return rows_ref[idx:idx + 1, 0:width]        # (1, width) bias/LN row

    # ---- src_emb: (bb*S, F) @ (F, D) + b -----------------------------------
    enc = jnp.dot(x_ref[...], src_w_ref[...],
                  preferred_element_type=jnp.float32) + row(0, D)
    pos = pos_ref[...]                               # (bb*S, D), pre-tiled

    for li in range(n_layers):                       # static unroll (2)
        base = 1 + li * 8
        # pos is added before every layer; the pos-augmented activation is
        # Q, K, V AND the residual (matches the PyTorch module).
        xi = enc + pos                               # (bb*S, D)

        # ---- fused Q|K|V projection: ONE lane-dense matmul -----------------
        # wmat rows 0:D hold [wq*1/sqrt(dk) | wk | wv | zeros] over 128 lanes;
        # the bias row is likewise zero-padded, so unused lanes stay 0.
        qkv = jnp.dot(xi, wmat_ref[li, 0:D, :],
                      preferred_element_type=jnp.float32) \
              + rows_ref[base:base + 1, :]           # (bb*S, 128)

        # ---- per-head attention (scores/softmax/ctx are per batch elem) ----
        for b in range(bb):                          # static unroll (<=2)
            r0 = b * seq
            for h in range(H):                       # static unroll (4)
                qh = qkv[r0:r0 + seq, h * d_k:(h + 1) * d_k]              # scaled
                kh = qkv[r0:r0 + seq, qk_cols + h * d_k:qk_cols + (h + 1) * d_k]
                vh = qkv[r0:r0 + seq, v_off + h * d_v:v_off + (h + 1) * d_v]

                # 'qd,kd->qk' -- contract last axes, no explicit transpose.
                s = lax.dot_general(qh, kh, (((1,), (1,)), ((), ())),
                                    preferred_element_type=jnp.float32)
                s = s - jnp.max(s, axis=-1, keepdims=True)    # stable softmax
                e = jnp.exp(s)
                a = e / jnp.sum(e, axis=-1, keepdims=True)    # exact (output)

                # lane-dense attention output slab: head (li,h) at a static
                # lane offset; HBM writeback is one unmasked 128-lane store.
                c0 = (li * H + h) * seq
                attn_ref[r0:r0 + seq, c0:c0 + seq] = a

                # assemble context heads at static lane offsets in VMEM.
                ctx_sc[r0:r0 + seq, h * d_v:(h + 1) * d_v] = jnp.dot(
                    a, vh, preferred_element_type=jnp.float32)

        # ---- output projection: ONE dense (bb*S, H*dv) @ (H*dv, D) ---------
        attn_out = jnp.dot(ctx_sc[...], wmat_ref[li, r_wo:r_wo + H * d_v, 0:D],
                           preferred_element_type=jnp.float32) + row(base + 1, D)
        h1 = _layer_norm(attn_out + xi, row(base + 2, D), row(base + 3, D))

        # ---- position-wise FFN (conv1d k=1 == per-position linear) ---------
        f = jnp.dot(h1, wmat_ref[li, r_w1:r_w1 + D, 0:d_ff],
                    preferred_element_type=jnp.float32) + row(base + 4, d_ff)
        f = jnp.maximum(f, 0.0)
        f = jnp.dot(f, wmat_ref[li, r_w2:r_w2 + d_ff, 0:D],
                    preferred_element_type=jnp.float32) + row(base + 5, D)
        enc = _layer_norm(f + h1, row(base + 6, D), row(base + 7, D))
        # Dropout layers: eval-mode identity.

    out_ref[...] = enc


# ----------------------------- weight packing -------------------------------

def _pack_params(params, cfg):
    """Pack all weights into 3 lane-aligned slabs (src_w, wmat, rows)."""
    D, H = cfg["d_model"], cfg["n_heads"]
    dk, dv, dff = cfg["d_k"], cfg["d_v"], cfg["d_ff"]
    scale = 1.0 / math.sqrt(dk)            # folded into wq / bq host-side

    def pad_lane(a):
        return jnp.pad(a, ((0, 0), (0, LANE - a.shape[1])))

    def as_row(v):
        v = v.reshape(1, -1)
        return jnp.pad(v, ((0, 0), (0, LANE - v.shape[1])))

    # per-layer matrix slab: rows [0:D] wqkv, [D:D+H*dv] wo, then w1, w2.
    per_layer = []
    for p in params["layers"]:
        wqkv = jnp.concatenate([p["wq"] * scale, p["wk"], p["wv"]], axis=1)
        per_layer.append(jnp.concatenate([
            pad_lane(wqkv),        # (D, 128)       lanes 0:2*H*dk+H*dv
            pad_lane(p["wo"]),     # (H*dv, 128)    lanes 0:D
            pad_lane(p["w1"]),     # (D, 128)       lanes 0:dff
            pad_lane(p["w2"]),     # (dff, 128)     lanes 0:D
        ], axis=0))
    wmat = jnp.stack(per_layer, axis=0)    # (L, D + H*dv + D + dff, 128)

    # all 1-D params as zero-padded 128-lane rows.
    rows = [as_row(params["src_b"])]
    for p in params["layers"]:
        bqkv = jnp.concatenate([p["bq"] * scale, p["bk"], p["bv"]], axis=0)
        rows += [as_row(bqkv), as_row(p["bo"]),
                 as_row(p["ln1_g"]), as_row(p["ln1_b"]),
                 as_row(p["b1"]), as_row(p["b2"]),
                 as_row(p["ln2_g"]), as_row(p["ln2_b"])]
    pad = (-len(rows)) % 8
    rows = jnp.concatenate(rows + [jnp.zeros((pad, LANE), jnp.float32)], axis=0)

    return params["src_w"], wmat, rows


# ----------------------------- wrappers ------------------------------------

def _const_spec(a):
    n = a.ndim
    return pl.BlockSpec(a.shape, lambda i, n=n: (0,) * n)


def _pick_batch_block(batch):
    """v7x (2 TensorCores): one batch element per 'parallel' grid step.
    v5e/v6e (1 TC): fold the whole batch into sublanes, single grid step."""
    try:
        kind = jax.devices()[0].device_kind.lower().replace(" ", "")
    except Exception:
        return batch
    if any(tag in kind for tag in ("v7", "tpu7", "7x")):
        return 1
    return batch


def encoder_forward(x, params, cfg):
    B, S, F = x.shape
    D, H, L = cfg["d_model"], cfg["n_heads"], cfg["enc_n_layers"]
    dk, dv, dff = cfg["d_k"], cfg["d_v"], cfg["d_ff"]
    assert S == cfg["num_patch_h"] * cfg["num_patch_w"]
    assert 2 * H * dk + H * dv <= LANE                 # qkv slab fits 128 lanes
    attn_cols = L * H * S                              # 128 for this config

    bb = _pick_batch_block(B)
    n_blocks = B // bb

    pos = position_embedding_sine(cfg["num_patch_h"], cfg["num_patch_w"], D)[0]
    pos2d = jnp.tile(pos, (bb, 1))                     # (bb*S, D)
    src_w, wmat, rows = _pack_params(params, cfg)
    x2d = x.reshape(B * S, F)

    kernel = functools.partial(
        encoder_kernel, n_layers=L, n_heads=H, d_k=dk, d_v=dv,
        d_model=D, d_ff=dff, bb=bb, seq=S)

    out2d, attn2d = pl.pallas_call(
        kernel,
        grid=(n_blocks,),
        in_specs=[
            pl.BlockSpec((bb * S, F), lambda i: (i, 0)),   # activations
            _const_spec(pos2d),                            # pos (resident)
            _const_spec(src_w),                            # weights (resident)
            _const_spec(wmat),
            _const_spec(rows),
        ],
        out_specs=(
            pl.BlockSpec((bb * S, D), lambda i: (i, 0)),
            pl.BlockSpec((bb * S, attn_cols), lambda i: (i, 0)),
        ),
        out_shape=(
            jax.ShapeDtypeStruct((B * S, D), jnp.float32),
            jax.ShapeDtypeStruct((B * S, attn_cols), jnp.float32),
        ),
        scratch_shapes=[pltpu.VMEM((bb * S, H * dv), jnp.float32)],
        compiler_params=pltpu.CompilerParams(
            dimension_semantics=("parallel",)),
    )(x2d, pos2d, src_w, wmat, rows)

    out = out2d.reshape(B, S, D)
    # lane-dense (B*S, L*H*S) slab -> (B, L, H, S, S); layout plumbing only.
    attn = attn2d.reshape(B, S, L, H, S).transpose(0, 2, 3, 1, 4)
    return out, [attn[:, li] for li in range(L)]


# --------------------------- parameter init ---------------------------------

def init_params(key, cfg):
    D, F = cfg["d_model"], cfg["feature_dim"]
    H, dk, dv, dff = cfg["n_heads"], cfg["d_k"], cfg["d_v"], cfg["d_ff"]

    def nrm(k, shape):
        return 0.02 * jax.random.normal(k, shape, jnp.float32)

    keys = jax.random.split(key, 1 + cfg["enc_n_layers"])
    params = {
        "src_w": nrm(keys[0], (F, D)),
        "src_b": jnp.zeros((D,), jnp.float32),
        "layers": [],
    }
    for li in range(cfg["enc_n_layers"]):
        ks = jax.random.split(keys[1 + li], 6)
        params["layers"].append(dict(
            wq=nrm(ks[0], (D, H * dk)), bq=jnp.zeros((H * dk,), jnp.float32),
            wk=nrm(ks[1], (D, H * dk)), bk=jnp.zeros((H * dk,), jnp.float32),
            wv=nrm(ks[2], (D, H * dv)), bv=jnp.zeros((H * dv,), jnp.float32),
            wo=nrm(ks[3], (H * dv, D)), bo=jnp.zeros((D,), jnp.float32),
            ln1_g=jnp.ones((D,), jnp.float32), ln1_b=jnp.zeros((D,), jnp.float32),
            w1=nrm(ks[4], (D, dff)), b1=jnp.zeros((dff,), jnp.float32),
            w2=nrm(ks[5], (dff, D)), b2=jnp.zeros((D,), jnp.float32),
            ln2_g=jnp.ones((D,), jnp.float32), ln2_b=jnp.zeros((D,), jnp.float32),
        ))
    return params


# ------------------------------- main ---------------------------------------

if __name__ == "__main__":
    B = 2
    S = CFG["num_patch_h"] * CFG["num_patch_w"]       # 16
    key = jax.random.PRNGKey(0)
    k_x, k_p = jax.random.split(key)
    x = jax.random.normal(k_x, (B, S, CFG["feature_dim"]), jnp.float32)
    params = init_params(k_p, CFG)

    fwd = jax.jit(lambda x_, p_: encoder_forward(x_, p_, CFG))
    enc_out, enc_attns = fwd(x, params)
    enc_out = jax.block_until_ready(enc_out)
    enc_attns = [jax.block_until_ready(a) for a in enc_attns]

    assert enc_out.shape == (B, S, CFG["d_model"])
    assert all(a.shape == (B, CFG["n_heads"], S, S) for a in enc_attns)
    assert bool(jnp.all(jnp.isfinite(enc_out)))
    for a in enc_attns:  # softmax rows must sum to 1
        assert bool(jnp.all(jnp.isfinite(a)))
        assert bool(jnp.all(jnp.abs(jnp.sum(a, axis=-1) - 1.0) < 1e-4))
    print("KERNEL_OK")
</pallas_src>

<mosaic_0001>
module attributes {stable_mosaic.version = 11 : i64} {
  func.func @encoder_kernel(%arg0: i32, %arg1: memref<32x16xf32, #tpu.memory_space<vmem>>, %arg2: memref<32x32xf32, #tpu.memory_space<vmem>>, %arg3: memref<16x32xf32, #tpu.memory_space<vmem>>, %arg4: memref<2x160x128xf32, #tpu.memory_space<vmem>>, %arg5: memref<24x128xf32, #tpu.memory_space<vmem>>, %arg6: memref<32x32xf32, #tpu.memory_space<vmem>>, %arg7: memref<32x128xf32, #tpu.memory_space<vmem>>, %arg8: memref<32x32xf32, #tpu.memory_space<vmem>>) attributes {dimension_semantics = [#tpu.dimension_semantics<parallel>], iteration_bounds = array<i64: 1>, scalar_prefetch = 0 : i64, scratch_operands = 1 : i64, tpu.core_type = #tpu.core_type<tc>, window_params = [{transform_indices = @transform_0, window_bounds = array<i64: 32, 16>}, {pipeline_mode = #tpu.pipeline_mode<synchronous>, transform_indices = @transform_1, window_bounds = array<i64: 32, 32>}, {pipeline_mode = #tpu.pipeline_mode<synchronous>, transform_indices = @transform_2, window_bounds = array<i64: 16, 32>}, {pipeline_mode = #tpu.pipeline_mode<synchronous>, transform_indices = @transform_3, window_bounds = array<i64: 2, 160, 128>}, {pipeline_mode = #tpu.pipeline_mode<synchronous>, transform_indices = @transform_4, window_bounds = array<i64: 24, 128>}, {transform_indices = @transform_5, window_bounds = array<i64: 32, 32>}, {transform_indices = @transform_6, window_bounds = array<i64: 32, 128>}]} {
    %c0 = arith.constant 0 : index
    %c0_0 = arith.constant 0 : index
    %0 = vector.load %arg1[%c0, %c0_0] : memref<32x16xf32, #tpu.memory_space<vmem>>, vector<32x16xf32>
    %c0_1 = arith.constant 0 : index
    %c0_2 = arith.constant 0 : index
    %1 = vector.load %arg3[%c0_1, %c0_2] : memref<16x32xf32, #tpu.memory_space<vmem>>, vector<16x32xf32>
    %cst = arith.constant dense<0.000000e+00> : vector<32x32xf32>
    %2 = tpu.matmul %0, %1, %cst {dimension_numbers = #tpu.dot_dimension_numbers<[1], [0], [0], [1], [0, 0, 1, 1], [], []>} : vector<32x16xf32>, vector<16x32xf32>, vector<32x32xf32> -> vector<32x32xf32>
    %c0_3 = arith.constant 0 : index
    %c0_4 = arith.constant 0 : index
    %3 = vector.load %arg5[%c0_3, %c0_4] : memref<24x128xf32, #tpu.memory_space<vmem>>, vector<1x32xf32>
    %4 = vector.broadcast %3 : vector<1x32xf32> to vector<32x32xf32>
    %5 = arith.addf %2, %4 : vector<32x32xf32>
    %c0_5 = arith.constant 0 : index
    %c0_6 = arith.constant 0 : index
    %6 = vector.load %arg2[%c0_5, %c0_6] : memref<32x32xf32, #tpu.memory_space<vmem>>, vector<32x32xf32>
    %7 = arith.addf %5, %6 : vector<32x32xf32>
    %c0_7 = arith.constant 0 : index
    %c0_8 = arith.constant 0 : index
    %c0_9 = arith.constant 0 : index
    %8 = vector.load %arg4[%c0_7, %c0_8, %c0_9] : memref<2x160x128xf32, #tpu.memory_space<vmem>>, vector<1x32x128xf32>
    %9 = vector.shape_cast %8 : vector<1x32x128xf32> to vector<32x128xf32>
    %cst_10 = arith.constant dense<0.000000e+00> : vector<32x128xf32>
    %10 = tpu.matmul %7, %9, %cst_10 {dimension_numbers = #tpu.dot_dimension_numbers<[1], [0], [0], [1], [0, 0, 1, 1], [], []>} : vector<32x32xf32>, vector<32x128xf32>, vector<32x128xf32> -> vector<32x128xf32>
    %c1 = arith.constant 1 : index
    %c0_11 = arith.constant 0 : index
    %11 = vector.load %arg5[%c1, %c0_11] : memref<24x128xf32, #tpu.memory_space<vmem>>, vector<1x128xf32>
    %12 = vector.broadcast %11 : vector<1x128xf32> to vector<32x128xf32>
    %13 = arith.addf %10, %12 : vector<32x128xf32>
    %14 = vector.extract_strided_slice %13 {offsets = [0, 0], sizes = [16, 8], strides = [1, 1]} : vector<32x128xf32> to vector<16x8xf32>
    %15 = vector.extract_strided_slice %13 {offsets = [0, 32], sizes = [16, 8], strides = [1, 1]} : vector<32x128xf32> to vector<16x8xf32>
    %16 = vector.extract_strided_slice %13 {offsets = [0, 64], sizes = [16, 8], strides = [1, 1]} : vector<32x128xf32> to vector<16x8xf32>
    %cst_12 = arith.constant dense<0.000000e+00> : vector<16x16xf32>
    %17 = tpu.matmul %14, %15, %cst_12 {dimension_numbers = #tpu.dot_dimension_numbers<[1], [1], [0], [0], [0, 0, 1, 0], [], []>} : vector<16x8xf32>, vector<16x8xf32>, vector<16x16xf32> -> vector<16x16xf32>
    %cst_13 = arith.constant dense<0xFF800000> : vector<16xf32>
    %18 = vector.multi_reduction <maximumf>, %17, %cst_13 [1] : vector<16x16xf32> to vector<16xf32>
    %19 = vector.shape_cast %18 : vector<16xf32> to vector<16x1xf32>
    %20 = vector.broadcast %19 : vector<16x1xf32> to vector<16x16xf32>
    %21 = arith.subf %17, %20 : vector<16x16xf32>
    %22 = math.exp %21 : vector<16x16xf32>
    %cst_14 = arith.constant dense<0.000000e+00> : vector<16xf32>
    %23 = vector.multi_reduction <add>, %22, %cst_14 [1] : vector<16x16xf32> to vector<16xf32>
    %24 = vector.shape_cast %23 : vector<16xf32> to vector<16x1xf32>
    %25 = vector.broadcast %24 : vector<16x1xf32> to vector<16x16xf32>
    %26 = arith.divf %22, %25 : vector<16x16xf32>
    %c0_15 = arith.constant 0 : index
    %c0_16 = arith.constant 0 : index
    %27 = vector.load %arg7[%c0_15, %c0_16] : memref<32x128xf32, #tpu.memory_space<vmem>>, vector<16x16xf32>
    tpu.vector_store %arg7[%c0_15, %c0_16], %26 {strides = array<i32>} : memref<32x128xf32, #tpu.memory_space<vmem>>, vector<16x16xf32>,
    %cst_17 = arith.constant dense<0.000000e+00> : vector<16x8xf32>
    %28 = tpu.matmul %26, %16, %cst_17 {dimension_numbers = #tpu.dot_dimension_numbers<[1], [0], [0], [1], [0, 0, 1, 1], [], []>} : vector<16x16xf32>, vector<16x8xf32>, vector<16x8xf32> -> vector<16x8xf32>
    %c0_18 = arith.constant 0 : index
    %c0_19 = arith.constant 0 : index
    %29 = vector.load %arg8[%c0_18, %c0_19] : memref<32x32xf32, #tpu.memory_space<vmem>>, vector<16x8xf32>
    tpu.vector_store %arg8[%c0_18, %c0_19], %28 {strides = array<i32>} : memref<32x32xf32, #tpu.memory_space<vmem>>, vector<16x8xf32>,
    %30 = vector.extract_strided_slice %13 {offsets = [0, 8], sizes = [16, 8], strides = [1, 1]} : vector<32x128xf32> to vector<16x8xf32>
    %31 = vector.extract_strided_slice %13 {offsets = [0, 40], sizes = [16, 8], strides = [1, 1]} : vector<32x128xf32> to vector<16x8xf32>
    %32 = vector.extract_strided_slice %13 {offsets = [0, 72], sizes = [16, 8], strides = [1, 1]} : vector<32x128xf32> to vector<16x8xf32>
    %cst_20 = arith.constant dense<0.000000e+00> : vector<16x16xf32>
    %33 = tpu.matmul %30, %31, %cst_20 {dimension_numbers = #tpu.dot_dimension_numbers<[1], [1], [0], [0], [0, 0, 1, 0], [], []>} : vector<16x8xf32>, vector<16x8xf32>, vector<16x16xf32> -> vector<16x16xf32>
    %cst_21 = arith.constant dense<0xFF800000> : vector<16xf32>
    %34 = vector.multi_reduction <maximumf>, %33, %cst_21 [1] : vector<16x16xf32> to vector<16xf32>
    %35 = vector.shape_cast %34 : vector<16xf32> to vector<16x1xf32>
    %36 = vector.broadcast %35 : vector<16x1xf32> to vector<16x16xf32>
    %37 = arith.subf %33, %36 : vector<16x16xf32>
    %38 = math.exp %37 : vector<16x16xf32>
    %cst_22 = arith.constant dense<0.000000e+00> : vector<16xf32>
    %39 = vector.multi_reduction <add>, %38, %cst_22 [1] : vector<16x16xf32> to vector<16xf32>
    %40 = vector.shape_cast %39 : vector<16xf32> to vector<16x1xf32>
    %41 = vector.broadcast %40 : vector<16x1xf32> to vector<16x16xf32>
    %42 = arith.divf %38, %41 : vector<16x16xf32>
    %c0_23 = arith.constant 0 : index
    %c16 = arith.constant 16 : index
    %43 = vector.load %arg7[%c0_23, %c16] : memref<32x128xf32, #tpu.memory_space<vmem>>, vector<16x16xf32>
    tpu.vector_store %arg7[%c0_23, %c16], %42 {strides = array<i32>} : memref<32x128xf32, #tpu.memory_space<vmem>>, vector<16x16xf32>,
    %cst_24 = arith.constant dense<0.000000e+00> : vector<16x8xf32>
    %44 = tpu.matmul %42, %32, %cst_24 {dimension_numbers = #tpu.dot_dimension_numbers<[1], [0], [0], [1], [0, 0, 1, 1], [], []>} : vector<16x16xf32>, vector<16x8xf32>, vector<16x8xf32> -> vector<16x8xf32>
    %c0_25 = arith.constant 0 : index
    %c8 = arith.constant 8 : index
    %45 = vector.load %arg8[%c0_25, %c8] : memref<32x32xf32, #tpu.memory_space<vmem>>, vector<16x8xf32>
    tpu.vector_store %arg8[%c0_25, %c8], %44 {strides = array<i32>} : memref<32x32xf32, #tpu.memory_space<vmem>>, vector<16x8xf32>,
    %46 = vector.extract_strided_slice %13 {offsets = [0, 16], sizes = [16, 8], strides = [1, 1]} : vector<32x128xf32> to vector<16x8xf32>
    %47 = vector.extract_strided_slice %13 {offsets = [0, 48], sizes = [16, 8], strides = [1, 1]} : vector<32x128xf32> to vector<16x8xf32>
    %48 = vector.extract_strided_slice %13 {offsets = [0, 80], sizes = [16, 8], strides = [1, 1]} : vector<32x128xf32> to vector<16x8xf32>
    %cst_26 = arith.constant dense<0.000000e+00> : vector<16x16xf32>
    %49 = tpu.matmul %46, %47, %cst_26 {dimension_numbers = #tpu.dot_dimension_numbers<[1], [1], [0], [0], [0, 0, 1, 0], [], []>} : vector<16x8xf32>, vector<16x8xf32>, vector<16x16xf32> -> vector<16x16xf32>
    %cst_27 = arith.constant dense<0xFF800000> : vector<16xf32>
    %50 = vector.multi_reduction <maximumf>, %49, %cst_27 [1] : vector<16x16xf32> to vector<16xf32>
    %51 = vector.shape_cast %50 : vector<16xf32> to vector<16x1xf32>
    %52 = vector.broadcast %51 : vector<16x1xf32> to vector<16x16xf32>
    %53 = arith.subf %49, %52 : vector<16x16xf32>
    %54 = math.exp %53 : vector<16x16xf32>
    %cst_28 = arith.constant dense<0.000000e+00> : vector<16xf32>
    %55 = vector.multi_reduction <add>, %54, %cst_28 [1] : vector<16x16xf32> to vector<16xf32>
    %56 = vector.shape_cast %55 : vector<16xf32> to vector<16x1xf32>
    %57 = vector.broadcast %56 : vector<16x1xf32> to vector<16x16xf32>
    %58 = arith.divf %54, %57 : vector<16x16xf32>
    %c0_29 = arith.constant 0 : index
    %c32 = arith.constant 32 : index
    %59 = vector.load %arg7[%c0_29, %c32] : memref<32x128xf32, #tpu.memory_space<vmem>>, vector<16x16xf32>
    tpu.vector_store %arg7[%c0_29, %c32], %58 {strides = array<i32>} : memref<32x128xf32, #tpu.memory_space<vmem>>, vector<16x16xf32>,
    %cst_30 = arith.constant dense<0.000000e+00> : vector<16x8xf32>
    %60 = tpu.matmul %58, %48, %cst_30 {dimension_numbers = #tpu.dot_dimension_numbers<[1], [0], [0], [1], [0, 0, 1, 1], [], []>} : vector<16x16xf32>, vector<16x8xf32>, vector<16x8xf32> -> vector<16x8xf32>
    %c0_31 = arith.constant 0 : index
    %c16_32 = arith.constant 16 : index
    %61 = vector.load %arg8[%c0_31, %c16_32] : memref<32x32xf32, #tpu.memory_space<vmem>>, vector<16x8xf32>
    tpu.vector_store %arg8[%c0_31, %c16_32], %60 {strides = array<i32>} : memref<32x32xf32, #tpu.memory_space<vmem>>, vector<16x8xf32>,
    %62 = vector.extract_strided_slice %13 {offsets = [0, 24], sizes = [16, 8], strides = [1, 1]} : vector<32x128xf32> to vector<16x8xf32>
    %63 = vector.extract_strided_slice %13 {offsets = [0, 56], sizes = [16, 8], strides = [1, 1]} : vector<32x128xf32> to vector<16x8xf32>
    %64 = vector.extract_strided_slice %13 {offsets = [0, 88], sizes = [16, 8], strides = [1, 1]} : vector<32x128xf32> to vector<16x8xf32>
    %cst_33 = arith.constant dense<0.000000e+00> : vector<16x16xf32>
    %65 = tpu.matmul %62, %63, %cst_33 {dimension_numbers = #tpu.dot_dimension_numbers<[1], [1], [0], [0], [0, 0, 1, 0], [], []>} : vector<16x8xf32>, vector<16x8xf32>, vector<16x16xf32> -> vector<16x16xf32>
    %cst_34 = arith.constant dense<0xFF800000> : vector<16xf32>
    %66 = vector.multi_reduction <maximumf>, %65, %cst_34 [1] : vector<16x16xf32> to vector<16xf32>
    %67 = vector.shape_cast %66 : vector<16xf32> to vector<16x1xf32>
    %68 = vector.broadcast %67 : vector<16x1xf32> to vector<16x16xf32>
    %69 = arith.subf %65, %68 : vector<16x16xf32>
    %70 = math.exp %69 : vector<16x16xf32>
    %cst_35 = arith.constant dense<0.000000e+00> : vector<16xf32>
    %71 = vector.multi_reduction <add>, %70, %cst_35 [1] : vector<16x16xf32> to vector<16xf32>
    %72 = vector.shape_cast %71 : vector<16xf32> to vector<16x1xf32>
    %73 = vector.broadcast %72 : vector<16x1xf32> to vector<16x16xf32>
    %74 = arith.divf %70, %73 : vector<16x16xf32>
    %c0_36 = arith.constant 0 : index
    %c48 = arith.constant 48 : index
    %75 = vector.load %arg7[%c0_36, %c48] : memref<32x128xf32, #tpu.memory_space<vmem>>, vector<16x16xf32>
    tpu.vector_store %arg7[%c0_36, %c48], %74 {strides = array<i32>} : memref<32x128xf32, #tpu.memory_space<vmem>>, vector<16x16xf32>,
    %cst_37 = arith.constant dense<0.000000e+00> : vector<16x8xf32>
    %76 = tpu.matmul %74, %64, %cst_37 {dimension_numbers = #tpu.dot_dimension_numbers<[1], [0], [0], [1], [0, 0, 1, 1], [], []>} : vector<16x16xf32>, vector<16x8xf32>, vector<16x8xf32> -> vector<16x8xf32>
    %c0_38 = arith.constant 0 : index
    %c24 = arith.constant 24 : index
    %77 = vector.load %arg8[%c0_38, %c24] : memref<32x32xf32, #tpu.memory_space<vmem>>, vector<16x8xf32>
    tpu.vector_store %arg8[%c0_38, %c24], %76 {strides = array<i32>} : memref<32x32xf32, #tpu.memory_space<vmem>>, vector<16x8xf32>,
    %78 = vector.extract_strided_slice %13 {offsets = [16, 0], sizes = [16, 8], strides = [1, 1]} : vector<32x128xf32> to vector<16x8xf32>
    %79 = vector.extract_strided_slice %13 {offsets = [16, 32], sizes = [16, 8], strides = [1, 1]} : vector<32x128xf32> to vector<16x8xf32>
    %80 = vector.extract_strided_slice %13 {offsets = [16, 64], sizes = [16, 8], strides = [1, 1]} : vector<32x128xf32> to vector<16x8xf32>
    %cst_39 = arith.constant dense<0.000000e+00> : vector<16x16xf32>
    %81 = tpu.matmul %78, %79, %cst_39 {dimension_numbers = #tpu.dot_dimension_numbers<[1], [1], [0], [0], [0, 0, 1, 0], [], []>} : vector<16x8xf32>, vector<16x8xf32>, vector<16x16xf32> -> vector<16x16xf32>
    %cst_40 = arith.constant dense<0xFF800000> : vector<16xf32>
    %82 = vector.multi_reduction <maximumf>, %81, %cst_40 [1] : vector<16x16xf32> to vector<16xf32>
    %83 = vector.shape_cast %82 : vector<16xf32> to vector<16x1xf32>
    %84 = vector.broadcast %83 : vector<16x1xf32> to vector<16x16xf32>
    %85 = arith.subf %81, %84 : vector<16x16xf32>
    %86 = math.exp %85 : vector<16x16xf32>
    %cst_41 = arith.constant dense<0.000000e+00> : vector<16xf32>
    %87 = vector.multi_reduction <add>, %86, %cst_41 [1] : vector<16x16xf32> to vector<16xf32>
    %88 = vector.shape_cast %87 : vector<16xf32> to vector<16x1xf32>
    %89 = vector.broadcast %88 : vector<16x1xf32> to vector<16x16xf32>
    %90 = arith.divf %86, %89 : vector<16x16xf32>
    %c16_42 = arith.constant 16 : index
    %c0_43 = arith.constant 0 : index
    %91 = vector.load %arg7[%c16_42, %c0_43] : memref<32x128xf32, #tpu.memory_space<vmem>>, vector<16x16xf32>
    tpu.vector_store %arg7[%c16_42, %c0_43], %90 {strides = array<i32>} : memref<32x128xf32, #tpu.memory_space<vmem>>, vector<16x16xf32>,
    %cst_44 = arith.constant dense<0.000000e+00> : vector<16x8xf32>
    %92 = tpu.matmul %90, %80, %cst_44 {dimension_numbers = #tpu.dot_dimension_numbers<[1], [0], [0], [1], [0, 0, 1, 1], [], []>} : vector<16x16xf32>, vector<16x8xf32>, vector<16x8xf32> -> vector<16x8xf32>
    %c16_45 = arith.constant 16 : index
    %c0_46 = arith.constant 0 : index
    %93 = vector.load %arg8[%c16_45, %c0_46] : memref<32x32xf32, #tpu.memory_space<vmem>>, vector<16x8xf32>
    tpu.vector_store %arg8[%c16_45, %c0_46], %92 {strides = array<i32>} : memref<32x32xf32, #tpu.memory_space<vmem>>, vector<16x8xf32>,
    %94 = vector.extract_strided_slice %13 {offsets = [16, 8], sizes = [16, 8], strides = [1, 1]} : vector<32x128xf32> to vector<16x8xf32>
    %95 = vector.extract_strided_slice %13 {offsets = [16, 40], sizes = [16, 8], strides = [1, 1]} : vector<32x128xf32> to vector<16x8xf32>
    %96 = vector.extract_strided_slice %13 {offsets = [16, 72], sizes = [16, 8], strides = [1, 1]} : vector<32x128xf32> to vector<16x8xf32>
    %cst_47 = arith.constant dense<0.000000e+00> : vector<16x16xf32>
    %97 = tpu.matmul %94, %95, %cst_47 {dimension_numbers = #tpu.dot_dimension_numbers<[1], [1], [0], [0], [0, 0, 1, 0], [], []>} : vector<16x8xf32>, vector<16x8xf32>, vector<16x16xf32> -> vector<16x16xf32>
    %cst_48 = arith.constant dense<0xFF800000> : vector<16xf32>
    %98 = vector.multi_reduction <maximumf>, %97, %cst_48 [1] : vector<16x16xf32> to vector<16xf32>
    %99 = vector.shape_cast %98 : vector<16xf32> to vector<16x1xf32>
    %100 = vector.broadcast %99 : vector<16x1xf32> to vector<16x16xf32>
    %101 = arith.subf %97, %100 : vector<16x16xf32>
    %102 = math.exp %101 : vector<16x16xf32>
    %cst_49 = arith.constant dense<0.000000e+00> : vector<16xf32>
    %103 = vector.multi_reduction <add>, %102, %cst_49 [1] : vector<16x16xf32> to vector<16xf32>
    %104 = vector.shape_cast %103 : vector<16xf32> to vector<16x1xf32>
    %105 = vector.broadcast %104 : vector<16x1xf32> to vector<16x16xf32>
    %106 = arith.divf %102, %105 : vector<16x16xf32>
    %c16_50 = arith.constant 16 : index
    %c16_51 = arith.constant 16 : index
    %107 = vector.load %arg7[%c16_50, %c16_51] : memref<32x128xf32, #tpu.memory_space<vmem>>, vector<16x16xf32>
    tpu.vector_store %arg7[%c16_50, %c16_51], %106 {strides = array<i32>} : memref<32x128xf32, #tpu.memory_space<vmem>>, vector<16x16xf32>,
    %cst_52 = arith.constant dense<0.000000e+00> : vector<16x8xf32>
    %108 = tpu.matmul %106, %96, %cst_52 {dimension_numbers = #tpu.dot_dimension_numbers<[1], [0], [0], [1], [0, 0, 1, 1], [], []>} : vector<16x16xf32>, vector<16x8xf32>, vector<16x8xf32> -> vector<16x8xf32>
    %c16_53 = arith.constant 16 : index
    %c8_54 = arith.constant 8 : index
    %109 = vector.load %arg8[%c16_53, %c8_54] : memref<32x32xf32, #tpu.memory_space<vmem>>, vector<16x8xf32>
    tpu.vector_store %arg8[%c16_53, %c8_54], %108 {strides = array<i32>} : memref<32x32xf32, #tpu.memory_space<vmem>>, vector<16x8xf32>,
    %110 = vector.extract_strided_slice %13 {offsets = [16, 16], sizes = [16, 8], strides = [1, 1]} : vector<32x128xf32> to vector<16x8xf32>
    %111 = vector.extract_strided_slice %13 {offsets = [16, 48], sizes = [16, 8], strides = [1, 1]} : vector<32x128xf32> to vector<16x8xf32>
    %112 = vector.extract_strided_slice %13 {offsets = [16, 80], sizes = [16, 8], strides = [1, 1]} : vector<32x128xf32> to vector<16x8xf32>
    %cst_55 = arith.constant dense<0.000000e+00> : vector<16x16xf32>
    %113 = tpu.matmul %110, %111, %cst_55 {dimension_numbers = #tpu.dot_dimension_numbers<[1], [1], [0], [0], [0, 0, 1, 0], [], []>} : vector<16x8xf32>, vector<16x8xf32>, vector<16x16xf32> -> vector<16x16xf32>
    %cst_56 = arith.constant dense<0xFF800000> : vector<16xf32>
    %114 = vector.multi_reduction <maximumf>, %113, %cst_56 [1] : vector<16x16xf32> to vector<16xf32>
    %115 = vector.shape_cast %114 : vector<16xf32> to vector<16x1xf32>
    %116 = vector.broadcast %115 : vector<16x1xf32> to vector<16x16xf32>
    %117 = arith.subf %113, %116 : vector<16x16xf32>
    %118 = math.exp %117 : vector<16x16xf32>
    %cst_57 = arith.constant dense<0.000000e+00> : vector<16xf32>
    %119 = vector.multi_reduction <add>, %118, %cst_57 [1] : vector<16x16xf32> to vector<16xf32>
    %120 = vector.shape_cast %119 : vector<16xf32> to vector<16x1xf32>
    %121 = vector.broadcast %120 : vector<16x1xf32> to vector<16x16xf32>
    %122 = arith.divf %118, %121 : vector<16x16xf32>
    %c16_58 = arith.constant 16 : index
    %c32_59 = arith.constant 32 : index
    %123 = vector.load %arg7[%c16_58, %c32_59] : memref<32x128xf32, #tpu.memory_space<vmem>>, vector<16x16xf32>
    tpu.vector_store %arg7[%c16_58, %c32_59], %122 {strides = array<i32>} : memref<32x128xf32, #tpu.memory_space<vmem>>, vector<16x16xf32>,
    %cst_60 = arith.constant dense<0.000000e+00> : vector<16x8xf32>
    %124 = tpu.matmul %122, %112, %cst_60 {dimension_numbers = #tpu.dot_dimension_numbers<[1], [0], [0], [1], [0, 0, 1, 1], [], []>} : vector<16x16xf32>, vector<16x8xf32>, vector<16x8xf32> -> vector<16x8xf32>
    %c16_61 = arith.constant 16 : index
    %c16_62 = arith.constant 16 : index
    %125 = vector.load %arg8[%c16_61, %c16_62] : memref<32x32xf32, #tpu.memory_space<vmem>>, vector<16x8xf32>
    tpu.vector_store %arg8[%c16_61, %c16_62], %124 {strides = array<i32>} : memref<32x32xf32, #tpu.memory_space<vmem>>, vector<16x8xf32>,
    %126 = vector.extract_strided_slice %13 {offsets = [16, 24], sizes = [16, 8], strides = [1, 1]} : vector<32x128xf32> to vector<16x8xf32>
    %127 = vector.extract_strided_slice %13 {offsets = [16, 56], sizes = [16, 8], strides = [1, 1]} : vector<32x128xf32> to vector<16x8xf32>
    %128 = vector.extract_strided_slice %13 {offsets = [16, 88], sizes = [16, 8], strides = [1, 1]} : vector<32x128xf32> to vector<16x8xf32>
    %cst_63 = arith.constant dense<0.000000e+00> : vector<16x16xf32>
    %129 = tpu.matmul %126, %127, %cst_63 {dimension_numbers = #tpu.dot_dimension_numbers<[1], [1], [0], [0], [0, 0, 1, 0], [], []>} : vector<16x8xf32>, vector<16x8xf32>, vector<16x16xf32> -> vector<16x16xf32>
    %cst_64 = arith.constant dense<0xFF800000> : vector<16xf32>
    %130 = vector.multi_reduction <maximumf>, %129, %cst_64 [1] : vector<16x16xf32> to vector<16xf32>
    %131 = vector.shape_cast %130 : vector<16xf32> to vector<16x1xf32>
    %132 = vector.broadcast %131 : vector<16x1xf32> to vector<16x16xf32>
    %133 = arith.subf %129, %132 : vector<16x16xf32>
    %134 = math.exp %133 : vector<16x16xf32>
    %cst_65 = arith.constant dense<0.000000e+00> : vector<16xf32>
    %135 = vector.multi_reduction <add>, %134, %cst_65 [1] : vector<16x16xf32> to vector<16xf32>
    %136 = vector.shape_cast %135 : vector<16xf32> to vector<16x1xf32>
    %137 = vector.broadcast %136 : vector<16x1xf32> to vector<16x16xf32>
    %138 = arith.divf %134, %137 : vector<16x16xf32>
    %c16_66 = arith.constant 16 : index
    %c48_67 = arith.constant 48 : index
    %139 = vector.load %arg7[%c16_66, %c48_67] : memref<32x128xf32, #tpu.memory_space<vmem>>, vector<16x16xf32>
    tpu.vector_store %arg7[%c16_66, %c48_67], %138 {strides = array<i32>} : memref<32x128xf32, #tpu.memory_space<vmem>>, vector<16x16xf32>,
    %cst_68 = arith.constant dense<0.000000e+00> : vector<16x8xf32>
    %140 = tpu.matmul %138, %128, %cst_68 {dimension_numbers = #tpu.dot_dimension_numbers<[1], [0], [0], [1], [0, 0, 1, 1], [], []>} : vector<16x16xf32>, vector<16x8xf32>, vector<16x8xf32> -> vector<16x8xf32>
    %c16_69 = arith.constant 16 : index
    %c24_70 = arith.constant 24 : index
    %141 = vector.load %arg8[%c16_69, %c24_70] : memref<32x32xf32, #tpu.memory_space<vmem>>, vector<16x8xf32>
    tpu.vector_store %arg8[%c16_69, %c24_70], %140 {strides = array<i32>} : memref<32x32xf32, #tpu.memory_space<vmem>>, vector<16x8xf32>,
    %c0_71 = arith.constant 0 : index
    %c0_72 = arith.constant 0 : index
    %142 = vector.load %arg8[%c0_71, %c0_72] : memref<32x32xf32, #tpu.memory_space<vmem>>, vector<32x32xf32>
    %c0_73 = arith.constant 0 : index
    %c32_74 = arith.constant 32 : index
    %c0_75 = arith.constant 0 : index
    %143 = vector.load %arg4[%c0_73, %c32_74, %c0_75] : memref<2x160x128xf32, #tpu.memory_space<vmem>>, vector<1x32x32xf32>
    %144 = vector.shape_cast %143 : vector<1x32x32xf32> to vector<32x32xf32>
    %cst_76 = arith.constant dense<0.000000e+00> : vector<32x32xf32>
    %145 = tpu.matmul %142, %144, %cst_76 {dimension_numbers = #tpu.dot_dimension_numbers<[1], [0], [0], [1], [0, 0, 1, 1], [], []>} : vector<32x32xf32>, vector<32x32xf32>, vector<32x32xf32> -> vector<32x32xf32>
    %c2 = arith.constant 2 : index
    %c0_77 = arith.constant 0 : index
    %146 = vector.load %arg5[%c2, %c0_77] : memref<24x128xf32, #tpu.memory_space<vmem>>, vector<1x32xf32>
    %147 = vector.broadcast %146 : vector<1x32xf32> to vector<32x32xf32>
    %148 = arith.addf %145, %147 : vector<32x32xf32>
    %149 = arith.addf %148, %7 : vector<32x32xf32>
    %c3 = arith.constant 3 : index
    %c0_78 = arith.constant 0 : index
    %150 = vector.load %arg5[%c3, %c0_78] : memref<24x128xf32, #tpu.memory_space<vmem>>, vector<1x32xf32>
    %c4 = arith.constant 4 : index
    %c0_79 = arith.constant 0 : index
    %151 = vector.load %arg5[%c4, %c0_79] : memref<24x128xf32, #tpu.memory_space<vmem>>, vector<1x32xf32>
    %cst_80 = arith.constant dense<0.000000e+00> : vector<32xf32>
    %152 = vector.multi_reduction <add>, %149, %cst_80 [1] : vector<32x32xf32> to vector<32xf32>
    %153 = vector.shape_cast %152 : vector<32xf32> to vector<32x1xf32>
    %cst_81 = arith.constant 3.200000e+01 : f32
    %154 = vector.broadcast %cst_81 : f32 to vector<32x1xf32>
    %155 = arith.divf %153, %154 : vector<32x1xf32>
    %156 = vector.broadcast %155 : vector<32x1xf32> to vector<32x32xf32>
    %157 = arith.subf %149, %156 : vector<32x32xf32>
    %158 = arith.mulf %157, %157 : vector<32x32xf32>
    %cst_82 = arith.constant dense<0.000000e+00> : vector<32xf32>
    %159 = vector.multi_reduction <add>, %158, %cst_82 [1] : vector<32x32xf32> to vector<32xf32>
    %160 = vector.shape_cast %159 : vector<32xf32> to vector<32x1xf32>
    %cst_83 = arith.constant 3.200000e+01 : f32
    %161 = vector.broadcast %cst_83 : f32 to vector<32x1xf32>
    %162 = arith.divf %160, %161 : vector<32x1xf32>
    %163 = vector.broadcast %155 : vector<32x1xf32> to vector<32x32xf32>
    %164 = arith.subf %149, %163 : vector<32x32xf32>
    %cst_84 = arith.constant 9.99999974E-6 : f32
    %165 = vector.broadcast %cst_84 : f32 to vector<32x1xf32>
    %166 = arith.addf %162, %165 : vector<32x1xf32>
    %167 = math.rsqrt %166 : vector<32x1xf32>
    %168 = vector.broadcast %167 : vector<32x1xf32> to vector<32x32xf32>
    %169 = arith.mulf %164, %168 : vector<32x32xf32>
    %170 = vector.broadcast %150 : vector<1x32xf32> to vector<32x32xf32>
    %171 = arith.mulf %169, %170 : vector<32x32xf32>
    %172 = vector.broadcast %151 : vector<1x32xf32> to vector<32x32xf32>
    %173 = arith.addf %171, %172 : vector<32x32xf32>
    %c0_85 = arith.constant 0 : index
    %c64 = arith.constant 64 : index
    %c0_86 = arith.constant 0 : index
    %174 = vector.load %arg4[%c0_85, %c64, %c0_86] : memref<2x160x128xf32, #tpu.memory_space<vmem>>, vector<1x32x64xf32>
    %175 = vector.shape_cast %174 : vector<1x32x64xf32> to vector<32x64xf32>
    %cst_87 = arith.constant dense<0.000000e+00> : vector<32x64xf32>
    %176 = tpu.matmul %173, %175, %cst_87 {dimension_numbers = #tpu.dot_dimension_numbers<[1], [0], [0], [1], [0, 0, 1, 1], [], []>} : vector<32x32xf32>, vector<32x64xf32>, vector<32x64xf32> -> vector<32x64xf32>
    %c5 = arith.constant 5 : index
    %c0_88 = arith.constant 0 : index
    %177 = vector.load %arg5[%c5, %c0_88] : memref<24x128xf32, #tpu.memory_space<vmem>>, vector<1x64xf32>
    %178 = vector.broadcast %177 : vector<1x64xf32> to vector<32x64xf32>
    %179 = arith.addf %176, %178 : vector<32x64xf32>
    %cst_89 = arith.constant 0.000000e+00 : f32
    %180 = vector.broadcast %cst_89 : f32 to vector<32x64xf32>
    %181 = arith.maximumf %179, %180 : vector<32x64xf32>
    %c0_90 = arith.constant 0 : index
    %c96 = arith.constant 96 : index
    %c0_91 = arith.constant 0 : index
    %182 = vector.load %arg4[%c0_90, %c96, %c0_91] : memref<2x160x128xf32, #tpu.memory_space<vmem>>, vector<1x64x32xf32>
    %183 = vector.shape_cast %182 : vector<1x64x32xf32> to vector<64x32xf32>
    %cst_92 = arith.constant dense<0.000000e+00> : vector<32x32xf32>
    %184 = tpu.matmul %181, %183, %cst_92 {dimension_numbers = #tpu.dot_dimension_numbers<[1], [0], [0], [1], [0, 0, 1, 1], [], []>} : vector<32x64xf32>, vector<64x32xf32>, vector<32x32xf32> -> vector<32x32xf32>
    %c6 = arith.constant 6 : index
    %c0_93 = arith.constant 0 : index
    %185 = vector.load %arg5[%c6, %c0_93] : memref<24x128xf32, #tpu.memory_space<vmem>>, vector<1x32xf32>
    %186 = vector.broadcast %185 : vector<1x32xf32> to vector<32x32xf32>
    %187 = arith.addf %184, %186 : vector<32x32xf32>
    %188 = arith.addf %187, %173 : vector<32x32xf32>
    %c7 = arith.constant 7 : index
    %c0_94 = arith.constant 0 : index
    %189 = vector.load %arg5[%c7, %c0_94] : memref<24x128xf32, #tpu.memory_space<vmem>>, vector<1x32xf32>
    %c8_95 = arith.constant 8 : index
    %c0_96 = arith.constant 0 : index
    %190 = vector.load %arg5[%c8_95, %c0_96] : memref<24x128xf32, #tpu.memory_space<vmem>>, vector<1x32xf32>
    %cst_97 = arith.constant dense<0.000000e+00> : vector<32xf32>
    %191 = vector.multi_reduction <add>, %188, %cst_97 [1] : vector<32x32xf32> to vector<32xf32>
    %192 = vector.shape_cast %191 : vector<32xf32> to vector<32x1xf32>
    %cst_98 = arith.constant 3.200000e+01 : f32
    %193 = vector.broadcast %cst_98 : f32 to vector<32x1xf32>
    %194 = arith.divf %192, %193 : vector<32x1xf32>
    %195 = vector.broadcast %194 : vector<32x1xf32> to vector<32x32xf32>
    %196 = arith.subf %188, %195 : vector<32x32xf32>
    %197 = arith.mulf %196, %196 : vector<32x32xf32>
    %cst_99 = arith.constant dense<0.000000e+00> : vector<32xf32>
    %198 = vector.multi_reduction <add>, %197, %cst_99 [1] : vector<32x32xf32> to vector<32xf32>
    %199 = vector.shape_cast %198 : vector<32xf32> to vector<32x1xf32>
    %cst_100 = arith.constant 3.200000e+01 : f32
    %200 = vector.broadcast %cst_100 : f32 to vector<32x1xf32>
    %201 = arith.divf %199, %200 : vector<32x1xf32>
    %202 = vector.broadcast %194 : vector<32x1xf32> to vector<32x32xf32>
    %203 = arith.subf %188, %202 : vector<32x32xf32>
    %cst_101 = arith.constant 9.99999974E-6 : f32
    %204 = vector.broadcast %cst_101 : f32 to vector<32x1xf32>
    %205 = arith.addf %201, %204 : vector<32x1xf32>
    %206 = math.rsqrt %205 : vector<32x1xf32>
    %207 = vector.broadcast %206 : vector<32x1xf32> to vector<32x32xf32>
    %208 = arith.mulf %203, %207 : vector<32x32xf32>
    %209 = vector.broadcast %189 : vector<1x32xf32> to vector<32x32xf32>
    %210 = arith.mulf %208, %209 : vector<32x32xf32>
    %211 = vector.broadcast %190 : vector<1x32xf32> to vector<32x32xf32>
    %212 = arith.addf %210, %211 : vector<32x32xf32>
    %213 = arith.addf %212, %6 : vector<32x32xf32>
    %c1_102 = arith.constant 1 : index
    %c0_103 = arith.constant 0 : index
    %c0_104 = arith.constant 0 : index
    %214 = vector.load %arg4[%c1_102, %c0_103, %c0_104] : memref<2x160x128xf32, #tpu.memory_space<vmem>>, vector<1x32x128xf32>
    %215 = vector.shape_cast %214 : vector<1x32x128xf32> to vector<32x128xf32>
    %cst_105 = arith.constant dense<0.000000e+00> : vector<32x128xf32>
    %216 = tpu.matmul %213, %215, %cst_105 {dimension_numbers = #tpu.dot_dimension_numbers<[1], [0], [0], [1], [0, 0, 1, 1], [], []>} : vector<32x32xf32>, vector<32x128xf32>, vector<32x128xf32> -> vector<32x128xf32>
    %c9 = arith.constant 9 : index
    %c0_106 = arith.constant 0 : index
    %217 = vector.load %arg5[%c9, %c0_106] : memref<24x128xf32, #tpu.memory_space<vmem>>, vector<1x128xf32>
    %218 = vector.broadcast %217 : vector<1x128xf32> to vector<32x128xf32>
    %219 = arith.addf %216, %218 : vector<32x128xf32>
    %220 = vector.extract_strided_slice %219 {offsets = [0, 0], sizes = [16, 8], strides = [1, 1]} : vector<32x128xf32> to vector<16x8xf32>
    %221 = vector.extract_strided_slice %219 {offsets = [0, 32], sizes = [16, 8], strides = [1, 1]} : vector<32x128xf32> to vector<16x8xf32>
    %222 = vector.extract_strided_slice %219 {offsets = [0, 64], sizes = [16, 8], strides = [1, 1]} : vector<32x128xf32> to vector<16x8xf32>
    %cst_107 = arith.constant dense<0.000000e+00> : vector<16x16xf32>
    %223 = tpu.matmul %220, %221, %cst_107 {dimension_numbers = #tpu.dot_dimension_numbers<[1], [1], [0], [0], [0, 0, 1, 0], [], []>} : vector<16x8xf32>, vector<16x8xf32>, vector<16x16xf32> -> vector<16x16xf32>
    %cst_108 = arith.constant dense<0xFF800000> : vector<16xf32>
    %224 = vector.multi_reduction <maximumf>, %223, %cst_108 [1] : vector<16x16xf32> to vector<16xf32>
    %225 = vector.shape_cast %224 : vector<16xf32> to vector<16x1xf32>
    %226 = vector.broadcast %225 : vector<16x1xf32> to vector<16x16xf32>
    %227 = arith.subf %223, %226 : vector<16x16xf32>
    %228 = math.exp %227 : vector<16x16xf32>
    %cst_109 = arith.constant dense<0.000000e+00> : vector<16xf32>
    %229 = vector.multi_reduction <add>, %228, %cst_109 [1] : vector<16x16xf32> to vector<16xf32>
    %230 = vector.shape_cast %229 : vector<16xf32> to vector<16x1xf32>
    %231 = vector.broadcast %230 : vector<16x1xf32> to vector<16x16xf32>
    %232 = arith.divf %228, %231 : vector<16x16xf32>
    %c0_110 = arith.constant 0 : index
    %c64_111 = arith.constant 64 : index
    %233 = vector.load %arg7[%c0_110, %c64_111] : memref<32x128xf32, #tpu.memory_space<vmem>>, vector<16x16xf32>
    tpu.vector_store %arg7[%c0_110, %c64_111], %232 {strides = array<i32>} : memref<32x128xf32, #tpu.memory_space<vmem>>, vector<16x16xf32>,
    %cst_112 = arith.constant dense<0.000000e+00> : vector<16x8xf32>
    %234 = tpu.matmul %232, %222, %cst_112 {dimension_numbers = #tpu.dot_dimension_numbers<[1], [0], [0], [1], [0, 0, 1, 1], [], []>} : vector<16x16xf32>, vector<16x8xf32>, vector<16x8xf32> -> vector<16x8xf32>
    %c0_113 = arith.constant 0 : index
    %c0_114 = arith.constant 0 : index
    %235 = vector.load %arg8[%c0_113, %c0_114] : memref<32x32xf32, #tpu.memory_space<vmem>>, vector<16x8xf32>
    tpu.vector_store %arg8[%c0_113, %c0_114], %234 {strides = array<i32>} : memref<32x32xf32, #tpu.memory_space<vmem>>, vector<16x8xf32>,
    %236 = vector.extract_strided_slice %219 {offsets = [0, 8], sizes = [16, 8], strides = [1, 1]} : vector<32x128xf32> to vector<16x8xf32>
    %237 = vector.extract_strided_slice %219 {offsets = [0, 40], sizes = [16, 8], strides = [1, 1]} : vector<32x128xf32> to vector<16x8xf32>
    %238 = vector.extract_strided_slice %219 {offsets = [0, 72], sizes = [16, 8], strides = [1, 1]} : vector<32x128xf32> to vector<16x8xf32>
    %cst_115 = arith.constant dense<0.000000e+00> : vector<16x16xf32>
    %239 = tpu.matmul %236, %237, %cst_115 {dimension_numbers = #tpu.dot_dimension_numbers<[1], [1], [0], [0], [0, 0, 1, 0], [], []>} : vector<16x8xf32>, vector<16x8xf32>, vector<16x16xf32> -> vector<16x16xf32>
    %cst_116 = arith.constant dense<0xFF800000> : vector<16xf32>
    %240 = vector.multi_reduction <maximumf>, %239, %cst_116 [1] : vector<16x16xf32> to vector<16xf32>
    %241 = vector.shape_cast %240 : vector<16xf32> to vector<16x1xf32>
    %242 = vector.broadcast %241 : vector<16x1xf32> to vector<16x16xf32>
    %243 = arith.subf %239, %242 : vector<16x16xf32>
    %244 = math.exp %243 : vector<16x16xf32>
    %cst_117 = arith.constant dense<0.000000e+00> : vector<16xf32>
    %245 = vector.multi_reduction <add>, %244, %cst_117 [1] : vector<16x16xf32> to vector<16xf32>
    %246 = vector.shape_cast %245 : vector<16xf32> to vector<16x1xf32>
    %247 = vector.broadcast %246 : vector<16x1xf32> to vector<16x16xf32>
    %248 = arith.divf %244, %247 : vector<16x16xf32>
    %c0_118 = arith.constant 0 : index
    %c80 = arith.constant 80 : index
    %249 = vector.load %arg7[%c0_118, %c80] : memref<32x128xf32, #tpu.memory_space<vmem>>, vector<16x16xf32>
    tpu.vector_store %arg7[%c0_118, %c80], %248 {strides = array<i32>} : memref<32x128xf32, #tpu.memory_space<vmem>>, vector<16x16xf32>,
    %cst_119 = arith.constant dense<0.000000e+00> : vector<16x8xf32>
    %250 = tpu.matmul %248, %238, %cst_119 {dimension_numbers = #tpu.dot_dimension_numbers<[1], [0], [0], [1], [0, 0, 1, 1], [], []>} : vector<16x16xf32>, vector<16x8xf32>, vector<16x8xf32> -> vector<16x8xf32>
    %c0_120 = arith.constant 0 : index
    %c8_121 = arith.constant 8 : index
    %251 = vector.load %arg8[%c0_120, %c8_121] : memref<32x32xf32, #tpu.memory_space<vmem>>, vector<16x8xf32>
    tpu.vector_store %arg8[%c0_120, %c8_121], %250 {strides = array<i32>} : memref<32x32xf32, #tpu.memory_space<vmem>>, vector<16x8xf32>,
    %252 = vector.extract_strided_slice %219 {offsets = [0, 16], sizes = [16, 8], strides = [1, 1]} : vector<32x128xf32> to vector<16x8xf32>
    %253 = vector.extract_strided_slice %219 {offsets = [0, 48], sizes = [16, 8], strides = [1, 1]} : vector<32x128xf32> to vector<16x8xf32>
    %254 = vector.extract_strided_slice %219 {offsets = [0, 80], sizes = [16, 8], strides = [1, 1]} : vector<32x128xf32> to vector<16x8xf32>
    %cst_122 = arith.constant dense<0.000000e+00> : vector<16x16xf32>
    %255 = tpu.matmul %252, %253, %cst_122 {dimension_numbers = #tpu.dot_dimension_numbers<[1], [1], [0], [0], [0, 0, 1, 0], [], []>} : vector<16x8xf32>, vector<16x8xf32>, vector<16x16xf32> -> vector<16x16xf32>
    %cst_123 = arith.constant dense<0xFF800000> : vector<16xf32>
    %256 = vector.multi_reduction <maximumf>, %255, %cst_123 [1] : vector<16x16xf32> to vector<16xf32>
    %257 = vector.shape_cast %256 : vector<16xf32> to vector<16x1xf32>
    %258 = vector.broadcast %257 : vector<16x1xf32> to vector<16x16xf32>
    %259 = arith.subf %255, %258 : vector<16x16xf32>
    %260 = math.exp %259 : vector<16x16xf32>
    %cst_124 = arith.constant dense<0.000000e+00> : vector<16xf32>
    %261 = vector.multi_reduction <add>, %260, %cst_124 [1] : vector<16x16xf32> to vector<16xf32>
    %262 = vector.shape_cast %261 : vector<16xf32> to vector<16x1xf32>
    %263 = vector.broadcast %262 : vector<16x1xf32> to vector<16x16xf32>
    %264 = arith.divf %260, %263 : vector<16x16xf32>
    %c0_125 = arith.constant 0 : index
    %c96_126 = arith.constant 96 : index
    %265 = vector.load %arg7[%c0_125, %c96_126] : memref<32x128xf32, #tpu.memory_space<vmem>>, vector<16x16xf32>
    tpu.vector_store %arg7[%c0_125, %c96_126], %264 {strides = array<i32>} : memref<32x128xf32, #tpu.memory_space<vmem>>, vector<16x16xf32>,
    %cst_127 = arith.constant dense<0.000000e+00> : vector<16x8xf32>
    %266 = tpu.matmul %264, %254, %cst_127 {dimension_numbers = #tpu.dot_dimension_numbers<[1], [0], [0], [1], [0, 0, 1, 1], [], []>} : vector<16x16xf32>, vector<16x8xf32>, vector<16x8xf32> -> vector<16x8xf32>
    %c0_128 = arith.constant 0 : index
    %c16_129 = arith.constant 16 : index
    %267 = vector.load %arg8[%c0_128, %c16_129] : memref<32x32xf32, #tpu.memory_space<vmem>>, vector<16x8xf32>
    tpu.vector_store %arg8[%c0_128, %c16_129], %266 {strides = array<i32>} : memref<32x32xf32, #tpu.memory_space<vmem>>, vector<16x8xf32>,
    %268 = vector.extract_strided_slice %219 {offsets = [0, 24], sizes = [16, 8], strides = [1, 1]} : vector<32x128xf32> to vector<16x8xf32>
    %269 = vector.extract_strided_slice %219 {offsets = [0, 56], sizes = [16, 8], strides = [1, 1]} : vector<32x128xf32> to vector<16x8xf32>
    %270 = vector.extract_strided_slice %219 {offsets = [0, 88], sizes = [16, 8], strides = [1, 1]} : vector<32x128xf32> to vector<16x8xf32>
    %cst_130 = arith.constant dense<0.000000e+00> : vector<16x16xf32>
    %271 = tpu.matmul %268, %269, %cst_130 {dimension_numbers = #tpu.dot_dimension_numbers<[1], [1], [0], [0], [0, 0, 1, 0], [], []>} : vector<16x8xf32>, vector<16x8xf32>, vector<16x16xf32> -> vector<16x16xf32>
    %cst_131 = arith.constant dense<0xFF800000> : vector<16xf32>
    %272 = vector.multi_reduction <maximumf>, %271, %cst_131 [1] : vector<16x16xf32> to vector<16xf32>
    %273 = vector.shape_cast %272 : vector<16xf32> to vector<16x1xf32>
    %274 = vector.broadcast %273 : vector<16x1xf32> to vector<16x16xf32>
    %275 = arith.subf %271, %274 : vector<16x16xf32>
    %276 = math.exp %275 : vector<16x16xf32>
    %cst_132 = arith.constant dense<0.000000e+00> : vector<16xf32>
    %277 = vector.multi_reduction <add>, %276, %cst_132 [1] : vector<16x16xf32> to vector<16xf32>
    %278 = vector.shape_cast %277 : vector<16xf32> to vector<16x1xf32>
    %279 = vector.broadcast %278 : vector<16x1xf32> to vector<16x16xf32>
    %280 = arith.divf %276, %279 : vector<16x16xf32>
    %c0_133 = arith.constant 0 : index
    %c112 = arith.constant 112 : index
    %281 = vector.load %arg7[%c0_133, %c112] : memref<32x128xf32, #tpu.memory_space<vmem>>, vector<16x16xf32>
    tpu.vector_store %arg7[%c0_133, %c112], %280 {strides = array<i32>} : memref<32x128xf32, #tpu.memory_space<vmem>>, vector<16x16xf32>,
    %cst_134 = arith.constant dense<0.000000e+00> : vector<16x8xf32>
    %282 = tpu.matmul %280, %270, %cst_134 {dimension_numbers = #tpu.dot_dimension_numbers<[1], [0], [0], [1], [0, 0, 1, 1], [], []>} : vector<16x16xf32>, vector<16x8xf32>, vector<16x8xf32> -> vector<16x8xf32>
    %c0_135 = arith.constant 0 : index
    %c24_136 = arith.constant 24 : index
    %283 = vector.load %arg8[%c0_135, %c24_136] : memref<32x32xf32, #tpu.memory_space<vmem>>, vector<16x8xf32>
    tpu.vector_store %arg8[%c0_135, %c24_136], %282 {strides = array<i32>} : memref<32x32xf32, #tpu.memory_space<vmem>>, vector<16x8xf32>,
    %284 = vector.extract_strided_slice %219 {offsets = [16, 0], sizes = [16, 8], strides = [1, 1]} : vector<32x128xf32> to vector<16x8xf32>
    %285 = vector.extract_strided_slice %219 {offsets = [16, 32], sizes = [16, 8], strides = [1, 1]} : vector<32x128xf32> to vector<16x8xf32>
    %286 = vector.extract_strided_slice %219 {offsets = [16, 64], sizes = [16, 8], strides = [1, 1]} : vector<32x128xf32> to vector<16x8xf32>
    %cst_137 = arith.constant dense<0.000000e+00> : vector<16x16xf32>
    %287 = tpu.matmul %284, %285, %cst_137 {dimension_numbers = #tpu.dot_dimension_numbers<[1], [1], [0], [0], [0, 0, 1, 0], [], []>} : vector<16x8xf32>, vector<16x8xf32>, vector<16x16xf32> -> vector<16x16xf32>
    %cst_138 = arith.constant dense<0xFF800000> : vector<16xf32>
    %288 = vector.multi_reduction <maximumf>, %287, %cst_138 [1] : vector<16x16xf32> to vector<16xf32>
    %289 = vector.shape_cast %288 : vector<16xf32> to vector<16x1xf32>
    %290 = vector.broadcast %289 : vector<16x1xf32> to vector<16x16xf32>
    %291 = arith.subf %287, %290 : vector<16x16xf32>
    %292 = math.exp %291 : vector<16x16xf32>
    %cst_139 = arith.constant dense<0.000000e+00> : vector<16xf32>
    %293 = vector.multi_reduction <add>, %292, %cst_139 [1] : vector<16x16xf32> to vector<16xf32>
    %294 = vector.shape_cast %293 : vector<16xf32> to vector<16x1xf32>
    %295 = vector.broadcast %294 : vector<16x1xf32> to vector<16x16xf32>
    %296 = arith.divf %292, %295 : vector<16x16xf32>
    %c16_140 = arith.constant 16 : index
    %c64_141 = arith.constant 64 : index
    %297 = vector.load %arg7[%c16_140, %c64_141] : memref<32x128xf32, #tpu.memory_space<vmem>>, vector<16x16xf32>
    tpu.vector_store %arg7[%c16_140, %c64_141], %296 {strides = array<i32>} : memref<32x128xf32, #tpu.memory_space<vmem>>, vector<16x16xf32>,
    %cst_142 = arith.constant dense<0.000000e+00> : vector<16x8xf32>
    %298 = tpu.matmul %296, %286, %cst_142 {dimension_numbers = #tpu.dot_dimension_numbers<[1], [0], [0], [1], [0, 0, 1, 1], [], []>} : vector<16x16xf32>, vector<16x8xf32>, vector<16x8xf32> -> vector<16x8xf32>
    %c16_143 = arith.constant 16 : index
    %c0_144 = arith.constant 0 : index
    %299 = vector.load %arg8[%c16_143, %c0_144] : memref<32x32xf32, #tpu.memory_space<vmem>>, vector<16x8xf32>
    tpu.vector_store %arg8[%c16_143, %c0_144], %298 {strides = array<i32>} : memref<32x32xf32, #tpu.memory_space<vmem>>, vector<16x8xf32>,
    %300 = vector.extract_strided_slice %219 {offsets = [16, 8], sizes = [16, 8], strides = [1, 1]} : vector<32x128xf32> to vector<16x8xf32>
    %301 = vector.extract_strided_slice %219 {offsets = [16, 40], sizes = [16, 8], strides = [1, 1]} : vector<32x128xf32> to vector<16x8xf32>
    %302 = vector.extract_strided_slice %219 {offsets = [16, 72], sizes = [16, 8], strides = [1, 1]} : vector<32x128xf32> to vector<16x8xf32>
    %cst_145 = arith.constant dense<0.000000e+00> : vector<16x16xf32>
    %303 = tpu.matmul %300, %301, %cst_145 {dimension_numbers = #tpu.dot_dimension_numbers<[1], [1], [0], [0], [0, 0, 1, 0], [], []>} : vector<16x8xf32>, vector<16x8xf32>, vector<16x16xf32> -> vector<16x16xf32>
    %cst_146 = arith.constant dense<0xFF800000> : vector<16xf32>
    %304 = vector.multi_reduction <maximumf>, %303, %cst_146 [1] : vector<16x16xf32> to vector<16xf32>
    %305 = vector.shape_cast %304 : vector<16xf32> to vector<16x1xf32>
    %306 = vector.broadcast %305 : vector<16x1xf32> to vector<16x16xf32>
    %307 = arith.subf %303, %306 : vector<16x16xf32>
    %308 = math.exp %307 : vector<16x16xf32>
    %cst_147 = arith.constant dense<0.000000e+00> : vector<16xf32>
    %309 = vector.multi_reduction <add>, %308, %cst_147 [1] : vector<16x16xf32> to vector<16xf32>
    %310 = vector.shape_cast %309 : vector<16xf32> to vector<16x1xf32>
    %311 = vector.broadcast %310 : vector<16x1xf32> to vector<16x16xf32>
    %312 = arith.divf %308, %311 : vector<16x16xf32>
    %c16_148 = arith.constant 16 : index
    %c80_149 = arith.constant 80 : index
    %313 = vector.load %arg7[%c16_148, %c80_149] : memref<32x128xf32, #tpu.memory_space<vmem>>, vector<16x16xf32>
    tpu.vector_store %arg7[%c16_148, %c80_149], %312 {strides = array<i32>} : memref<32x128xf32, #tpu.memory_space<vmem>>, vector<16x16xf32>,
    %cst_150 = arith.constant dense<0.000000e+00> : vector<16x8xf32>
    %314 = tpu.matmul %312, %302, %cst_150 {dimension_numbers = #tpu.dot_dimension_numbers<[1], [0], [0], [1], [0, 0, 1, 1], [], []>} : vector<16x16xf32>, vector<16x8xf32>, vector<16x8xf32> -> vector<16x8xf32>
    %c16_151 = arith.constant 16 : index
    %c8_152 = arith.constant 8 : index
    %315 = vector.load %arg8[%c16_151, %c8_152] : memref<32x32xf32, #tpu.memory_space<vmem>>, vector<16x8xf32>
    tpu.vector_store %arg8[%c16_151, %c8_152], %314 {strides = array<i32>} : memref<32x32xf32, #tpu.memory_space<vmem>>, vector<16x8xf32>,
    %316 = vector.extract_strided_slice %219 {offsets = [16, 16], sizes = [16, 8], strides = [1, 1]} : vector<32x128xf32> to vector<16x8xf32>
    %317 = vector.extract_strided_slice %219 {offsets = [16, 48], sizes = [16, 8], strides = [1, 1]} : vector<32x128xf32> to vector<16x8xf32>
    %318 = vector.extract_strided_slice %219 {offsets = [16, 80], sizes = [16, 8], strides = [1, 1]} : vector<32x128xf32> to vector<16x8xf32>
    %cst_153 = arith.constant dense<0.000000e+00> : vector<16x16xf32>
    %319 = tpu.matmul %316, %317, %cst_153 {dimension_numbers = #tpu.dot_dimension_numbers<[1], [1], [0], [0], [0, 0, 1, 0], [], []>} : vector<16x8xf32>, vector<16x8xf32>, vector<16x16xf32> -> vector<16x16xf32>
    %cst_154 = arith.constant dense<0xFF800000> : vector<16xf32>
    %320 = vector.multi_reduction <maximumf>, %319, %cst_154 [1] : vector<16x16xf32> to vector<16xf32>
    %321 = vector.shape_cast %320 : vector<16xf32> to vector<16x1xf32>
    %322 = vector.broadcast %321 : vector<16x1xf32> to vector<16x16xf32>
    %323 = arith.subf %319, %322 : vector<16x16xf32>
    %324 = math.exp %323 : vector<16x16xf32>
    %cst_155 = arith.constant dense<0.000000e+00> : vector<16xf32>
    %325 = vector.multi_reduction <add>, %324, %cst_155 [1] : vector<16x16xf32> to vector<16xf32>
    %326 = vector.shape_cast %325 : vector<16xf32> to vector<16x1xf32>
    %327 = vector.broadcast %326 : vector<16x1xf32> to vector<16x16xf32>
    %328 = arith.divf %324, %327 : vector<16x16xf32>
    %c16_156 = arith.constant 16 : index
    %c96_157 = arith.constant 96 : index
    %329 = vector.load %arg7[%c16_156, %c96_157] : memref<32x128xf32, #tpu.memory_space<vmem>>, vector<16x16xf32>
    tpu.vector_store %arg7[%c16_156, %c96_157], %328 {strides = array<i32>} : memref<32x128xf32, #tpu.memory_space<vmem>>, vector<16x16xf32>,
    %cst_158 = arith.constant dense<0.000000e+00> : vector<16x8xf32>
    %330 = tpu.matmul %328, %318, %cst_158 {dimension_numbers = #tpu.dot_dimension_numbers<[1], [0], [0], [1], [0, 0, 1, 1], [], []>} : vector<16x16xf32>, vector<16x8xf32>, vector<16x8xf32> -> vector<16x8xf32>
    %c16_159 = arith.constant 16 : index
    %c16_160 = arith.constant 16 : index
    %331 = vector.load %arg8[%c16_159, %c16_160] : memref<32x32xf32, #tpu.memory_space<vmem>>, vector<16x8xf32>
    tpu.vector_store %arg8[%c16_159, %c16_160], %330 {strides = array<i32>} : memref<32x32xf32, #tpu.memory_space<vmem>>, vector<16x8xf32>,
    %332 = vector.extract_strided_slice %219 {offsets = [16, 24], sizes = [16, 8], strides = [1, 1]} : vector<32x128xf32> to vector<16x8xf32>
    %333 = vector.extract_strided_slice %219 {offsets = [16, 56], sizes = [16, 8], strides = [1, 1]} : vector<32x128xf32> to vector<16x8xf32>
    %334 = vector.extract_strided_slice %219 {offsets = [16, 88], sizes = [16, 8], strides = [1, 1]} : vector<32x128xf32> to vector<16x8xf32>
    %cst_161 = arith.constant dense<0.000000e+00> : vector<16x16xf32>
    %335 = tpu.matmul %332, %333, %cst_161 {dimension_numbers = #tpu.dot_dimension_numbers<[1], [1], [0], [0], [0, 0, 1, 0], [], []>} : vector<16x8xf32>, vector<16x8xf32>, vector<16x16xf32> -> vector<16x16xf32>
    %cst_162 = arith.constant dense<0xFF800000> : vector<16xf32>
    %336 = vector.multi_reduction <maximumf>, %335, %cst_162 [1] : vector<16x16xf32> to vector<16xf32>
    %337 = vector.shape_cast %336 : vector<16xf32> to vector<16x1xf32>
    %338 = vector.broadcast %337 : vector<16x1xf32> to vector<16x16xf32>
    %339 = arith.subf %335, %338 : vector<16x16xf32>
    %340 = math.exp %339 : vector<16x16xf32>
    %cst_163 = arith.constant dense<0.000000e+00> : vector<16xf32>
    %341 = vector.multi_reduction <add>, %340, %cst_163 [1] : vector<16x16xf32> to vector<16xf32>
    %342 = vector.shape_cast %341 : vector<16xf32> to vector<16x1xf32>
    %343 = vector.broadcast %342 : vector<16x1xf32> to vector<16x16xf32>
    %344 = arith.divf %340, %343 : vector<16x16xf32>
    %c16_164 = arith.constant 16 : index
    %c112_165 = arith.constant 112 : index
    %345 = vector.load %arg7[%c16_164, %c112_165] : memref<32x128xf32, #tpu.memory_space<vmem>>, vector<16x16xf32>
    tpu.vector_store %arg7[%c16_164, %c112_165], %344 {strides = array<i32>} : memref<32x128xf32, #tpu.memory_space<vmem>>, vector<16x16xf32>,
    %cst_166 = arith.constant dense<0.000000e+00> : vector<16x8xf32>
    %346 = tpu.matmul %344, %334, %cst_166 {dimension_numbers = #tpu.dot_dimension_numbers<[1], [0], [0], [1], [0, 0, 1, 1], [], []>} : vector<16x16xf32>, vector<16x8xf32>, vector<16x8xf32> -> vector<16x8xf32>
    %c16_167 = arith.constant 16 : index
    %c24_168 = arith.constant 24 : index
    %347 = vector.load %arg8[%c16_167, %c24_168] : memref<32x32xf32, #tpu.memory_space<vmem>>, vector<16x8xf32>
    tpu.vector_store %arg8[%c16_167, %c24_168], %346 {strides = array<i32>} : memref<32x32xf32, #tpu.memory_space<vmem>>, vector<16x8xf32>,
    %c0_169 = arith.constant 0 : index
    %c0_170 = arith.constant 0 : index
    %348 = vector.load %arg8[%c0_169, %c0_170] : memref<32x32xf32, #tpu.memory_space<vmem>>, vector<32x32xf32>
    %c1_171 = arith.constant 1 : index
    %c32_172 = arith.constant 32 : index
    %c0_173 = arith.constant 0 : index
    %349 = vector.load %arg4[%c1_171, %c32_172, %c0_173] : memref<2x160x128xf32, #tpu.memory_space<vmem>>, vector<1x32x32xf32>
    %350 = vector.shape_cast %349 : vector<1x32x32xf32> to vector<32x32xf32>
    %cst_174 = arith.constant dense<0.000000e+00> : vector<32x32xf32>
    %351 = tpu.matmul %348, %350, %cst_174 {dimension_numbers = #tpu.dot_dimension_numbers<[1], [0], [0], [1], [0, 0, 1, 1], [], []>} : vector<32x32xf32>, vector<32x32xf32>, vector<32x32xf32> -> vector<32x32xf32>
    %c10 = arith.constant 10 : index
    %c0_175 = arith.constant 0 : index
    %352 = vector.load %arg5[%c10, %c0_175] : memref<24x128xf32, #tpu.memory_space<vmem>>, vector<1x32xf32>
    %353 = vector.broadcast %352 : vector<1x32xf32> to vector<32x32xf32>
    %354 = arith.addf %351, %353 : vector<32x32xf32>
    %355 = arith.addf %354, %213 : vector<32x32xf32>
    %c11 = arith.constant 11 : index
    %c0_176 = arith.constant 0 : index
    %356 = vector.load %arg5[%c11, %c0_176] : memref<24x128xf32, #tpu.memory_space<vmem>>, vector<1x32xf32>
    %c12 = arith.constant 12 : index
    %c0_177 = arith.constant 0 : index
    %357 = vector.load %arg5[%c12, %c0_177] : memref<24x128xf32, #tpu.memory_space<vmem>>, vector<1x32xf32>
    %cst_178 = arith.constant dense<0.000000e+00> : vector<32xf32>
    %358 = vector.multi_reduction <add>, %355, %cst_178 [1] : vector<32x32xf32> to vector<32xf32>
    %359 = vector.shape_cast %358 : vector<32xf32> to vector<32x1xf32>
    %cst_179 = arith.constant 3.200000e+01 : f32
    %360 = vector.broadcast %cst_179 : f32 to vector<32x1xf32>
    %361 = arith.divf %359, %360 : vector<32x1xf32>
    %362 = vector.broadcast %361 : vector<32x1xf32> to vector<32x32xf32>
    %363 = arith.subf %355, %362 : vector<32x32xf32>
    %364 = arith.mulf %363, %363 : vector<32x32xf32>
    %cst_180 = arith.constant dense<0.000000e+00> : vector<32xf32>
    %365 = vector.multi_reduction <add>, %364, %cst_180 [1] : vector<32x32xf32> to vector<32xf32>
    %366 = vector.shape_cast %365 : vector<32xf32> to vector<32x1xf32>
    %cst_181 = arith.constant 3.200000e+01 : f32
    %367 = vector.broadcast %cst_181 : f32 to vector<32x1xf32>
    %368 = arith.divf %366, %367 : vector<32x1xf32>
    %369 = vector.broadcast %361 : vector<32x1xf32> to vector<32x32xf32>
    %370 = arith.subf %355, %369 : vector<32x32xf32>
    %cst_182 = arith.constant 9.99999974E-6 : f32
    %371 = vector.broadcast %cst_182 : f32 to vector<32x1xf32>
    %372 = arith.addf %368, %371 : vector<32x1xf32>
    %373 = math.rsqrt %372 : vector<32x1xf32>
    %374 = vector.broadcast %373 : vector<32x1xf32> to vector<32x32xf32>
    %375 = arith.mulf %370, %374 : vector<32x32xf32>
    %376 = vector.broadcast %356 : vector<1x32xf32> to vector<32x32xf32>
    %377 = arith.mulf %375, %376 : vector<32x32xf32>
    %378 = vector.broadcast %357 : vector<1x32xf32> to vector<32x32xf32>
    %379 = arith.addf %377, %378 : vector<32x32xf32>
    %c1_183 = arith.constant 1 : index
    %c64_184 = arith.constant 64 : index
    %c0_185 = arith.constant 0 : index
    %380 = vector.load %arg4[%c1_183, %c64_184, %c0_185] : memref<2x160x128xf32, #tpu.memory_space<vmem>>, vector<1x32x64xf32>
    %381 = vector.shape_cast %380 : vector<1x32x64xf32> to vector<32x64xf32>
    %cst_186 = arith.constant dense<0.000000e+00> : vector<32x64xf32>
    %382 = tpu.matmul %379, %381, %cst_186 {dimension_numbers = #tpu.dot_dimension_numbers<[1], [0], [0], [1], [0, 0, 1, 1], [], []>} : vector<32x32xf32>, vector<32x64xf32>, vector<32x64xf32> -> vector<32x64xf32>
    %c13 = arith.constant 13 : index
    %c0_187 = arith.constant 0 : index
    %383 = vector.load %arg5[%c13, %c0_187] : memref<24x128xf32, #tpu.memory_space<vmem>>, vector<1x64xf32>
    %384 = vector.broadcast %383 : vector<1x64xf32> to vector<32x64xf32>
    %385 = arith.addf %382, %384 : vector<32x64xf32>
    %cst_188 = arith.constant 0.000000e+00 : f32
    %386 = vector.broadcast %cst_188 : f32 to vector<32x64xf32>
    %387 = arith.maximumf %385, %386 : vector<32x64xf32>
    %c1_189 = arith.constant 1 : index
    %c96_190 = arith.constant 96 : index
    %c0_191 = arith.constant 0 : index
    %388 = vector.load %arg4[%c1_189, %c96_190, %c0_191] : memref<2x160x128xf32, #tpu.memory_space<vmem>>, vector<1x64x32xf32>
    %389 = vector.shape_cast %388 : vector<1x64x32xf32> to vector<64x32xf32>
    %cst_192 = arith.constant dense<0.000000e+00> : vector<32x32xf32>
    %390 = tpu.matmul %387, %389, %cst_192 {dimension_numbers = #tpu.dot_dimension_numbers<[1], [0], [0], [1], [0, 0, 1, 1], [], []>} : vector<32x64xf32>, vector<64x32xf32>, vector<32x32xf32> -> vector<32x32xf32>
    %c14 = arith.constant 14 : index
    %c0_193 = arith.constant 0 : index
    %391 = vector.load %arg5[%c14, %c0_193] : memref<24x128xf32, #tpu.memory_space<vmem>>, vector<1x32xf32>
    %392 = vector.broadcast %391 : vector<1x32xf32> to vector<32x32xf32>
    %393 = arith.addf %390, %392 : vector<32x32xf32>
    %394 = arith.addf %393, %379 : vector<32x32xf32>
    %c15 = arith.constant 15 : index
    %c0_194 = arith.constant 0 : index
    %395 = vector.load %arg5[%c15, %c0_194] : memref<24x128xf32, #tpu.memory_space<vmem>>, vector<1x32xf32>
    %c16_195 = arith.constant 16 : index
    %c0_196 = arith.constant 0 : index
    %396 = vector.load %arg5[%c16_195, %c0_196] : memref<24x128xf32, #tpu.memory_space<vmem>>, vector<1x32xf32>
    %cst_197 = arith.constant dense<0.000000e+00> : vector<32xf32>
    %397 = vector.multi_reduction <add>, %394, %cst_197 [1] : vector<32x32xf32> to vector<32xf32>
    %398 = vector.shape_cast %397 : vector<32xf32> to vector<32x1xf32>
    %cst_198 = arith.constant 3.200000e+01 : f32
    %399 = vector.broadcast %cst_198 : f32 to vector<32x1xf32>
    %400 = arith.divf %398, %399 : vector<32x1xf32>
    %401 = vector.broadcast %400 : vector<32x1xf32> to vector<32x32xf32>
    %402 = arith.subf %394, %401 : vector<32x32xf32>
    %403 = arith.mulf %402, %402 : vector<32x32xf32>
    %cst_199 = arith.constant dense<0.000000e+00> : vector<32xf32>
    %404 = vector.multi_reduction <add>, %403, %cst_199 [1] : vector<32x32xf32> to vector<32xf32>
    %405 = vector.shape_cast %404 : vector<32xf32> to vector<32x1xf32>
    %cst_200 = arith.constant 3.200000e+01 : f32
    %406 = vector.broadcast %cst_200 : f32 to vector<32x1xf32>
    %407 = arith.divf %405, %406 : vector<32x1xf32>
    %408 = vector.broadcast %400 : vector<32x1xf32> to vector<32x32xf32>
    %409 = arith.subf %394, %408 : vector<32x32xf32>
    %cst_201 = arith.constant 9.99999974E-6 : f32
    %410 = vector.broadcast %cst_201 : f32 to vector<32x1xf32>
    %411 = arith.addf %407, %410 : vector<32x1xf32>
    %412 = math.rsqrt %411 : vector<32x1xf32>
    %413 = vector.broadcast %412 : vector<32x1xf32> to vector<32x32xf32>
    %414 = arith.mulf %409, %413 : vector<32x32xf32>
    %415 = vector.broadcast %395 : vector<1x32xf32> to vector<32x32xf32>
    %416 = arith.mulf %414, %415 : vector<32x32xf32>
    %417 = vector.broadcast %396 : vector<1x32xf32> to vector<32x32xf32>
    %418 = arith.addf %416, %417 : vector<32x32xf32>
    %c0_202 = arith.constant 0 : index
    %c0_203 = arith.constant 0 : index
    %419 = vector.load %arg6[%c0_202, %c0_203] : memref<32x32xf32, #tpu.memory_space<vmem>>, vector<32x32xf32>
    tpu.vector_store %arg6[%c0_202, %c0_203], %418 {strides = array<i32>} : memref<32x32xf32, #tpu.memory_space<vmem>>, vector<32x32xf32>,
    return
  }
  func.func @transform_0(%arg0: i32) -> (i32, i32) {
    %c0_i32 = arith.constant 0 : i32
    %c0_i32_0 = arith.constant 0 : i32
    return %arg0, %c0_i32 : i32, i32
  }
  func.func @transform_1(%arg0: i32) -> (i32, i32) {
    %c0_i32 = arith.constant 0 : i32
    %c0_i32_0 = arith.constant 0 : i32
    %c0_i32_1 = arith.constant 0 : i32
    return %c0_i32, %c0_i32_0 : i32, i32
  }
  func.func @transform_2(%arg0: i32) -> (i32, i32) {
    %c0_i32 = arith.constant 0 : i32
    %c0_i32_0 = arith.constant 0 : i32
    %c0_i32_1 = arith.constant 0 : i32
    return %c0_i32, %c0_i32_0 : i32, i32
  }
  func.func @transform_3(%arg0: i32) -> (i32, i32, i32) {
    %c0_i32 = arith.constant 0 : i32
    %c0_i32_0 = arith.constant 0 : i32
    %c0_i32_1 = arith.constant 0 : i32
    %c0_i32_2 = arith.constant 0 : i32
    return %c0_i32, %c0_i32_0, %c0_i32_1 : i32, i32, i32
  }
  func.func @transform_4(%arg0: i32) -> (i32, i32) {
    %c0_i32 = arith.constant 0 : i32
    %c0_i32_0 = arith.constant 0 : i32
    %c0_i32_1 = arith.constant 0 : i32
    return %c0_i32, %c0_i32_0 : i32, i32
  }
  func.func @transform_5(%arg0: i32) -> (i32, i32) {
    %c0_i32 = arith.constant 0 : i32
    %c0_i32_0 = arith.constant 0 : i32
    return %arg0, %c0_i32 : i32, i32
  }
  func.func @transform_6(%arg0: i32) -> (i32, i32) {
    %c0_i32 = arith.constant 0 : i32
    %c0_i32_0 = arith.constant 0 : i32
    return %arg0, %c0_i32 : i32, i32
  }
}

</mosaic_0001>

<bundles_post_ra>
// kernel: _lambda_.1
= control target key start
LH: loop header
LB: loop body
LE: loop exit
PB: predicated region body
PF: predicated region fallthrough
CT: control target
= control target key end

     0   :  { %vm31_vm0 = vcmask 130048   ;;  %s5071_s0 = inlined_call_operand.vmem [shape: f32[32,16], index: 0, kind: input, shape index: {}]   ;;  %s5072_s1 = inlined_call_operand.vmem [shape: f32[32,32], index: 1, kind: input, shape index: {}]   ;;  %s5073_s2 = inlined_call_operand.vmem [shape: f32[16,32], index: 2, kind: input, shape index: {}]   ;;  %s5074_s3 = inlined_call_operand.vmem [shape: f32[2,160,128], index: 3, kind: input, shape index: {}]   ;;  %s5075_s4 = inlined_call_operand.vmem [shape: f32[24,128], index: 4, kind: input, shape index: {}]   ;;  %s5076_s5 = inlined_call_operand.hbm [shape: f32[32,32], index: 5, kind: output, shape index: {0}]   ;;  %s5077_s6 = inlined_call_operand.vmem [shape: f32[32,128], index: 6, kind: output, shape index: {1}]  }
   0x1   :  { %v28_v0 = vld [vmem:[%s5073_s2 + $0x8] sm:$0xff]  ;;  %v27_v1 = vld [vmem:[%s5073_s2] sm:$0xff]  ;;  %v84_v3 = vld [vmem:[%s5074_s3 + $0x18] sm:$0xff] }
   0x2   :  { %58 = vmatpush.msra.mxu0 %v28_v0  ;;  %v23_v2 = vld [vmem:[%s5071_s0] sm:$0xff]  ;;  %112 = vmatpush.msra.mxu1 %v84_v3 }
   0x4   :  { %59 = vmatpush.msra.mxu0 %v27_v1 }
   0x5   :  { %3136 = vmatmul.msk.f32.vlgmr.msra.gmra.mxu0 %vm31_vm0, %v23_v2 }
   0x6   :  { %12 = vsyncpa [#allocation4], 0  ;;  %v24_v4 = vld [vmem:[%s5071_s0 + $0x8] sm:$0xff]  ;;  %v83_v5 = vld [vmem:[%s5074_s3 + $0x10] sm:$0xff]  ;;  %vm87_vm1 = vcmask 261120   ;;  %s3599_s20 = smov 96  }
   0x7   :  { %113 = vmatpush.msra.mxu1 %v83_v5  ;;  %v82_v6 = vld [vmem:[%s5074_s3 + $0x8] sm:$0xff]  ;;  %v81_v7 = vld [vmem:[%s5074_s3] sm:$0xff]  ;;  %s3600_s21 = smov 64   ;;  %s3601_s22 = smov 88   ;;  %vm135_vm2 = vcmask 64512   ;;  %v25_v44 = vld [vmem:[%s5071_s0 + $0x10] sm:$0xff] }
   0x8   :  { %v3681_v8 = vld [vmem:[%s5075_s4] ss:$0 sm:$0xff]  ;;  %v74_v14 = vld [vmem:[%s5072_s1 + $0x8] sm:$0xff]  ;;  %v3702_v18 = vld [vmem:[%s5075_s4 + $0x1] ss:$0 sm:$0xff]  ;;  %s3602_s23 = smov 120  }
   0x9   :  { %114 = vmatpush.msra.mxu1 %v82_v6  ;;  %v73_v10 = vld [vmem:[%s5072_s1] sm:$0xff]  ;;  %s3603_s24 = smov 56   ;;  %s3604_s25 = smov 80   ;;  %v26_v45 = vld [vmem:[%s5071_s0 + $0x18] sm:$0xff]  ;;  %v75_v61 = vld [vmem:[%s5072_s1 + $0x10] sm:$0xff] }
   0xa   :  { %s3605_s26 = smov 104   ;;  %v76_v1 = vld [vmem:[%s5072_s1 + $0x18] sm:$0xff]  ;;  %s3606_s11 = smov 72  }
   0xb   :  { %115 = vmatpush.msra.mxu1 %v81_v7  ;;  %s3607_s12 = smov 112   ;;  %s3608_s15 = smov 48  }
   0xc   :  { %s3609_s16 = smov 40   ;;  %s3610_s17 = smov 8  }
   0xd   :  { %3137 = vmatmul.msk.f32.gmra.mxu0 %vm31_vm0, %v24_v4  ;;  %s3611_s29 = smov 16   ;;  %s3612_s30 = smov 24  }
   0xe   :  { %s3614_s13 = smov 32  }
  0x15   :  { %3138 = vmatmul.msk.f32.gmra.mxu0 %vm31_vm0, %v25_v44 }
  0x1d   :  { %3139 = vmatmul.msk.f32.gmra.mxu0 %vm31_vm0, %v26_v45 }
  0x82   :  { %v61_v9 = vpop.f32.mrf.mxu0 }
  0x83   :  { %v62_v11 = vadd.f32 %v3681_v8, %v61_v9 }
  0x85   :  { %v3687_v12 = vadd.f32 %v73_v10, %v62_v11 }
  0x87   :  { %3140 = vmatmul.msk.f32.vlgmr.msra.gmra.mxu1 %vm87_vm1, %v3687_v12 }
  0x8a   :  { %v64_v13 = vpop.f32.mrf.mxu0 }
  0x8b   :  { %v65_v15 = vadd.f32 %v3681_v8, %v64_v13 }
  0x8d   :  { %v3695_v16 = vadd.f32 %v74_v14, %v65_v15 }
  0x8f   :  { %3141 = vmatmul.msk.f32.gmra.mxu1 %vm87_vm1, %v3695_v16 }
  0x92   :  { %v67_v60 = vpop.f32.mrf.mxu0 }
  0x93   :  { %v68_v62 = vadd.f32 %v3681_v8, %v67_v60 }
  0x95   :  { %v3769_v63 = vadd.f32 %v75_v61, %v68_v62 }
  0x97   :  { %3142 = vmatmul.msk.f32.gmra.mxu1 %vm87_vm1, %v3769_v63 }
  0x9a   :  { %v70_v0 = vpop.f32.mrf.mxu0 }
  0x9b   :  { %v71_v2 = vadd.f32 %v3681_v8, %v70_v0 }
  0x9d   :  { %v3777_v3 = vadd.f32 %v76_v1, %v71_v2 }
  0x9f   :  { %3143 = vmatmul.msk.f32.gmra.mxu1 %vm87_vm1, %v3777_v3 }
 0x104   :  { %v117_v17 = vpop.f32.mrf.mxu1 }
 0x105   :  { %v3705_v20 = vadd.f32 %v3702_v18, %v117_v17 }
 0x10c   :  { %v120_v19 = vpop.f32.mrf.mxu1 }
 0x10d   :  { %v3708_v21 = vadd.f32 %v3702_v18, %v120_v19 }
 0x10f   :  { %133 = vrot.lane.b32.xlu0 %v3708_v21, %s3599_s20  ;;  %v3714_v22 = vpack.i.bf16 %v3705_v20, %v3708_v21 }
 0x111   :  { %3311 = vrot.lane.b32.xlu2 %v3714_v22, %s3600_s21 }
 0x114   :  { %v123_v14 = vpop.f32.mrf.mxu1 }
 0x115   :  { %v3800_v19 = vadd.f32 %v3702_v18, %v123_v14 }
 0x117   :  { %131 = vrot.lane.b32.xlu0 %v3705_v20, %s3599_s20 }
 0x119   :  { %260 = vrot.lane.b32.xlu2 %v3708_v21, %s3601_s22 }
 0x11c   :  { %v126_v15 = vpop.f32.mrf.mxu1 }
 0x11d   :  { %v3795_v17 = vadd.f32 %v3702_v18, %v126_v15 }
 0x11f   :  { %258 = vrot.lane.b32.xlu0 %v3705_v20, %s3601_s22 }
 0x121   :  { %256 = vrot.lane.b32.xlu2 %v3708_v21, %s3602_s23 }
 0x16b   :  { %v3312_v23 = vpop.permute.xlu2 %3311 }
 0x16c   :  { %v3313_v24 = vunpack.i.l.bf16 %v3312_v23  ;;  %v3314_v25 = vunpack.i.h.bf16 %v3312_v23 }
 0x16e   :  { %3288 = vmatpush.msra.mxu3 %v3313_v24 }
 0x170   :  { %3289 = vmatpush.msra.mxu3 %v3314_v25 }
 0x173   :  { %v261_v26 = vpop.permute.xlu2 %260 }
 0x174   :  { %3150 = vmatpush.xpose.msk.msrb.mxu3 %vm135_vm2, %v261_v26 }
 0x17b   :  { %v257_v59 = vpop.permute.xlu2 %256 }
 0x181   :  { %v134_v27 = vpop.permute.xlu0 %133 }
 0x182   :  { %3144 = vmatpush.xpose.msk.msra.mxu2 %vm135_vm2, %v134_v27 }
 0x189   :  { %v132_v28 = vpop.permute.xlu0 %131 }
 0x18a   :  { %3145 = vmatpush.xpose.msk.msra.mxu2 %vm135_vm2, %v132_v28 }
 0x18d   :  { %3146 = vmatmul.msk.f32.vlgmr.msra.gmra.mxu2 %vm135_vm2, %v3705_v20 }
 0x18e   :  { %243 = vmatpush.msrb.mxu2 %v3313_v24 }
 0x190   :  { %244 = vmatpush.msrb.mxu2 %v3314_v25 }
 0x191   :  { %v259_v29 = vpop.permute.xlu0 %258 }
 0x192   :  { %3151 = vmatpush.xpose.msk.msrb.mxu3 %vm135_vm2, %v259_v29 }
 0x195   :  { %3147 = vmatmul.msk.f32.gmra.mxu2 %vm135_vm2, %v3708_v21 }
 0x210   :  { %v3734_v30 = vpop.f32.mrf.mxu2 }
 0x211   :  { %v167_v31 = vsel %vm31_vm0, %v3734_v30, -inf }
 0x212   :  { %168 = vmax.xlane.f32.xlu0 %v167_v31 }
 0x218   :  { %v164_v32 = vpop.f32.mrf.mxu2 }
 0x219   :  { %v170_v33 = vsel %vm31_vm0, %v164_v32, -inf }
 0x21a   :  { %171 = vmax.xlane.f32.xlu1 %v170_v33 }
 0x226   :  { %3316 = vrot.lane.b32.xlu0 %v3714_v22, %s3603_s24 }
 0x22e   :  { %402 = vrot.lane.b32.xlu0 %v3708_v21, %s3604_s25 }
 0x236   :  { %538 = vrot.lane.b32.xlu0 %v3705_v20, %s3605_s26 }
 0x285   :  { %v169_v36 = vpop.xlane.xlu0 %168 }
 0x286   :  { %v173_v4 = vsub.f32 %v3734_v30, %v169_v36 }
 0x288   :  { %v175_v6 = vmul.f32 1.442695, %v173_v4 }
 0x28d   :  { %v172_v34 = vpop.xlane.xlu1 %171 }
 0x28e   :  { %v174_v35 = vsub.f32 %v164_v32, %v172_v34 }
 0x290   :  { %v177_v37 = vmul.f32 1.442695, %v174_v35 }
 0x292   :  { %3407 = vpow2.f32 %v177_v37 }
 0x298   :  { %v3408_v38 = vpop.eup %3407  ;;  %v3317_v39 = vpop.permute.xlu0 %3316 }
 0x299   :  { %v3318_v40 = vunpack.i.l.bf16 %v3317_v39  ;;  %v182_v41 = vsel %vm31_vm0, %v3408_v38, 0.0  ;;  %v3319_v42 = vunpack.i.h.bf16 %v3317_v39 }
 0x29a   :  { %183 = vadd.xlane.f32.xlu1 %v182_v41 }
 0x29b   :  { %376 = vmatpush.msra.mxu2 %v3318_v40 }
 0x29d   :  { %377 = vmatpush.msra.mxu2 %v3319_v42 }
 0x2a0   :  { %v403_v43 = vpop.permute.xlu0 %402 }
 0x2a1   :  { %3156 = vmatpush.xpose.msk.msrb.mxu0 %vm135_vm2, %v403_v43  ;;  %3290 = vmatpush.xpose.msk.msrb.mxu1 %vm135_vm2, %v403_v43 }
 0x2b3   :  { %254 = vrot.lane.b32.xlu1 %v3705_v20, %s3602_s23 }
 0x30d   :  { %v184_v46 = vpop.xlane.xlu1 %183 }
 0x30e   :  { %3409 = vrcp.f32 %v184_v46  ;;  %v211_v50 = vand.u32 2147483648, %v184_v46  ;;  %v209_v52 = vand.u32 2147483647, %v184_v46  ;;  %vm205_vm4 = vweird.f32 %v184_v46 }
 0x30f   :  { %3411 = vpow2.f32 %v175_v6 }
 0x310   :  { %v212_v54 = vor.u32 1.1754944e-38, %v211_v50  ;;  %vm210_vm6 = vcmp.eq.f32.partialorder %v209_v52, 8.507059e+37 }
 0x314   :  { %v3410_v47 = vpop.eup %3409 }
 0x315   :  { %v201_v48 = vmul.f32 %v3410_v47, %v184_v46  ;;  %vm206_vm3 = vweird.f32 %v3410_v47  ;;  %v3412_v10 = vpop.eup %3411 }
 0x316   :  { %vm207_vm5 = vmor %vm205_vm4, %vm206_vm3  ;;  %v179_v13 = vsel %vm31_vm0, %v3412_v10, 0.0 }
 0x317   :  { %v202_v49 = vsub.f32 1.0, %v201_v48 }
 0x319   :  { %v203_v51 = vmul.f32 %v3410_v47, %v202_v49 }
 0x31b   :  { %v204_v53 = vadd.f32 %v3410_v47, %v203_v51 }
 0x31d   :  { %v208_v55 = vsel %vm207_vm5, %v3410_v47, %v204_v53  ;;  %v539_v47 = vpop.permute.xlu0 %538 }
 0x31e   :  { %v213_v56 = vsel %vm210_vm6, %v212_v54, %v208_v55 }
 0x31f   :  { %v214_v57 = vmul.f32 %v3408_v38, %v213_v56 }
 0x321   :  { %3149 = vmatmul.msk.f32.vlgmr.msra.gmra.mxu3 %vm31_vm0, %v214_v57  ;;  %216 = vst.msk [vmem:[%s5077_s6 + $0x8] sm:$0xff] %vm31_vm0, %v214_v57 }
 0x325   :  { %v255_v58 = vpop.permute.xlu1 %254 }
 0x329   :  { %3152 = vmatmul.msk.f32.vlgmr.msrb.gmra.mxu3 %vm135_vm2, %v255_v58 }
 0x331   :  { %3153 = vmatmul.msk.f32.gmra.mxu3 %vm135_vm2, %v257_v59 }
 0x3a4   :  { %v249_v5 = vpop.f32.mrf.mxu3 }
 0x3a5   :  { %253 = vst.msk [vmem:[#allocation2 + $0x8] sm:$0xff] %vm135_vm2, %v249_v5 }
 0x3ac   :  { %v287_v7 = vpop.f32.mrf.mxu3 }
 0x3ad   :  { %v293_v9 = vsel %vm31_vm0, %v287_v7, -inf }
 0x3ae   :  { %294 = vmax.xlane.f32.xlu2 %v293_v9 }
 0x3b4   :  { %v290_v11 = vpop.f32.mrf.mxu3 }
 0x3b5   :  { %v296_v8 = vsel %vm31_vm0, %v290_v11, -inf }
 0x3b6   :  { %297 = vmax.xlane.f32.xlu1 %v296_v8  ;;  %180 = vadd.xlane.f32.xlu2 %v179_v13 }
 0x3ce   :  { %544 = vrot.lane.b32.xlu2 %v3708_v21, %s3606_s11 }
 0x3cf   :  { %542 = vrot.lane.b32.xlu1 %v3705_v20, %s3606_s11 }
 0x3d6   :  { %400 = vrot.lane.b32.xlu2 %v3705_v20, %s3604_s25 }
 0x3d7   :  { %396 = vrot.lane.b32.xlu1 %v3705_v20, %s3607_s12 }
 0x3df   :  { %684 = vrot.lane.b32.xlu1 %v3795_v17, %s3599_s20 }
 0x3e7   :  { %808 = vrot.lane.b32.xlu1 %v3800_v19, %s3601_s22 }
 0x3ef   :  { %950 = vrot.lane.b32.xlu1 %v3795_v17, %s3604_s25 }
 0x3f7   :  { %1088 = vrot.lane.b32.xlu1 %v3800_v19, %s3606_s11 }
 0x3ff   :  { %946 = vrot.lane.b32.xlu1 %v3795_v17, %s3607_s12 }
 0x421   :  { %v295_v20 = vpop.xlane.xlu2 %294 }
 0x422   :  { %v299_v23 = vsub.f32 %v287_v7, %v295_v20 }
 0x424   :  { %v301_v24 = vmul.f32 1.442695, %v299_v23 }
 0x426   :  { %3413 = vpow2.f32 %v301_v24 }
 0x429   :  { %v298_v25 = vpop.xlane.xlu1 %297  ;;  %v181_v26 = vpop.xlane.xlu2 %180 }
 0x42a   :  { %v300_v18 = vsub.f32 %v290_v11, %v298_v25  ;;  %3415 = vrcp.f32 %v181_v26  ;;  %v196_v35 = vand.u32 2147483648, %v181_v26  ;;  %v194_v38 = vand.u32 2147483647, %v181_v26 }
 0x42b   :  { %vm190_vm8 = vweird.f32 %v181_v26 }
 0x42c   :  { %v3810_v27 = vpop.eup %3413  ;;  %v303_v28 = vmul.f32 1.442695, %v300_v18  ;;  %v197_v40 = vor.u32 1.1754944e-38, %v196_v35  ;;  %vm195_vm10 = vcmp.eq.f32.partialorder %v194_v38, 8.507059e+37 }
 0x42d   :  { %v305_v29 = vsel %vm31_vm0, %v3810_v27, 0.0 }
 0x42e   :  { %3417 = vpow2.f32 %v303_v28  ;;  %306 = vadd.xlane.f32.xlu0 %v305_v29 }
 0x430   :  { %v3416_v30 = vpop.eup %3415 }
 0x431   :  { %v186_v31 = vmul.f32 %v3416_v30, %v181_v26  ;;  %v545_v32 = vpop.permute.xlu2 %544  ;;  %vm191_vm7 = vweird.f32 %v3416_v30 }
 0x432   :  { %vm192_vm9 = vmor %vm190_vm8, %vm191_vm7 }
 0x433   :  { %v187_v33 = vsub.f32 1.0, %v186_v31 }
 0x434   :  { %v3814_v34 = vpop.eup %3417 }
 0x435   :  { %v188_v36 = vmul.f32 %v3416_v30, %v187_v33  ;;  %v308_v37 = vsel %vm31_vm0, %v3814_v34, 0.0 }
 0x436   :  { %309 = vadd.xlane.f32.xlu2 %v308_v37 }
 0x437   :  { %v189_v39 = vadd.f32 %v3416_v30, %v188_v36 }
 0x439   :  { %v401_v41 = vpop.permute.xlu2 %400  ;;  %v193_v42 = vsel %vm192_vm9, %v3416_v30, %v189_v39 }
 0x43a   :  { %3157 = vmatpush.xpose.msk.msrb.mxu0 %vm135_vm2, %v401_v41  ;;  %3291 = vmatpush.xpose.msk.msrb.mxu1 %vm135_vm2, %v401_v41  ;;  %v198_v43 = vsel %vm195_vm10, %v197_v40, %v193_v42 }
 0x43b   :  { %v199_v44 = vmul.f32 %v3412_v10, %v198_v43 }
 0x43d   :  { %3148 = vmatmul.msk.f32.vlgmr.msrb.gmra.mxu2 %vm31_vm0, %v199_v44  ;;  %215 = vst.msk [vmem:[%s5077_s6] sm:$0xff] %vm31_vm0, %v199_v44 }
 0x43e   :  { %3162 = vmatpush.xpose.msk.msrb.mxu2 %vm135_vm2, %v545_v32 }
 0x441   :  { %v543_v45 = vpop.permute.xlu1 %542 }
 0x442   :  { %540 = vrot.lane.b32.xlu0 %v3708_v21, %s3605_s26  ;;  %3163 = vmatpush.xpose.msk.msrb.mxu2 %vm135_vm2, %v543_v45 }
 0x449   :  { %v397_v46 = vpop.permute.xlu1 %396 }
 0x44a   :  { %810 = vrot.lane.b32.xlu0 %v3795_v17, %s3601_s22  ;;  %3158 = vmatmul.msk.f32.vlgmr.msrb.gmra.mxu0 %vm135_vm2, %v397_v46 }
 0x44e   :  { %398 = vrot.lane.b32.xlu2 %v3708_v21, %s3607_s12 }
 0x451   :  { %v685_v21 = vpop.permute.xlu1 %684 }
 0x452   :  { %804 = vrot.lane.b32.xlu0 %v3800_v19, %s3602_s23  ;;  %3168 = vmatpush.xpose.msk.msra.mxu0 %vm135_vm2, %v685_v21 }
 0x456   :  { %682 = vrot.lane.b32.xlu2 %v3800_v19, %s3599_s20 }
 0x459   :  { %v809_v58 = vpop.permute.xlu1 %808 }
 0x45a   :  { %1090 = vrot.lane.b32.xlu0 %v3795_v17, %s3606_s11 }
 0x45e   :  { %806 = vrot.lane.b32.xlu2 %v3795_v17, %s3602_s23 }
 0x461   :  { %v951_v13 = vpop.permute.xlu1 %950 }
 0x462   :  { %944 = vrot.lane.b32.xlu0 %v3800_v19, %s3607_s12 }
 0x466   :  { %948 = vrot.lane.b32.xlu2 %v3800_v19, %s3604_s25 }
 0x469   :  { %v1089_v29 = vpop.permute.xlu1 %1088 }
 0x46a   :  { %1086 = vrot.lane.b32.xlu0 %v3795_v17, %s3605_s26 }
 0x46e   :  { %1084 = vrot.lane.b32.xlu2 %v3800_v19, %s3605_s26 }
 0x471   :  { %v947_v32 = vpop.permute.xlu1 %946 }
 0x4a1   :  { %v307_v48 = vpop.xlane.xlu0 %306 }
 0x4a2   :  { %3419 = vrcp.f32 %v307_v48  ;;  %v322_v53 = vand.u32 2147483648, %v307_v48  ;;  %v320_v55 = vand.u32 2147483647, %v307_v48  ;;  %vm316_vm12 = vweird.f32 %v307_v48 }
 0x4a4   :  { %v323_v59 = vor.u32 1.1754944e-38, %v322_v53  ;;  %vm321_vm14 = vcmp.eq.f32.partialorder %v320_v55, 8.507059e+37 }
 0x4a8   :  { %v3420_v49 = vpop.eup %3419 }
 0x4a9   :  { %v312_v50 = vmul.f32 %v3420_v49, %v307_v48  ;;  %v310_v51 = vpop.xlane.xlu2 %309  ;;  %vm317_vm11 = vweird.f32 %v3420_v49 }
 0x4aa   :  { %3421 = vrcp.f32 %v310_v51  ;;  %vm318_vm13 = vmor %vm316_vm12, %vm317_vm11  ;;  %v337_v5 = vand.u32 2147483648, %v310_v51  ;;  %v335_v7 = vand.u32 2147483647, %v310_v51  ;;  %vm331_vm3 = vweird.f32 %v310_v51 }
 0x4ab   :  { %v313_v52 = vsub.f32 1.0, %v312_v50 }
 0x4ac   :  { %v338_v10 = vor.u32 1.1754944e-38, %v337_v5  ;;  %vm336_vm5 = vcmp.eq.f32.partialorder %v335_v7, 8.507059e+37 }
 0x4ad   :  { %v314_v54 = vmul.f32 %v3420_v49, %v313_v52 }
 0x4af   :  { %v315_v56 = vadd.f32 %v3420_v49, %v314_v54 }
 0x4b0   :  { %v3422_v57 = vpop.eup %3421 }
 0x4b1   :  { %v319_v60 = vsel %vm318_vm13, %v3420_v49, %v315_v56  ;;  %v327_v61 = vmul.f32 %v3422_v57, %v310_v51  ;;  %v399_v62 = vpop.permute.xlu2 %398  ;;  %vm332_vm15 = vweird.f32 %v3422_v57 }
 0x4b2   :  { %3159 = vmatmul.msk.f32.vlgmr.msrb.gmra.mxu1 %vm135_vm2, %v399_v62  ;;  %v324_v0 = vsel %vm321_vm14, %v323_v59, %v319_v60  ;;  %vm333_vm4 = vmor %vm331_vm3, %vm332_vm15 }
 0x4b3   :  { %v328_v1 = vsub.f32 1.0, %v327_v61  ;;  %v3853_v2 = vmul.f32 %v3810_v27, %v324_v0 }
 0x4b4   :  { %v541_v4 = vpop.permute.xlu0 %540 }
 0x4b5   :  { %3154 = vmatmul.msk.f32.vlgmr.msra.gmra.mxu2 %vm31_vm0, %v3853_v2  ;;  %v329_v6 = vmul.f32 %v3422_v57, %v328_v1 }
 0x4b7   :  { %v330_v9 = vadd.f32 %v3422_v57, %v329_v6 }
 0x4b9   :  { %v683_v11 = vpop.permute.xlu2 %682  ;;  %v334_v8 = vsel %vm333_vm4, %v3422_v57, %v330_v9 }
 0x4ba   :  { %3169 = vmatpush.xpose.msk.msra.mxu0 %vm135_vm2, %v683_v11  ;;  %v339_v14 = vsel %vm336_vm5, %v338_v10, %v334_v8 }
 0x4bb   :  { %v3860_v15 = vmul.f32 %v3814_v34, %v339_v14 }
 0x4bc   :  { %v811_v20 = vpop.permute.xlu0 %810 }
 0x4bd   :  { %3155 = vmatmul.msk.f32.gmra.mxu2 %vm31_vm0, %v3860_v15  ;;  %3170 = vmatmul.msk.f32.vlgmr.msra.gmra.mxu0 %vm135_vm2, %v3800_v19 }
 0x4be   :  { %3180 = vmatpush.xpose.msk.msrb.mxu0 %vm135_vm2, %v951_v13  ;;  %3174 = vmatpush.xpose.msk.msra.mxu1 %vm135_vm2, %v811_v20 }
 0x4c0   :  { %v246_v23 = vpop.f32.mrf.mxu2 }
 0x4c1   :  { %252 = vst.msk [vmem:[#allocation2] sm:$0xff] %vm135_vm2, %v246_v23  ;;  %v807_v24 = vpop.permute.xlu2 %806 }
 0x4c2   :  { %3175 = vmatpush.xpose.msk.msra.mxu1 %vm135_vm2, %v809_v58 }
 0x4c4   :  { %v805_v25 = vpop.permute.xlu0 %804 }
 0x4c5   :  { %3164 = vmatmul.msk.f32.vlgmr.msrb.gmra.mxu2 %vm135_vm2, %v539_v47  ;;  %3171 = vmatmul.msk.f32.gmra.mxu0 %vm135_vm2, %v3795_v17 }
 0x4c6   :  { %3176 = vmatmul.msk.f32.vlgmr.msra.gmra.mxu1 %vm135_vm2, %v805_v25 }
 0x4c7   :  { %v429_v26 = vpop.f32.mrf.mxu0 }
 0x4c8   :  { %v435_v18 = vsel %vm31_vm0, %v429_v26, -inf }
 0x4c9   :  { %v949_v27 = vpop.permute.xlu2 %948  ;;  %436 = vmax.xlane.f32.xlu2 %v435_v18 }
 0x4ca   :  { %3181 = vmatpush.xpose.msk.msrb.mxu0 %vm135_vm2, %v949_v27 }
 0x4cc   :  { %v1091_v28 = vpop.permute.xlu0 %1090 }
 0x4cd   :  { %3165 = vmatmul.msk.f32.gmra.mxu2 %vm135_vm2, %v541_v4  ;;  %3186 = vmatpush.xpose.msk.msrb.mxu1 %vm135_vm2, %v1091_v28 }
 0x4ce   :  { %3177 = vmatmul.msk.f32.gmra.mxu1 %vm135_vm2, %v807_v24 }
 0x4d1   :  { %3187 = vmatpush.xpose.msk.msrb.mxu1 %vm135_vm2, %v1089_v29  ;;  %v1085_v31 = vpop.permute.xlu2 %1084 }
 0x4d4   :  { %v945_v30 = vpop.permute.xlu0 %944 }
 0x4d5   :  { %3182 = vmatmul.msk.f32.vlgmr.msrb.gmra.mxu0 %vm135_vm2, %v945_v30 }
 0x4d6   :  { %3188 = vmatmul.msk.f32.vlgmr.msrb.gmra.mxu1 %vm135_vm2, %v1085_v31 }
 0x4dc   :  { %v1087_v33 = vpop.permute.xlu0 %1086 }
 0x4dd   :  { %3183 = vmatmul.msk.f32.gmra.mxu0 %vm135_vm2, %v947_v32 }
 0x4de   :  { %3189 = vmatmul.msk.f32.gmra.mxu1 %vm135_vm2, %v1087_v33 }
 0x52f   :  { %v432_v34 = vpop.f32.mrf.mxu1 }
 0x530   :  { %v438_v35 = vsel %vm31_vm0, %v432_v34, -inf }
 0x531   :  { %439 = vmax.xlane.f32.xlu0 %v438_v35 }
 0x538   :  { %v379_v59 = vpop.f32.mrf.mxu2 }
 0x53a   :  { %v711_v36 = vpop.f32.mrf.mxu0 }
 0x53b   :  { %v717_v37 = vsel %vm31_vm0, %v711_v36, -inf }
 0x53c   :  { %718 = vmax.xlane.f32.xlu1 %v717_v37  ;;  %v437_v42 = vpop.xlane.xlu2 %436 }
 0x53d   :  { %v441_v43 = vsub.f32 %v429_v26, %v437_v42  ;;  %v3948_v42 = vpack.i.bf16 %v3800_v19, %v3795_v17 }
 0x53f   :  { %v443_v46 = vmul.f32 1.442695, %v441_v43 }
 0x540   :  { %v3909_v4 = vpop.f32.mrf.mxu2 }
 0x541   :  { %3423 = vpow2.f32 %v443_v46 }
 0x542   :  { %v714_v38 = vpop.f32.mrf.mxu0 }
 0x543   :  { %v837_v39 = vpop.f32.mrf.mxu1  ;;  %v720_v40 = vsel %vm31_vm0, %v714_v38, -inf }
 0x544   :  { %721 = vmax.xlane.f32.xlu2 %v720_v40  ;;  %v843_v41 = vsel %vm31_vm0, %v837_v39, -inf }
 0x545   :  { %844 = vmax.xlane.f32.xlu0 %v843_v41 }
 0x547   :  { %v3896_v50 = vpop.eup %3423 }
 0x548   :  { %v447_v54 = vsel %vm31_vm0, %v3896_v50, 0.0  ;;  %v3915_v14 = vpop.f32.mrf.mxu2 }
 0x549   :  { %v577_v25 = vsel %vm31_vm0, %v3915_v14, -inf }
 0x54b   :  { %v840_v44 = vpop.f32.mrf.mxu1 }
 0x54c   :  { %v846_v45 = vsel %vm31_vm0, %v840_v44, -inf }
 0x54d   :  { %847 = vmax.xlane.f32.xlu1 %v846_v45 }
 0x550   :  { %v3933_v32 = vpop.f32.mrf.mxu2 }
 0x551   :  { %v580_v33 = vsel %vm31_vm0, %v3933_v32, -inf }
 0x552   :  { %v3888_v21 = vpop.f32.mrf.mxu0 }
 0x553   :  { %v3890_v47 = vpop.f32.mrf.mxu1  ;;  %v983_v48 = vsel %vm31_vm0, %v3888_v21, -inf }
 0x554   :  { %v1123_v49 = vsel %vm31_vm0, %v3890_v47, -inf  ;;  %984 = vmax.xlane.f32.xlu0 %v983_v48 }
 0x555   :  { %1124 = vmax.xlane.f32.xlu2 %v1123_v49 }
 0x55a   :  { %v3898_v51 = vpop.f32.mrf.mxu0 }
 0x55b   :  { %v1120_v52 = vpop.f32.mrf.mxu1  ;;  %v986_v53 = vsel %vm31_vm0, %v3898_v51, -inf }
 0x55c   :  { %987 = vmax.xlane.f32.xlu1 %v986_v53  ;;  %v1126_v55 = vsel %vm31_vm0, %v1120_v52, -inf }
 0x55d   :  { %448 = vadd.xlane.f32.xlu2 %v447_v54  ;;  %1127 = vmax.xlane.f32.xlu0 %v1126_v55 }
 0x5a4   :  { %v440_v56 = vpop.xlane.xlu0 %439 }
 0x5a5   :  { %v442_v57 = vsub.f32 %v432_v34, %v440_v56 }
 0x5a7   :  { %v445_v58 = vmul.f32 1.442695, %v442_v57 }
 0x5a9   :  { %3425 = vpow2.f32 %v445_v58 }
 0x5af   :  { %v3905_v60 = vpop.eup %3425  ;;  %v719_v61 = vpop.xlane.xlu1 %718 }
 0x5b0   :  { %v723_v62 = vsub.f32 %v711_v36, %v719_v61  ;;  %v450_v0 = vsel %vm31_vm0, %v3905_v60, 0.0 }
 0x5b1   :  { %451 = vadd.xlane.f32.xlu0 %v450_v0 }
 0x5b2   :  { %v725_v1 = vmul.f32 1.442695, %v723_v62 }
 0x5b4   :  { %3427 = vpow2.f32 %v725_v1 }
 0x5b7   :  { %v722_v5 = vpop.xlane.xlu2 %721 }
 0x5b8   :  { %v845_v6 = vpop.xlane.xlu0 %844  ;;  %v724_v10 = vsub.f32 %v714_v38, %v722_v5 }
 0x5b9   :  { %v849_v7 = vsub.f32 %v837_v39, %v845_v6 }
 0x5ba   :  { %v3911_v9 = vpop.eup %3427  ;;  %v727_v13 = vmul.f32 1.442695, %v724_v10 }
 0x5bb   :  { %v851_v11 = vmul.f32 1.442695, %v849_v7  ;;  %v729_v8 = vsel %vm31_vm0, %v3911_v9, 0.0 }
 0x5bc   :  { %730 = vadd.xlane.f32.xlu1 %v729_v8 }
 0x5bd   :  { %3429 = vpow2.f32 %v851_v11 }
 0x5be   :  { %3431 = vpow2.f32 %v727_v13 }
 0x5c0   :  { %v848_v20 = vpop.xlane.xlu1 %847 }
 0x5c1   :  { %v850_v24 = vsub.f32 %v840_v44, %v848_v20 }
 0x5c3   :  { %v3917_v23 = vpop.eup %3429  ;;  %v853_v18 = vmul.f32 1.442695, %v850_v24 }
 0x5c4   :  { %v855_v26 = vsel %vm31_vm0, %v3917_v23, 0.0  ;;  %578 = vmax.xlane.f32.xlu1 %v577_v25  ;;  %v3925_v27 = vpop.eup %3431 }
 0x5c5   :  { %856 = vadd.xlane.f32.xlu2 %v855_v26  ;;  %3321 = vrot.lane.b32.xlu0 %v3714_v22, %s3608_s15  ;;  %3433 = vpow2.f32 %v853_v18  ;;  %v732_v28 = vsel %vm31_vm0, %v3925_v27, 0.0 }
 0x5c7   :  { %v985_v31 = vpop.xlane.xlu0 %984 }
 0x5c8   :  { %v989_v34 = vsub.f32 %v3888_v21, %v985_v31  ;;  %v1125_v43 = vpop.xlane.xlu2 %1124 }
 0x5c9   :  { %v1129_v7 = vsub.f32 %v3890_v47, %v1125_v43 }
 0x5ca   :  { %v991_v35 = vmul.f32 1.442695, %v989_v34 }
 0x5cb   :  { %v3929_v29 = vpop.eup %3433 }
 0x5cc   :  { %v858_v30 = vsel %vm31_vm0, %v3929_v29, 0.0  ;;  %3435 = vpow2.f32 %v991_v35 }
 0x5cd   :  { %733 = vadd.xlane.f32.xlu2 %v732_v28 }
 0x5cf   :  { %v3957_v21 = vpop.xlane.xlu1 %987 }
 0x5d0   :  { %v1128_v36 = vpop.xlane.xlu0 %1127  ;;  %v449_v44 = vpop.xlane.xlu2 %448 }
 0x5d1   :  { %v1130_v37 = vsub.f32 %v1120_v52, %v1128_v36  ;;  %v464_v54 = vand.u32 2147483648, %v449_v44  ;;  %vm458_vm7 = vweird.f32 %v449_v44  ;;  %v462_v56 = vand.u32 2147483647, %v449_v44 }
 0x5d2   :  { %v3940_v39 = vpop.eup %3435 }
 0x5d3   :  { %v1133_v38 = vmul.f32 1.442695, %v1130_v37  ;;  %v995_v40 = vsel %vm31_vm0, %v3940_v39, 0.0  ;;  %vm463_vm9 = vcmp.eq.f32.partialorder %v462_v56, 8.507059e+37 }
 0x5d5   :  { %859 = vadd.xlane.f32.xlu2 %v858_v30  ;;  %3437 = vpow2.f32 %v1133_v38 }
 0x5d6   :  { %3439 = vrcp.f32 %v449_v44 }
 0x5db   :  { %v3944_v41 = vpop.eup %3437 }
 0x5dc   :  { %v3440_v45 = vpop.eup %3439 }
 0x5dd   :  { %581 = vmax.xlane.f32.xlu2 %v580_v33  ;;  %3326 = vrot.lane.b32.xlu1 %v3714_v22, %s3609_s16  ;;  %v1138_v22 = vsel %vm31_vm0, %v3944_v41, 0.0  ;;  %v454_v46 = vmul.f32 %v3440_v45, %v449_v44  ;;  %vm459_vm6 = vweird.f32 %v3440_v45  ;;  %v1131_v33 = vmul.f32 1.442695, %v1129_v7 }
 0x5de   :  { %vm460_vm8 = vmor %vm458_vm7, %vm459_vm6 }
 0x5df   :  { %v455_v19 = vsub.f32 1.0, %v454_v46 }
 0x5e1   :  { %v456_v48 = vmul.f32 %v3440_v45, %v455_v19 }
 0x5e3   :  { %v457_v53 = vadd.f32 %v3440_v45, %v456_v48 }
 0x5e5   :  { %v461_v58 = vsel %vm460_vm8, %v3440_v45, %v457_v53 }
 0x5ef   :  { %996 = vadd.xlane.f32.xlu0 %v995_v40 }
 0x5f5   :  { %3331 = vrot.lane.b32.xlu2 %v3948_v42, %s3600_s21 }
 0x5f7   :  { %1139 = vadd.xlane.f32.xlu0 %v1138_v22 }
 0x60b   :  { %3341 = vrot.lane.b32.xlu0 %v3948_v42, %s3608_s15 }
 0x613   :  { %387 = vrot.lane.b32.xlu0 %v379_v59, %s3610_s17  ;;  %v465_v59 = vor.u32 1.1754944e-38, %v464_v54 }
 0x615   :  { %v466_v61 = vsel %vm463_vm9, %v465_v59, %v461_v58 }
 0x616   :  { %v3964_v13 = vmul.f32 %v3896_v50, %v466_v61 }
 0x624   :  { %v452_v17 = vpop.xlane.xlu0 %451 }
 0x625   :  { %3441 = vrcp.f32 %v452_v17  ;;  %vm473_vm10 = vweird.f32 %v452_v17  ;;  %v479_v28 = vand.u32 2147483648, %v452_v17  ;;  %v477_v31 = vand.u32 2147483647, %v452_v17 }
 0x627   :  { %v480_v35 = vor.u32 1.1754944e-38, %v479_v28  ;;  %vm478_vm4 = vcmp.eq.f32.partialorder %v477_v31, 8.507059e+37 }
 0x62b   :  { %v3442_v49 = vpop.eup %3441 }
 0x62c   :  { %v469_v52 = vmul.f32 %v3442_v49, %v452_v17  ;;  %vm474_vm11 = vweird.f32 %v3442_v49 }
 0x62d   :  { %vm475_vm13 = vmor %vm473_vm10, %vm474_vm11 }
 0x62e   :  { %v470_v57 = vsub.f32 1.0, %v469_v52 }
 0x62f   :  { %v731_v55 = vpop.xlane.xlu1 %730 }
 0x630   :  { %3443 = vrcp.f32 %v731_v55  ;;  %v471_v62 = vmul.f32 %v3442_v49, %v470_v57  ;;  %v746_v25 = vand.u32 2147483648, %v731_v55  ;;  %v744_v47 = vand.u32 2147483647, %v731_v55 }
 0x631   :  { %vm740_vm14 = vweird.f32 %v731_v55 }
 0x632   :  { %v472_v24 = vadd.f32 %v3442_v49, %v471_v62  ;;  %v747_v34 = vor.u32 1.1754944e-38, %v746_v25  ;;  %vm745_vm3 = vcmp.eq.f32.partialorder %v744_v47, 8.507059e+37 }
 0x634   :  { %v476_v50 = vsel %vm475_vm13, %v3442_v49, %v472_v24  ;;  %vm393_vm13 = vcmask 130112  }
 0x635   :  { %v481_v38 = vsel %vm478_vm4, %v480_v35, %v476_v50 }
 0x636   :  { %v3444_v0 = vpop.eup %3443  ;;  %v3974_v45 = vmul.f32 %v3905_v60, %v481_v38 }
 0x637   :  { %v736_v1 = vmul.f32 %v3444_v0, %v731_v55  ;;  %v3322_v5 = vpop.permute.xlu0 %3321  ;;  %v579_v6 = vpop.xlane.xlu1 %578  ;;  %vm741_vm12 = vweird.f32 %v3444_v0 }
 0x638   :  { %v3960_v10 = vpop.xlane.xlu2 %856  ;;  %v3323_v11 = vunpack.i.l.bf16 %v3322_v5  ;;  %v583_v8 = vsub.f32 %v3915_v14, %v579_v6  ;;  %v3324_v26 = vunpack.i.h.bf16 %v3322_v5  ;;  %vm742_vm15 = vmor %vm740_vm14, %vm741_vm12 }
 0x639   :  { %v737_v20 = vsub.f32 1.0, %v736_v1 }
 0x63a   :  { %v585_v18 = vmul.f32 1.442695, %v583_v8  ;;  %518 = vmatpush.msra.mxu3 %v3323_v11 }
 0x63b   :  { %v738_v30 = vmul.f32 %v3444_v0, %v737_v20 }
 0x63c   :  { %3445 = vpow2.f32 %v585_v18  ;;  %519 = vmatpush.msra.mxu3 %v3324_v26 }
 0x63d   :  { %v739_v14 = vadd.f32 %v3444_v0, %v738_v30  ;;  %3160 = vmatmul.msk.f32.vlgmr.msra.gmra.mxu3 %vm31_vm0, %v3964_v13 }
 0x63f   :  { %v743_v36 = vsel %vm742_vm15, %v3444_v0, %v739_v14 }
 0x640   :  { %v734_v37 = vpop.xlane.xlu2 %733  ;;  %v748_v40 = vsel %vm745_vm3, %v747_v34, %v743_v36 }
 0x641   :  { %3447 = vrcp.f32 %v734_v37  ;;  %v749_v22 = vmul.f32 %v3911_v9, %v748_v40  ;;  %v761_v49 = vand.u32 2147483648, %v734_v37  ;;  %v759_v53 = vand.u32 2147483647, %v734_v37 }
 0x642   :  { %v3969_v43 = vpop.eup %3445  ;;  %3449 = vpow2.f32 %v1131_v33  ;;  %vm755_vm6 = vweird.f32 %v734_v37 }
 0x643   :  { %v589_v44 = vsel %vm31_vm0, %v3969_v43, 0.0  ;;  %765 = vst.msk [vmem:[%s5077_s6 + $0x10] sm:$0xff] %vm31_vm0, %v749_v22  ;;  %v762_v56 = vor.u32 1.1754944e-38, %v761_v49  ;;  %vm760_vm8 = vcmp.eq.f32.partialorder %v759_v53, 8.507059e+37 }
 0x644   :  { %590 = vadd.xlane.f32.xlu1 %v589_v44 }
 0x645   :  { %3161 = vmatmul.msk.f32.gmra.mxu3 %vm31_vm0, %v3974_v45 }
 0x647   :  { %v3448_v46 = vpop.eup %3447 }
 0x648   :  { %v3982_v9 = vpop.eup %3449  ;;  %v751_v17 = vmul.f32 %v3448_v46, %v734_v37  ;;  %v3984_v19 = vpop.xlane.xlu2 %859  ;;  %vm756_vm5 = vweird.f32 %v3448_v46  ;;  %v990_v37 = vsub.f32 %v3898_v51, %v3957_v21 }
 0x649   :  { %v1135_v60 = vsel %vm31_vm0, %v3982_v9, 0.0  ;;  %vm757_vm7 = vmor %vm755_vm6, %vm756_vm5 }
 0x64a   :  { %v752_v48 = vsub.f32 1.0, %v751_v17  ;;  %v993_v38 = vmul.f32 1.442695, %v990_v37  ;;  %v870_v37 = vand.u32 2147483647, %v3960_v10 }
 0x64c   :  { %1136 = vadd.xlane.f32.xlu1 %v1135_v60  ;;  %v753_v52 = vmul.f32 %v3448_v46, %v752_v48 }
 0x64e   :  { %v754_v54 = vadd.f32 %v3448_v46, %v753_v52 }
 0x64f   :  { %v3327_v55 = vpop.permute.xlu1 %3326 }
 0x650   :  { %v3328_v57 = vunpack.i.l.bf16 %v3327_v55  ;;  %v582_v58 = vpop.xlane.xlu2 %581  ;;  %v758_v59 = vsel %vm757_vm7, %v3448_v46, %v754_v54  ;;  %v3329_v0 = vunpack.i.h.bf16 %v3327_v55 }
 0x651   :  { %v584_v61 = vsub.f32 %v3933_v32, %v582_v58  ;;  %v763_v62 = vsel %vm760_vm8, %v762_v56, %v758_v59 }
 0x652   :  { %660 = vmatpush.msra.mxu2 %v3328_v57  ;;  %v764_v1 = vmul.f32 %v3925_v27, %v763_v62 }
 0x653   :  { %v587_v5 = vmul.f32 1.442695, %v584_v61 }
 0x654   :  { %661 = vmatpush.msra.mxu2 %v3329_v0  ;;  %766 = vst.msk [vmem:[%s5077_s6 + $0x18] sm:$0xff] %vm31_vm0, %v764_v1 }
 0x655   :  { %3451 = vpow2.f32 %v587_v5 }
 0x658   :  { %v3332_v6 = vpop.permute.xlu2 %3331 }
 0x659   :  { %v3333_v7 = vunpack.i.l.bf16 %v3332_v6  ;;  %v3334_v8 = vunpack.i.h.bf16 %v3332_v6 }
 0x65b   :  { %v3994_v11 = vpop.eup %3451  ;;  %793 = vmatpush.msrb.mxu3 %v3333_v7 }
 0x65c   :  { %v592_v32 = vsel %vm31_vm0, %v3994_v11, 0.0 }
 0x65d   :  { %593 = vadd.xlane.f32.xlu2 %v592_v32  ;;  %794 = vmatpush.msrb.mxu3 %v3334_v8 }
 0x65e   :  { %3172 = vmatmul.msk.f32.vlgmr.msrb.gmra.mxu3 %vm31_vm0, %v749_v22 }
 0x662   :  { %v997_v27 = vpop.xlane.xlu0 %996 }
 0x663   :  { %3453 = vrcp.f32 %v997_v27  ;;  %v1012_v30 = vand.u32 2147483648, %v997_v27  ;;  %vm1006_vm10 = vweird.f32 %v997_v27  ;;  %v1010_v47 = vand.u32 2147483647, %v997_v27 }
 0x664   :  { %3455 = vpow2.f32 %v993_v38 }
 0x665   :  { %3346 = vrot.lane.b32.xlu1 %v3948_v42, %s3609_s16  ;;  %v1013_v14 = vor.u32 1.1754944e-38, %v1012_v30  ;;  %vm1011_vm12 = vcmp.eq.f32.partialorder %v1010_v47, 8.507059e+37 }
 0x666   :  { %3173 = vmatmul.msk.f32.gmra.mxu3 %vm31_vm0, %v764_v1 }
 0x669   :  { %v3454_v20 = vpop.eup %3453 }
 0x66a   :  { %v1002_v24 = vmul.f32 %v3454_v20, %v997_v27  ;;  %v4002_v18 = vpop.xlane.xlu0 %1139  ;;  %vm1007_vm9 = vweird.f32 %v3454_v20  ;;  %v4014_v40 = vpop.eup %3455 }
 0x66b   :  { %vm1008_vm11 = vmor %vm1006_vm10, %vm1007_vm9  ;;  %v998_v22 = vsel %vm31_vm0, %v4014_v40, 0.0  ;;  %vm866_vm10 = vweird.f32 %v3960_v10 }
 0x66c   :  { %v1003_v25 = vsub.f32 1.0, %v1002_v24 }
 0x66e   :  { %v1004_v26 = vmul.f32 %v3454_v20, %v1003_v25 }
 0x670   :  { %v1005_v28 = vadd.f32 %v3454_v20, %v1004_v26 }
 0x672   :  { %v1009_v31 = vsel %vm1008_vm11, %v3454_v20, %v1005_v28 }
 0x673   :  { %v1014_v34 = vsel %vm1011_vm12, %v1013_v14, %v1009_v31  ;;  %vm871_vm12 = vcmp.eq.f32.partialorder %v870_v37, 8.507059e+37 }
 0x674   :  { %v4007_v36 = vmul.f32 %v3940_v39, %v1014_v34  ;;  %v872_v34 = vand.u32 2147483648, %v3960_v10 }
 0x675   :  { %3336 = vrot.lane.b32.xlu2 %v3948_v42, %s3603_s24 }
 0x67d   :  { %v3342_v50 = vpop.permute.xlu0 %3341 }
 0x67e   :  { %v3343_v33 = vunpack.i.l.bf16 %v3342_v50  ;;  %v3344_v35 = vunpack.i.h.bf16 %v3342_v50 }
 0x680   :  { %1065 = vmatpush.msra.mxu3 %v3343_v33 }
 0x682   :  { %1066 = vmatpush.msra.mxu3 %v3344_v35 }
 0x683   :  { %3184 = vmatmul.msk.f32.vlgmr.msra.gmra.mxu3 %vm31_vm0, %v4007_v36 }
 0x685   :  { %v388_v42 = vpop.permute.xlu0 %387 }
 0x686   :  { %394 = vst.msk [vmem:[#allocation2] sm:$0xff] %vm393_vm13, %v388_v42 }
 0x69e   :  { %999 = vadd.xlane.f32.xlu2 %v998_v22 }
 0x6b6   :  { %389 = vrot.lane.b32.xlu2 %v3909_v4, %s3610_s17 }
 0x6b7   :  { %v591_v39 = vpop.xlane.xlu1 %590 }
 0x6b8   :  { %3457 = vrcp.f32 %v591_v39  ;;  %v606_v51 = vand.u32 2147483648, %v591_v39  ;;  %v604_v60 = vand.u32 2147483647, %v591_v39  ;;  %vm600_vm15 = vweird.f32 %v591_v39 }
 0x6b9   :  { %3459 = vrcp.f32 %v3960_v10 }
 0x6ba   :  { %v607_v52 = vor.u32 1.1754944e-38, %v606_v51  ;;  %vm605_vm4 = vcmp.eq.f32.partialorder %v604_v60, 8.507059e+37 }
 0x6be   :  { %v3458_v44 = vpop.eup %3457 }
 0x6bf   :  { %v596_v46 = vmul.f32 %v3458_v44, %v591_v39  ;;  %vm601_vm14 = vweird.f32 %v3458_v44  ;;  %v3460_v56 = vpop.eup %3459  ;;  %v4028_v58 = vpop.xlane.xlu1 %1136 }
 0x6c0   :  { %v521_v17 = vpop.f32.mrf.mxu3  ;;  %vm602_vm3 = vmor %vm600_vm15, %vm601_vm14  ;;  %v862_v59 = vmul.f32 %v3460_v56, %v3960_v10  ;;  %vm867_vm7 = vweird.f32 %v3460_v56  ;;  %vm881_vm15 = vweird.f32 %v3984_v19 }
 0x6c1   :  { %v597_v48 = vsub.f32 1.0, %v596_v46  ;;  %529 = vrot.lane.b32.xlu0 %v521_v17, %s3611_s29  ;;  %vm868_vm11 = vmor %vm866_vm10, %vm867_vm7  ;;  %v873_v46 = vor.u32 1.1754944e-38, %v872_v34  ;;  %vm1161_vm10 = vweird.f32 %v4002_v18 }
 0x6c2   :  { %v863_v61 = vsub.f32 1.0, %v862_v59 }
 0x6c3   :  { %v598_v21 = vmul.f32 %v3458_v44, %v597_v48 }
 0x6c4   :  { %v864_v7 = vmul.f32 %v3460_v56, %v863_v61 }
 0x6c5   :  { %v599_v49 = vadd.f32 %v3458_v44, %v598_v21  ;;  %v887_v21 = vand.u32 2147483648, %v3984_v19 }
 0x6c6   :  { %v865_v31 = vadd.f32 %v3460_v56, %v864_v7 }
 0x6c7   :  { %v603_v53 = vsel %vm602_vm3, %v3458_v44, %v599_v49  ;;  %v885_v49 = vand.u32 2147483647, %v3984_v19 }
 0x6c8   :  { %v608_v4 = vsel %vm605_vm4, %v607_v52, %v603_v53  ;;  %v524_v54 = vpop.f32.mrf.mxu3  ;;  %v869_v22 = vsel %vm868_vm11, %v3460_v56, %v865_v31 }
 0x6c9   :  { %531 = vrot.lane.b32.xlu0 %v524_v54, %s3611_s29  ;;  %v4024_v55 = vmul.f32 %v3969_v43, %v608_v4  ;;  %v874_v10 = vsel %vm871_vm12, %v873_v46, %v869_v22  ;;  %v888_v54 = vor.u32 1.1754944e-38, %v887_v21  ;;  %vm886_vm4 = vcmp.eq.f32.partialorder %v885_v49, 8.507059e+37  ;;  %v1231_v46 = vld [vmem:[%s5074_s3 + $0x38] sm:$0xff] }
 0x6ca   :  { %v4055_v60 = vmul.f32 %v3917_v23, %v874_v10  ;;  %v1152_v23 = vand.u32 2147483648, %v4028_v58  ;;  %v1230_v10 = vld [vmem:[%s5074_s3 + $0x30] sm:$0xff]  ;;  %1258 = vmatpush.msra.mxu0 %v1231_v46 }
 0x6cb   :  { %3166 = vmatmul.msk.f32.vlgmr.msra.gmra.mxu2 %vm31_vm0, %v4024_v55 }
 0x6cc   :  { %1259 = vmatpush.msra.mxu0 %v1230_v10 }
 0x6d0   :  { %v594_v57 = vpop.xlane.xlu2 %593 }
 0x6d1   :  { %3461 = vrcp.f32 %v594_v57  ;;  %v621_v20 = vand.u32 2147483648, %v594_v57  ;;  %v619_v26 = vand.u32 2147483647, %v594_v57  ;;  %vm615_vm6 = vweird.f32 %v594_v57 }
 0x6d2   :  { %3463 = vrcp.f32 %v3984_v19 }
 0x6d3   :  { %3465 = vrcp.f32 %v4028_v58  ;;  %v622_v47 = vor.u32 1.1754944e-38, %v621_v20  ;;  %vm620_vm9 = vcmp.eq.f32.partialorder %v619_v26, 8.507059e+37 }
 0x6d4   :  { %3467 = vrcp.f32 %v4002_v18 }
 0x6d7   :  { %v3462_v62 = vpop.eup %3461  ;;  %v3347_v43 = vpop.permute.xlu1 %3346 }
 0x6d8   :  { %v4032_v0 = vpop.eup %3463  ;;  %v611_v1 = vmul.f32 %v3462_v62, %v594_v57  ;;  %v3337_v5 = vpop.permute.xlu2 %3336  ;;  %v3348_v24 = vunpack.i.l.bf16 %v3347_v43  ;;  %vm616_vm5 = vweird.f32 %v3462_v62  ;;  %v3349_v28 = vunpack.i.h.bf16 %v3347_v43 }
 0x6d9   :  { %v3338_v6 = vunpack.i.l.bf16 %v3337_v5  ;;  %v877_v32 = vmul.f32 %v4032_v0, %v3984_v19  ;;  %v3339_v27 = vunpack.i.h.bf16 %v3337_v5  ;;  %vm617_vm8 = vmor %vm615_vm6, %vm616_vm5  ;;  %v3466_v33 = vpop.eup %3465  ;;  %vm882_vm14 = vweird.f32 %v4032_v0 }
 0x6da   :  { %v612_v8 = vsub.f32 1.0, %v611_v1  ;;  %v1142_v39 = vmul.f32 %v3466_v33, %v4028_v58  ;;  %vm883_vm3 = vmor %vm881_vm15, %vm882_vm14  ;;  %vm1147_vm5 = vweird.f32 %v3466_v33  ;;  %vm1146_vm6 = vweird.f32 %v4028_v58 }
 0x6db   :  { %925 = vmatpush.msrb.mxu2 %v3338_v6  ;;  %v878_v14 = vsub.f32 1.0, %v877_v32  ;;  %v1150_v19 = vand.u32 2147483647, %v4028_v58  ;;  %vm1148_vm7 = vmor %vm1146_vm6, %vm1147_vm5  ;;  %v1153_v1 = vor.u32 1.1754944e-38, %v1152_v23  ;;  %v1167_v6 = vand.u32 2147483648, %v4002_v18 }
 0x6dc   :  { %v613_v25 = vmul.f32 %v3462_v62, %v612_v8  ;;  %v1143_v17 = vsub.f32 1.0, %v1142_v39  ;;  %vm535_vm5 = vcmask 195712   ;;  %vm677_vm6 = vcmask 261312  }
 0x6dd   :  { %926 = vmatpush.msrb.mxu2 %v3339_v27  ;;  %v879_v44 = vmul.f32 %v4032_v0, %v878_v14  ;;  %v1168_v8 = vor.u32 1.1754944e-38, %v1167_v6 }
 0x6de   :  { %v614_v30 = vadd.f32 %v3462_v62, %v613_v25  ;;  %v1144_v53 = vmul.f32 %v3466_v33, %v1143_v17  ;;  %v1229_v17 = vld [vmem:[%s5074_s3 + $0x28] sm:$0xff] }
 0x6df   :  { %1205 = vmatpush.msra.mxu2 %v3348_v24  ;;  %v880_v48 = vadd.f32 %v4032_v0, %v879_v44  ;;  %1260 = vmatpush.msra.mxu0 %v1229_v17 }
 0x6e0   :  { %v618_v50 = vsel %vm617_vm8, %v3462_v62, %v614_v30  ;;  %v1145_v59 = vadd.f32 %v3466_v33, %v1144_v53  ;;  %vm1151_vm8 = vcmp.eq.f32.partialorder %v1150_v19, 8.507059e+37 }
 0x6e1   :  { %1206 = vmatpush.msra.mxu2 %v3349_v28  ;;  %v796_v35 = vpop.f32.mrf.mxu3  ;;  %v623_v42 = vsel %vm620_vm9, %v622_v47, %v618_v50  ;;  %v884_v4 = vsel %vm883_vm3, %v4032_v0, %v880_v48  ;;  %v1228_v48 = vld [vmem:[%s5074_s3 + $0x20] sm:$0xff] }
 0x6e2   :  { %802 = vst.msk [vmem:[#allocation2 + $0x10] sm:$0xff] %vm135_vm2, %v796_v35  ;;  %v4042_v38 = vmul.f32 %v3994_v11, %v623_v42  ;;  %v3468_v11 = vpop.eup %3467  ;;  %v889_v56 = vsel %vm886_vm4, %v888_v54, %v884_v4  ;;  %v1149_v62 = vsel %vm1148_vm7, %v3466_v33, %v1145_v59  ;;  %1261 = vmatpush.msra.mxu0 %v1228_v48 }
 0x6e3   :  { %v1157_v52 = vmul.f32 %v3468_v11, %v4002_v18  ;;  %v4067_v61 = vmul.f32 %v3929_v29, %v889_v56  ;;  %v1154_v5 = vsel %vm1151_vm8, %v1153_v1, %v1149_v62  ;;  %vm1162_vm9 = vweird.f32 %v3468_v11  ;;  %v3392_v62 = vld [vmem:[%s5075_s4 + $0x2] ss:$0 sm:$0xff] }
 0x6e4   :  { %3167 = vmatmul.msk.f32.gmra.mxu2 %vm31_vm0, %v4042_v38  ;;  %v4073_v7 = vmul.f32 %v3982_v9, %v1154_v5  ;;  %v1165_v29 = vand.u32 2147483647, %v4002_v18  ;;  %vm1163_vm11 = vmor %vm1161_vm10, %vm1162_vm9 }
 0x6e5   :  { %v1158_v57 = vsub.f32 1.0, %v1157_v52 }
 0x6e6   :  { %vm1166_vm12 = vcmp.eq.f32.partialorder %v1165_v29, 8.507059e+37 }
 0x6e7   :  { %v1159_v0 = vmul.f32 %v3468_v11, %v1158_v57 }
 0x6e9   :  { %v799_v51 = vpop.f32.mrf.mxu3  ;;  %v1160_v43 = vadd.f32 %v3468_v11, %v1159_v0 }
 0x6ea   :  { %803 = vst.msk [vmem:[#allocation2 + $0x18] sm:$0xff] %vm135_vm2, %v799_v51 }
 0x6eb   :  { %v1164_v58 = vsel %vm1163_vm11, %v3468_v11, %v1160_v43 }
 0x6ec   :  { %3178 = vmatmul.msk.f32.vlgmr.msrb.gmra.mxu2 %vm31_vm0, %v4055_v60  ;;  %v1169_v32 = vsel %vm1166_vm12, %v1168_v8, %v1164_v58 }
 0x6ed   :  { %v4080_v27 = vmul.f32 %v3944_v41, %v1169_v32 }
 0x6f4   :  { %3179 = vmatmul.msk.f32.gmra.mxu2 %vm31_vm0, %v4067_v61 }
 0x6fc   :  { %3190 = vmatmul.msk.f32.vlgmr.msra.gmra.mxu2 %vm31_vm0, %v4073_v7 }
 0x704   :  { %3191 = vmatmul.msk.f32.gmra.mxu2 %vm31_vm0, %v4080_v27 }
 0x706   :  { %v1068_v37 = vpop.f32.mrf.mxu3 }
 0x711   :  { %v1000_v9 = vpop.xlane.xlu2 %999 }
 0x712   :  { %3469 = vrcp.f32 %v1000_v9  ;;  %v1027_v26 = vand.u32 2147483648, %v1000_v9  ;;  %v1025_v30 = vand.u32 2147483647, %v1000_v9  ;;  %vm1021_vm15 = vweird.f32 %v1000_v9 }
 0x714   :  { %v1028_v41 = vor.u32 1.1754944e-38, %v1027_v26  ;;  %vm1026_vm4 = vcmp.eq.f32.partialorder %v1025_v30, 8.507059e+37 }
 0x718   :  { %v3470_v20 = vpop.eup %3469 }
 0x719   :  { %v1017_v24 = vmul.f32 %v3470_v20, %v1000_v9  ;;  %v390_v25 = vpop.permute.xlu2 %389  ;;  %vm1022_vm14 = vweird.f32 %v3470_v20 }
 0x71a   :  { %395 = vst.msk [vmem:[#allocation2 + $0x8] sm:$0xff] %vm393_vm13, %v390_v25  ;;  %vm1023_vm3 = vmor %vm1021_vm15, %vm1022_vm14 }
 0x71b   :  { %v1018_v18 = vsub.f32 1.0, %v1017_v24 }
 0x71d   :  { %v1019_v28 = vmul.f32 %v3470_v20, %v1018_v18 }
 0x71f   :  { %v1020_v47 = vadd.f32 %v3470_v20, %v1019_v28  ;;  %v3613_v28 = vmov 32.0  }
 0x720   :  { %3471 = vrcp.f32 %v3613_v28 }
 0x721   :  { %v1024_v31 = vsel %vm1023_vm3, %v3470_v20, %v1020_v47 }
 0x722   :  { %v1029_v14 = vsel %vm1026_vm4, %v1028_v41, %v1024_v31 }
 0x723   :  { %v4086_v50 = vmul.f32 %v4014_v40, %v1029_v14 }
 0x725   :  { %3185 = vmatmul.msk.f32.gmra.mxu3 %vm31_vm0, %v4086_v50 }
 0x733   :  { %v530_v33 = vpop.permute.xlu0 %529 }
 0x734   :  { %536 = vst.msk [vmem:[#allocation2] sm:$0xff] %vm535_vm5, %v530_v33 }
 0x73b   :  { %v532_v34 = vpop.permute.xlu0 %531 }
 0x73c   :  { %537 = vst.msk [vmem:[#allocation2 + $0x8] sm:$0xff] %vm535_vm5, %v532_v34 }
 0x74e   :  { %v663_v35 = vpop.f32.mrf.mxu2 }
 0x74f   :  { %671 = vrot.lane.b32.xlu1 %v663_v35, %s3612_s30 }
 0x767   :  { %v666_v42 = vpop.f32.mrf.mxu2 }
 0x768   :  { %673 = vrot.lane.b32.xlu1 %v666_v42, %s3612_s30 }
 0x76f   :  { %v928_v40 = vpop.f32.mrf.mxu2 }
 0x770   :  { %936 = vrot.lane.b32.xlu0 %v928_v40, %s3610_s17  ;;  %1076 = vrot.lane.b32.xlu1 %v1068_v37, %s3611_s29 }
 0x777   :  { %v931_v22 = vpop.f32.mrf.mxu2 }
 0x778   :  { %938 = vrot.lane.b32.xlu1 %v931_v22, %s3610_s17 }
 0x77f   :  { %v1208_v39 = vpop.f32.mrf.mxu2 }
 0x780   :  { %1216 = vrot.lane.b32.xlu0 %v1208_v39, %s3612_s30 }
 0x787   :  { %v1211_v44 = vpop.f32.mrf.mxu2 }
 0x788   :  { %1218 = vrot.lane.b32.xlu0 %v1211_v44, %s3612_s30 }
 0x7a8   :  { %v1071_v11 = vpop.f32.mrf.mxu3 }
 0x7a9   :  { %1078 = vrot.lane.b32.xlu2 %v1071_v11, %s3611_s29 }
 0x7c1   :  { %v672_v51 = vpop.permute.xlu1 %671 }
 0x7c2   :  { %678 = vst.msk [vmem:[#allocation2] sm:$0xff] %vm677_vm6, %v672_v51 }
 0x7c9   :  { %v1224_v21 = vld [vmem:[#allocation2] sm:$0xff] }
 0x7ca   :  { %3192 = vmatmul.msk.f32.vlgmr.msra.gmra.mxu0 %vm87_vm1, %v1224_v21 }
 0x7da   :  { %v674_v49 = vpop.permute.xlu1 %673 }
 0x7db   :  { %679 = vst.msk [vmem:[#allocation2 + $0x8] sm:$0xff] %vm677_vm6, %v674_v49 }
 0x7e2   :  { %v937_v52 = vpop.permute.xlu0 %936  ;;  %v1077_v53 = vpop.permute.xlu1 %1076  ;;  %v1225_v4 = vld [vmem:[#allocation2 + $0x8] sm:$0xff] }
 0x7e3   :  { %942 = vst.msk [vmem:[#allocation2 + $0x10] sm:$0xff] %vm393_vm13, %v937_v52  ;;  %3193 = vmatmul.msk.f32.gmra.mxu0 %vm87_vm1, %v1225_v4  ;;  %v1388_v4 = vld [vmem:[%s5074_s3 + $0x50] sm:$0xff] }
 0x7e4   :  { %1082 = vst.msk [vmem:[#allocation2 + $0x10] sm:$0xff] %vm535_vm5, %v1077_v53  ;;  %v1389_v53 = vld [vmem:[%s5074_s3 + $0x58] sm:$0xff] }
 0x7e5   :  { %1416 = vmatpush.msrb.mxu3 %v1389_v53 }
 0x7e7   :  { %1417 = vmatpush.msrb.mxu3 %v1388_v4 }
 0x7ea   :  { %v939_v54 = vpop.permute.xlu1 %938 }
 0x7eb   :  { %943 = vst.msk [vmem:[#allocation2 + $0x18] sm:$0xff] %vm393_vm13, %v939_v54  ;;  %v1387_v54 = vld [vmem:[%s5074_s3 + $0x48] sm:$0xff] }
 0x7ec   :  { %1418 = vmatpush.msrb.mxu3 %v1387_v54 }
 0x7f2   :  { %v1217_v56 = vpop.permute.xlu0 %1216 }
 0x7f3   :  { %1222 = vst.msk [vmem:[#allocation2 + $0x10] sm:$0xff] %vm677_vm6, %v1217_v56  ;;  %v1386_v56 = vld [vmem:[%s5074_s3 + $0x40] sm:$0xff] }
 0x7f4   :  { %1419 = vmatpush.msrb.mxu3 %v1386_v56 }
 0x7fa   :  { %v1226_v57 = vld [vmem:[#allocation2 + $0x10] sm:$0xff]  ;;  %v1219_v23 = vpop.permute.xlu0 %1218 }
 0x7fb   :  { %3194 = vmatmul.msk.f32.gmra.mxu0 %vm87_vm1, %v1226_v57 }
 0x803   :  { %v1079_v59 = vpop.permute.xlu2 %1078 }
 0x804   :  { %1083 = vst.msk [vmem:[#allocation2 + $0x18] sm:$0xff] %vm535_vm5, %v1079_v59 }
 0x805   :  { %1223 = vst.msk [vmem:[#allocation2 + $0x18] sm:$0xff] %vm677_vm6, %v1219_v23 }
 0x80c   :  { %v1227_v19 = vld [vmem:[#allocation2 + $0x18] sm:$0xff] }
 0x80d   :  { %3195 = vmatmul.msk.f32.gmra.mxu0 %vm87_vm1, %v1227_v19 }
 0x847   :  { %v1263_v0 = vpop.f32.mrf.mxu0 }
 0x848   :  { %v1264_v1 = vadd.f32 %v3392_v62, %v1263_v0 }
 0x84a   :  { %v1275_v5 = vadd.f32 %v1264_v1, %v3687_v12 }
 0x84c   :  { %v1281_v43 = vsel %vm87_vm1, %v1275_v5, 0.0 }
 0x84d   :  { %1282 = vadd.xlane.f32.xlu1 %v1281_v43 }
 0x860   :  { %v1266_v6 = vpop.f32.mrf.mxu0 }
 0x861   :  { %v1267_v29 = vadd.f32 %v3392_v62, %v1266_v6  ;;  %v4169_v6 = vld [vmem:[%s5075_s4 + $0x3] ss:$0 sm:$0xff] }
 0x863   :  { %v1276_v58 = vadd.f32 %v1267_v29, %v3695_v16  ;;  %v3472_v16 = vpop.eup %3471 }
 0x864   :  { %v1294_v30 = vmul.f32 32.0, %v3472_v16  ;;  %vm1298_vm7 = vweird.f32 %v3472_v16 }
 0x865   :  { %v1284_v8 = vsel %vm87_vm1, %v1276_v58, 0.0 }
 0x866   :  { %1285 = vadd.xlane.f32.xlu2 %v1284_v8  ;;  %v1295_v47 = vsub.f32 1.0, %v1294_v30  ;;  %v4174_v8 = vld [vmem:[%s5075_s4 + $0x4] ss:$0 sm:$0xff] }
 0x868   :  { %v1296_v41 = vmul.f32 %v3472_v16, %v1295_v47 }
 0x86a   :  { %v1297_v31 = vadd.f32 %v3472_v16, %v1296_v41 }
 0x86c   :  { %v4135_v14 = vsel %vm1298_vm7, %v3472_v16, %v1297_v31 }
 0x878   :  { %v1269_v32 = vpop.f32.mrf.mxu0 }
 0x879   :  { %v1270_v9 = vadd.f32 %v3392_v62, %v1269_v32 }
 0x87b   :  { %v1277_v20 = vadd.f32 %v1270_v9, %v3769_v63 }
 0x87d   :  { %v1287_v24 = vsel %vm87_vm1, %v1277_v20, 0.0 }
 0x87e   :  { %1288 = vadd.xlane.f32.xlu0 %v1287_v24 }
 0x88a   :  { %v1272_v25 = vpop.f32.mrf.mxu0 }
 0x88b   :  { %v1273_v18 = vadd.f32 %v3392_v62, %v1272_v25 }
 0x88d   :  { %v1278_v12 = vadd.f32 %v1273_v18, %v3777_v3 }
 0x88f   :  { %v1290_v26 = vsel %vm87_vm1, %v1278_v12, 0.0 }
 0x890   :  { %1291 = vadd.xlane.f32.xlu1 %v1290_v26 }
 0x8c0   :  { %v1283_v63 = vpop.xlane.xlu1 %1282 }
 0x8c1   :  { %v1300_v33 = vmul.f32 %v4135_v14, %v1283_v63 }
 0x8c3   :  { %v1304_v34 = vsub.f32 %v1275_v5, %v1300_v33 }
 0x8c5   :  { %v1308_v35 = vmul.f32 %v1304_v34, %v1304_v34 }
 0x8c7   :  { %v1312_v3 = vsel %vm87_vm1, %v1308_v35, 0.0 }
 0x8c8   :  { %1313 = vadd.xlane.f32.xlu2 %v1312_v3 }
 0x8d9   :  { %v1286_v42 = vpop.xlane.xlu2 %1285 }
 0x8da   :  { %v1301_v37 = vmul.f32 %v4135_v14, %v1286_v42 }
 0x8dc   :  { %v1305_v40 = vsub.f32 %v1276_v58, %v1301_v37 }
 0x8de   :  { %v1309_v22 = vmul.f32 %v1305_v40, %v1305_v40 }
 0x8e0   :  { %v1315_v39 = vsel %vm87_vm1, %v1309_v22, 0.0  ;;  %v1443_v22 = vld [vmem:[%s5074_s3 + $0x90] sm:$0xff] }
 0x8e1   :  { %1316 = vadd.xlane.f32.xlu0 %v1315_v39 }
 0x8f1   :  { %v1289_v44 = vpop.xlane.xlu0 %1288 }
 0x8f2   :  { %v1302_v46 = vmul.f32 %v4135_v14, %v1289_v44  ;;  %v1442_v44 = vld [vmem:[%s5074_s3 + $0x88] sm:$0xff] }
 0x8f4   :  { %v4142_v10 = vsub.f32 %v1277_v20, %v1302_v46 }
 0x8f6   :  { %v1310_v17 = vmul.f32 %v4142_v10, %v4142_v10 }
 0x8f8   :  { %v1318_v48 = vsel %vm87_vm1, %v1310_v17, 0.0 }
 0x8f9   :  { %1319 = vadd.xlane.f32.xlu1 %v1318_v48 }
 0x903   :  { %v1292_v11 = vpop.xlane.xlu1 %1291 }
 0x904   :  { %v1303_v51 = vmul.f32 %v4135_v14, %v1292_v11  ;;  %v1441_v11 = vld [vmem:[%s5074_s3 + $0x80] sm:$0xff] }
 0x906   :  { %v4148_v21 = vsub.f32 %v1278_v12, %v1303_v51 }
 0x908   :  { %v1311_v49 = vmul.f32 %v4148_v21, %v4148_v21 }
 0x90a   :  { %v1321_v52 = vsel %vm87_vm1, %v1311_v49, 0.0 }
 0x90b   :  { %1322 = vadd.xlane.f32.xlu2 %v1321_v52  ;;  %v1440_v52 = vld [vmem:[%s5074_s3 + $0x78] sm:$0xff] }
 0x93b   :  { %v1314_v57 = vpop.xlane.xlu2 %1313 }
 0x93c   :  { %v1324_v59 = vmul.f32 %v1314_v57, %v4135_v14 }
 0x93e   :  { %v1328_v23 = vadd.f32 1e-05, %v1324_v59 }
 0x940   :  { %3473 = vrsqrt.f32 %v1328_v23  ;;  %vm1338_vm9 = vweird.f32 %v1328_v23 }
 0x946   :  { %v3474_v19 = vpop.eup %3473 }
 0x947   :  { %v1333_v62 = vmul.f32 %v3474_v19, %v1328_v23  ;;  %vm1339_vm8 = vweird.f32 %v3474_v19 }
 0x948   :  { %vm1340_vm10 = vmor %vm1338_vm9, %vm1339_vm8 }
 0x949   :  { %v1334_v0 = vmul.f32 %v3474_v19, %v1333_v62 }
 0x94b   :  { %v1335_v1 = vmul.f32 0.5, %v1334_v0 }
 0x94d   :  { %v1336_v5 = vsub.f32 1.5, %v1335_v1 }
 0x94f   :  { %v1337_v43 = vmul.f32 %v3474_v19, %v1336_v5 }
 0x951   :  { %v1341_v29 = vsel %vm1340_vm10, %v3474_v19, %v1337_v43  ;;  %vm1447_vm10 = vcmask 523264  }
 0x952   :  { %v1372_v58 = vmul.f32 %v1341_v29, %v1304_v34  ;;  %v1439_v29 = vld [vmem:[%s5074_s3 + $0x70] sm:$0xff] }
 0x954   :  { %v1377_v32 = vmul.f32 %v4169_v6, %v1372_v58  ;;  %v1317_v9 = vpop.xlane.xlu0 %1316  ;;  %v1438_v58 = vld [vmem:[%s5074_s3 + $0x68] sm:$0xff] }
 0x955   :  { %v1325_v20 = vmul.f32 %v1317_v9, %v4135_v14 }
 0x956   :  { %v4179_v24 = vadd.f32 %v4174_v8, %v1377_v32  ;;  %v1437_v32 = vld [vmem:[%s5074_s3 + $0x60] sm:$0xff] }
 0x957   :  { %v1329_v25 = vadd.f32 1e-05, %v1325_v20 }
 0x958   :  { %3196 = vmatmul.msk.f32.vlgmr.msrb.gmra.mxu3 %vm87_vm1, %v4179_v24 }
 0x959   :  { %3475 = vrsqrt.f32 %v1329_v25  ;;  %vm1348_vm12 = vweird.f32 %v1329_v25 }
 0x95f   :  { %v3476_v18 = vpop.eup %3475 }
 0x960   :  { %v1343_v12 = vmul.f32 %v3476_v18, %v1329_v25  ;;  %vm1349_vm11 = vweird.f32 %v3476_v18 }
 0x961   :  { %vm1350_vm14 = vmor %vm1348_vm12, %vm1349_vm11 }
 0x962   :  { %v1344_v26 = vmul.f32 %v3476_v18, %v1343_v12 }
 0x964   :  { %v1345_v28 = vmul.f32 0.5, %v1344_v26 }
 0x966   :  { %v1346_v16 = vsub.f32 1.5, %v1345_v28 }
 0x968   :  { %v1347_v30 = vmul.f32 %v3476_v18, %v1346_v16 }
 0x96a   :  { %v1351_v47 = vsel %vm1350_vm14, %v3476_v18, %v1347_v30 }
 0x96b   :  { %v1373_v41 = vmul.f32 %v1351_v47, %v1305_v40  ;;  %v1444_v40 = vld [vmem:[%s5074_s3 + $0x98] sm:$0xff] }
 0x96c   :  { %v1320_v31 = vpop.xlane.xlu1 %1319  ;;  %1468 = vmatpush.msra.mxu1 %v1444_v40 }
 0x96d   :  { %v1326_v63 = vmul.f32 %v1320_v31, %v4135_v14  ;;  %v1378_v33 = vmul.f32 %v4169_v6, %v1373_v41  ;;  %v3396_v41 = vld [vmem:[%s5075_s4 + $0x6] ss:$0 sm:$0xff] }
 0x96e   :  { %1469 = vmatpush.msra.mxu1 %v1443_v22 }
 0x96f   :  { %v1330_v34 = vadd.f32 1e-05, %v1326_v63  ;;  %v4186_v35 = vadd.f32 %v4174_v8, %v1378_v33 }
 0x970   :  { %1470 = vmatpush.msra.mxu1 %v1442_v44 }
 0x971   :  { %3477 = vrsqrt.f32 %v1330_v34  ;;  %3197 = vmatmul.msk.f32.gmra.mxu3 %vm87_vm1, %v4186_v35  ;;  %vm1358_vm3 = vweird.f32 %v1330_v34 }
 0x972   :  { %1471 = vmatpush.msra.mxu1 %v1441_v11 }
 0x974   :  { %1472 = vmatpush.msra.mxu1 %v1440_v52 }
 0x976   :  { %1473 = vmatpush.msra.mxu1 %v1439_v29 }
 0x977   :  { %v3478_v3 = vpop.eup %3477 }
 0x978   :  { %v1353_v42 = vmul.f32 %v3478_v3, %v1330_v34  ;;  %vm1359_vm15 = vweird.f32 %v3478_v3  ;;  %1474 = vmatpush.msra.mxu1 %v1438_v58 }
 0x979   :  { %vm1360_vm4 = vmor %vm1358_vm3, %vm1359_vm15 }
 0x97a   :  { %v1354_v37 = vmul.f32 %v3478_v3, %v1353_v42  ;;  %1475 = vmatpush.msra.mxu1 %v1437_v32  ;;  %v3207_v32 = vld [vmem:[%s5074_s3 + $0xb8] sm:$0xff] }
 0x97b   :  { %1628 = vmatpush.msrb.mxu2 %v3207_v32 }
 0x97c   :  { %v1355_v39 = vmul.f32 0.5, %v1354_v37 }
 0x97e   :  { %v1356_v46 = vsub.f32 1.5, %v1355_v39  ;;  %v1323_v17 = vpop.xlane.xlu2 %1322 }
 0x97f   :  { %v1327_v48 = vmul.f32 %v1323_v17, %v4135_v14 }
 0x980   :  { %v1357_v51 = vmul.f32 %v3478_v3, %v1356_v46 }
 0x981   :  { %v1331_v49 = vadd.f32 1e-05, %v1327_v48 }
 0x982   :  { %v1361_v53 = vsel %vm1360_vm4, %v3478_v3, %v1357_v51 }
 0x983   :  { %3479 = vrsqrt.f32 %v1331_v49  ;;  %v1374_v4 = vmul.f32 %v1361_v53, %v4142_v10  ;;  %vm1368_vm8 = vweird.f32 %v1331_v49 }
 0x985   :  { %v1379_v54 = vmul.f32 %v4169_v6, %v1374_v4 }
 0x987   :  { %v1384_v56 = vadd.f32 %v4174_v8, %v1379_v54 }
 0x989   :  { %v3480_v57 = vpop.eup %3479  ;;  %3198 = vmatmul.msk.f32.gmra.mxu3 %vm87_vm1, %v1384_v56 }
 0x98a   :  { %v1363_v59 = vmul.f32 %v3480_v57, %v1331_v49  ;;  %vm1369_vm7 = vweird.f32 %v3480_v57 }
 0x98b   :  { %vm1370_vm9 = vmor %vm1368_vm8, %vm1369_vm7 }
 0x98c   :  { %v1364_v23 = vmul.f32 %v3480_v57, %v1363_v59 }
 0x98e   :  { %v1365_v19 = vmul.f32 0.5, %v1364_v23 }
 0x990   :  { %v1366_v62 = vsub.f32 1.5, %v1365_v19 }
 0x992   :  { %v1367_v0 = vmul.f32 %v3480_v57, %v1366_v62 }
 0x994   :  { %v1371_v1 = vsel %vm1370_vm9, %v3480_v57, %v1367_v0 }
 0x995   :  { %v1375_v5 = vmul.f32 %v1371_v1, %v4148_v21  ;;  %v3395_v21 = vld [vmem:[%s5075_s4 + $0x5] ss:$0 sm:$0xff] }
 0x997   :  { %v1380_v10 = vmul.f32 %v4169_v6, %v1375_v5 }
 0x999   :  { %v1385_v43 = vadd.f32 %v4174_v8, %v1380_v10 }
 0x99b   :  { %3199 = vmatmul.msk.f32.gmra.mxu3 %vm87_vm1, %v1385_v43 }
 0x9db   :  { %v1421_v6 = vpop.f32.mrf.mxu3 }
 0x9dc   :  { %v1422_v8 = vadd.f32 %v3395_v21, %v1421_v6  ;;  %v3205_v6 = vld [vmem:[%s5074_s3 + $0xa8] sm:$0xff] }
 0x9de   :  { %v1433_v9 = vmax.f32 %v1422_v8, 0.0  ;;  %v3204_v8 = vld [vmem:[%s5074_s3 + $0xa0] sm:$0xff] }
 0x9e0   :  { %3200 = vmatmul.msk.f32.vlgmr.msra.gmra.mxu1 %vm1447_vm10, %v1433_v9 }
 0x9f4   :  { %v1424_v20 = vpop.f32.mrf.mxu3 }
 0x9f5   :  { %v1425_v25 = vadd.f32 %v3395_v21, %v1424_v20 }
 0x9f7   :  { %v1434_v18 = vmax.f32 %v1425_v25, 0.0 }
 0x9f9   :  { %3201 = vmatmul.msk.f32.gmra.mxu1 %vm1447_vm10, %v1434_v18 }
 0xa0c   :  { %v1427_v12 = vpop.f32.mrf.mxu3 }
 0xa0d   :  { %v1428_v26 = vadd.f32 %v3395_v21, %v1427_v12 }
 0xa0f   :  { %v1435_v28 = vmax.f32 %v1428_v26, 0.0 }
 0xa11   :  { %3202 = vmatmul.msk.f32.gmra.mxu1 %vm1447_vm10, %v1435_v28 }
 0xa1e   :  { %v1430_v16 = vpop.f32.mrf.mxu3 }
 0xa1f   :  { %v1431_v30 = vadd.f32 %v3395_v21, %v1430_v16  ;;  %v3206_v21 = vld [vmem:[%s5074_s3 + $0xb0] sm:$0xff] }
 0xa20   :  { %1629 = vmatpush.msrb.mxu2 %v3206_v21 }
 0xa21   :  { %v1436_v47 = vmax.f32 %v1431_v30, 0.0 }
 0xa22   :  { %1630 = vmatpush.msrb.mxu2 %v3205_v6 }
 0xa23   :  { %3203 = vmatmul.msk.f32.gmra.mxu1 %vm1447_vm10, %v1436_v47  ;;  %v4271_v47 = vld [vmem:[%s5075_s4 + $0x7] ss:$0 sm:$0xff] }
 0xa24   :  { %1631 = vmatpush.msrb.mxu2 %v3204_v8 }
 0xa5d   :  { %v1477_v31 = vpop.f32.mrf.mxu1 }
 0xa5e   :  { %v1478_v63 = vadd.f32 %v3396_v41, %v1477_v31  ;;  %v4276_v31 = vld [vmem:[%s5075_s4 + $0x8] ss:$0 sm:$0xff] }
 0xa60   :  { %v1489_v33 = vadd.f32 %v1478_v63, %v4179_v24 }
 0xa62   :  { %v1495_v34 = vsel %vm87_vm1, %v1489_v33, 0.0 }
 0xa63   :  { %1496 = vadd.xlane.f32.xlu0 %v1495_v34 }
 0xa76   :  { %v1480_v3 = vpop.f32.mrf.mxu1 }
 0xa77   :  { %v1481_v42 = vadd.f32 %v3396_v41, %v1480_v3 }
 0xa79   :  { %v1490_v37 = vadd.f32 %v1481_v42, %v4186_v35 }
 0xa7b   :  { %v1498_v40 = vsel %vm87_vm1, %v1490_v37, 0.0 }
 0xa7c   :  { %1499 = vadd.xlane.f32.xlu1 %v1498_v40  ;;  %v3569_v40 = vld [vmem:[%s5072_s1] sm:$0xff] }
 0xa8e   :  { %v1483_v22 = vpop.f32.mrf.mxu1 }
 0xa8f   :  { %v1484_v39 = vadd.f32 %v3396_v41, %v1483_v22 }
 0xa91   :  { %v1491_v44 = vadd.f32 %v1484_v39, %v1384_v56 }
 0xa93   :  { %v1501_v46 = vsel %vm87_vm1, %v1491_v44, 0.0 }
 0xa94   :  { %1502 = vadd.xlane.f32.xlu2 %v1501_v46 }
 0xaa0   :  { %v1486_v17 = vpop.f32.mrf.mxu1 }
 0xaa1   :  { %v1487_v48 = vadd.f32 %v3396_v41, %v1486_v17 }
 0xaa3   :  { %v1492_v11 = vadd.f32 %v1487_v48, %v1385_v43 }
 0xaa5   :  { %v1504_v24 = vsel %vm87_vm1, %v1492_v11, 0.0 }
 0xaa6   :  { %1505 = vadd.xlane.f32.xlu0 %v1504_v24 }
 0xad6   :  { %v1497_v51 = vpop.xlane.xlu0 %1496 }
 0xad7   :  { %v1507_v49 = vmul.f32 %v1497_v51, %v4135_v14 }
 0xad9   :  { %v1511_v52 = vsub.f32 %v1489_v33, %v1507_v49 }
 0xadb   :  { %v1515_v35 = vmul.f32 %v1511_v52, %v1511_v52 }
 0xadd   :  { %v1519_v53 = vsel %vm87_vm1, %v1515_v35, 0.0 }
 0xade   :  { %1520 = vadd.xlane.f32.xlu1 %v1519_v53 }
 0xaef   :  { %v1500_v4 = vpop.xlane.xlu1 %1499 }
 0xaf0   :  { %v1508_v54 = vmul.f32 %v1500_v4, %v4135_v14 }
 0xaf2   :  { %v1512_v56 = vsub.f32 %v1490_v37, %v1508_v54  ;;  %v3570_v54 = vld [vmem:[%s5072_s1 + $0x8] sm:$0xff] }
 0xaf4   :  { %v1516_v57 = vmul.f32 %v1512_v56, %v1512_v56 }
 0xaf6   :  { %v1522_v59 = vsel %vm87_vm1, %v1516_v57, 0.0 }
 0xaf7   :  { %1523 = vadd.xlane.f32.xlu2 %v1522_v59 }
 0xb07   :  { %v1503_v23 = vpop.xlane.xlu2 %1502 }
 0xb08   :  { %v1509_v19 = vmul.f32 %v1503_v23, %v4135_v14 }
 0xb0a   :  { %v4244_v62 = vsub.f32 %v1491_v44, %v1509_v19 }
 0xb0c   :  { %v1517_v0 = vmul.f32 %v4244_v62, %v4244_v62 }
 0xb0e   :  { %v1525_v1 = vsel %vm87_vm1, %v1517_v0, 0.0 }
 0xb0f   :  { %1526 = vadd.xlane.f32.xlu0 %v1525_v1 }
 0xb19   :  { %v1506_v5 = vpop.xlane.xlu0 %1505 }
 0xb1a   :  { %v1510_v10 = vmul.f32 %v1506_v5, %v4135_v14 }
 0xb1c   :  { %v4250_v43 = vsub.f32 %v1492_v11, %v1510_v10 }
 0xb1e   :  { %v1518_v29 = vmul.f32 %v4250_v43, %v4250_v43 }
 0xb20   :  { %v1528_v58 = vsel %vm87_vm1, %v1518_v29, 0.0 }
 0xb21   :  { %1529 = vadd.xlane.f32.xlu1 %v1528_v58 }
 0xb51   :  { %v1521_v9 = vpop.xlane.xlu1 %1520 }
 0xb52   :  { %v1531_v20 = vmul.f32 %v1521_v9, %v4135_v14  ;;  %v3571_v9 = vld [vmem:[%s5072_s1 + $0x10] sm:$0xff] }
 0xb54   :  { %v1535_v25 = vadd.f32 1e-05, %v1531_v20 }
 0xb56   :  { %3481 = vrsqrt.f32 %v1535_v25  ;;  %vm1545_vm12 = vweird.f32 %v1535_v25 }
 0xb5c   :  { %v3482_v18 = vpop.eup %3481 }
 0xb5d   :  { %v1540_v12 = vmul.f32 %v3482_v18, %v1535_v25  ;;  %vm1546_vm11 = vweird.f32 %v3482_v18 }
 0xb5e   :  { %vm1547_vm14 = vmor %vm1545_vm12, %vm1546_vm11 }
 0xb5f   :  { %v1541_v26 = vmul.f32 %v3482_v18, %v1540_v12 }
 0xb61   :  { %v1542_v28 = vmul.f32 0.5, %v1541_v26 }
 0xb63   :  { %v1543_v16 = vsub.f32 1.5, %v1542_v28 }
 0xb65   :  { %v1544_v30 = vmul.f32 %v3482_v18, %v1543_v16 }
 0xb67   :  { %v1548_v41 = vsel %vm1547_vm14, %v3482_v18, %v1544_v30 }
 0xb68   :  { %v1579_v63 = vmul.f32 %v1548_v41, %v1511_v52 }
 0xb6a   :  { %v1584_v33 = vmul.f32 %v4271_v47, %v1579_v63  ;;  %v1524_v34 = vpop.xlane.xlu2 %1523  ;;  %v3572_v63 = vld [vmem:[%s5072_s1 + $0x18] sm:$0xff] }
 0xb6b   :  { %v1532_v3 = vmul.f32 %v1524_v34, %v4135_v14  ;;  %v3399_v34 = vld [vmem:[%s5075_s4 + $0x9] ss:$0 sm:$0xff] }
 0xb6c   :  { %v1589_v42 = vadd.f32 %v4276_v31, %v1584_v33 }
 0xb6d   :  { %v1536_v37 = vadd.f32 1e-05, %v1532_v3 }
 0xb6e   :  { %v4284_v22 = vadd.f32 %v3569_v40, %v1589_v42 }
 0xb6f   :  { %3483 = vrsqrt.f32 %v1536_v37  ;;  %vm1555_vm3 = vweird.f32 %v1536_v37 }
 0xb70   :  { %3208 = vmatmul.msk.f32.vlgmr.msrb.gmra.mxu2 %vm87_vm1, %v4284_v22 }
 0xb75   :  { %v3484_v39 = vpop.eup %3483 }
 0xb76   :  { %v1550_v44 = vmul.f32 %v3484_v39, %v1536_v37  ;;  %vm1556_vm15 = vweird.f32 %v3484_v39 }
 0xb77   :  { %vm1557_vm4 = vmor %vm1555_vm3, %vm1556_vm15 }
 0xb78   :  { %v1551_v46 = vmul.f32 %v3484_v39, %v1550_v44 }
 0xb7a   :  { %v1552_v17 = vmul.f32 0.5, %v1551_v46 }
 0xb7c   :  { %v1553_v48 = vsub.f32 1.5, %v1552_v17 }
 0xb7e   :  { %v1554_v11 = vmul.f32 %v3484_v39, %v1553_v48 }
 0xb80   :  { %v1558_v24 = vsel %vm1557_vm4, %v3484_v39, %v1554_v11 }
 0xb81   :  { %v1580_v51 = vmul.f32 %v1558_v24, %v1512_v56 }
 0xb82   :  { %v1527_v49 = vpop.xlane.xlu0 %1526 }
 0xb83   :  { %v1533_v52 = vmul.f32 %v1527_v49, %v4135_v14  ;;  %v1585_v35 = vmul.f32 %v4271_v47, %v1580_v51 }
 0xb85   :  { %v1537_v53 = vadd.f32 1e-05, %v1533_v52  ;;  %v1590_v4 = vadd.f32 %v4276_v31, %v1585_v35 }
 0xb87   :  { %3485 = vrsqrt.f32 %v1537_v53  ;;  %v4294_v57 = vadd.f32 %v3570_v54, %v1590_v4  ;;  %vm1565_vm8 = vweird.f32 %v1537_v53 }
 0xb89   :  { %3209 = vmatmul.msk.f32.gmra.mxu2 %vm87_vm1, %v4294_v57 }
 0xb8d   :  { %v3486_v59 = vpop.eup %3485 }
 0xb8e   :  { %v1560_v56 = vmul.f32 %v3486_v59, %v1537_v53  ;;  %vm1566_vm7 = vweird.f32 %v3486_v59 }
 0xb8f   :  { %vm1567_vm9 = vmor %vm1565_vm8, %vm1566_vm7 }
 0xb90   :  { %v1561_v23 = vmul.f32 %v3486_v59, %v1560_v56 }
 0xb92   :  { %v1562_v19 = vmul.f32 0.5, %v1561_v23 }
 0xb94   :  { %v1563_v0 = vsub.f32 1.5, %v1562_v19  ;;  %v1530_v1 = vpop.xlane.xlu1 %1529 }
 0xb95   :  { %v1534_v5 = vmul.f32 %v1530_v1, %v4135_v14 }
 0xb96   :  { %v1564_v10 = vmul.f32 %v3486_v59, %v1563_v0 }
 0xb97   :  { %v1538_v29 = vadd.f32 1e-05, %v1534_v5 }
 0xb98   :  { %v1568_v58 = vsel %vm1567_vm9, %v3486_v59, %v1564_v10 }
 0xb99   :  { %v1581_v32 = vmul.f32 %v1568_v58, %v4244_v62  ;;  %3487 = vrsqrt.f32 %v1538_v29  ;;  %vm1575_vm12 = vweird.f32 %v1538_v29 }
 0xb9b   :  { %v1586_v21 = vmul.f32 %v4271_v47, %v1581_v32 }
 0xb9d   :  { %v1591_v6 = vadd.f32 %v4276_v31, %v1586_v21 }
 0xb9f   :  { %v3488_v8 = vpop.eup %3487  ;;  %v4305_v20 = vadd.f32 %v3571_v9, %v1591_v6 }
 0xba0   :  { %v1570_v25 = vmul.f32 %v3488_v8, %v1538_v29  ;;  %vm1576_vm11 = vweird.f32 %v3488_v8 }
 0xba1   :  { %3210 = vmatmul.msk.f32.gmra.mxu2 %vm87_vm1, %v4305_v20  ;;  %vm1577_vm14 = vmor %vm1575_vm12, %vm1576_vm11 }
 0xba2   :  { %v1571_v18 = vmul.f32 %v3488_v8, %v1570_v25 }
 0xba4   :  { %v1572_v12 = vmul.f32 0.5, %v1571_v18 }
 0xba6   :  { %v1573_v26 = vsub.f32 1.5, %v1572_v12 }
 0xba8   :  { %v1574_v62 = vmul.f32 %v3488_v8, %v1573_v26 }
 0xbaa   :  { %v1578_v28 = vsel %vm1577_vm14, %v3488_v8, %v1574_v62 }
 0xbab   :  { %v1582_v16 = vmul.f32 %v1578_v28, %v4250_v43 }
 0xbad   :  { %v1587_v30 = vmul.f32 %v4271_v47, %v1582_v16 }
 0xbaf   :  { %v1592_v41 = vadd.f32 %v4276_v31, %v1587_v30 }
 0xbb1   :  { %v4315_v33 = vadd.f32 %v3572_v63, %v1592_v41 }
 0xbb3   :  { %3211 = vmatmul.msk.f32.gmra.mxu2 %vm87_vm1, %v4315_v33 }
 0xbf3   :  { %v1633_v3 = vpop.f32.mrf.mxu2 }
 0xbf4   :  { %v1634_v42 = vadd.f32 %v3399_v34, %v1633_v3 }
 0xbf6   :  { %1776 = vrot.lane.b32.xlu0 %v1634_v42, %s3602_s23  ;;  %1780 = vrot.lane.b32.xlu2 %v1634_v42, %s3601_s22 }
 0xbf7   :  { %1647 = vrot.lane.b32.xlu1 %v1634_v42, %s3599_s20 }
 0xbff   :  { %2062 = vrot.lane.b32.xlu1 %v1634_v42, %s3606_s11 }
 0xc0c   :  { %v1636_v43 = vpop.f32.mrf.mxu2 }
 0xc0d   :  { %v1637_v47 = vadd.f32 %v3399_v34, %v1636_v43 }
 0xc0f   :  { %1782 = vrot.lane.b32.xlu0 %v1637_v47, %s3601_s22  ;;  %1649 = vrot.lane.b32.xlu2 %v1637_v47, %s3599_s20  ;;  %v3350_v44 = vpack.i.bf16 %v1634_v42, %v1637_v47 }
 0xc10   :  { %1923 = vrot.lane.b32.xlu1 %v1637_v47, %s3604_s25 }
 0xc17   :  { %1917 = vrot.lane.b32.xlu0 %v1634_v42, %s3607_s12  ;;  %1921 = vrot.lane.b32.xlu2 %v1634_v42, %s3604_s25 }
 0xc18   :  { %1919 = vrot.lane.b32.xlu1 %v1637_v47, %s3607_s12 }
 0xc1f   :  { %2064 = vrot.lane.b32.xlu0 %v1637_v47, %s3606_s11  ;;  %1778 = vrot.lane.b32.xlu2 %v1637_v47, %s3602_s23 }
 0xc24   :  { %v1639_v31 = vpop.f32.mrf.mxu2 }
 0xc25   :  { %v4336_v37 = vadd.f32 %v3399_v34, %v1639_v31 }
 0xc27   :  { %2060 = vrot.lane.b32.xlu0 %v1637_v47, %s3605_s26  ;;  %2058 = vrot.lane.b32.xlu2 %v1634_v42, %s3605_s26 }
 0xc2f   :  { %2201 = vrot.lane.b32.xlu0 %v4336_v37, %s3599_s20 }
 0xc36   :  { %v1642_v40 = vpop.f32.mrf.mxu2 }
 0xc37   :  { %v4340_v39 = vadd.f32 %v3399_v34, %v1642_v40  ;;  %2473 = vrot.lane.b32.xlu0 %v4336_v37, %s3604_s25 }
 0xc39   :  { %2335 = vrot.lane.b32.xlu1 %v4340_v39, %s3601_s22  ;;  %2203 = vrot.lane.b32.xlu2 %v4340_v39, %s3599_s20 }
 0xc3f   :  { %2331 = vrot.lane.b32.xlu0 %v4340_v39, %s3602_s23 }
 0xc41   :  { %2329 = vrot.lane.b32.xlu1 %v4336_v37, %s3602_s23  ;;  %2333 = vrot.lane.b32.xlu2 %v4336_v37, %s3601_s22 }
 0xc47   :  { %2609 = vrot.lane.b32.xlu0 %v4336_v37, %s3605_s26 }
 0xc49   :  { %2615 = vrot.lane.b32.xlu1 %v4340_v39, %s3606_s11  ;;  %2475 = vrot.lane.b32.xlu2 %v4340_v39, %s3604_s25 }
 0xc4f   :  { %3351 = vrot.lane.b32.xlu0 %v3350_v44, %s3600_s21 }
 0xc50   :  { %v1781_v46 = vpop.permute.xlu2 %1780 }
 0xc51   :  { %2469 = vrot.lane.b32.xlu1 %v4336_v37, %s3607_s12  ;;  %2613 = vrot.lane.b32.xlu2 %v4336_v37, %s3606_s11 }
 0xc59   :  { %2611 = vrot.lane.b32.xlu1 %v4340_v39, %s3605_s26  ;;  %2471 = vrot.lane.b32.xlu2 %v4340_v39, %s3607_s12 }
 0xc61   :  { %3356 = vrot.lane.b32.xlu1 %v3350_v44, %s3603_s24  ;;  %3361 = vrot.lane.b32.xlu2 %v3350_v44, %s3608_s15 }
 0xc68   :  { %v1777_v24 = vpop.permute.xlu0 %1776 }
 0xc69   :  { %v1650_v17 = vpop.permute.xlu2 %1649  ;;  %3366 = vrot.lane.b32.xlu2 %v3350_v44, %s3609_s16  ;;  %v1648_v48 = vpop.permute.xlu1 %1647 }
 0xc6a   :  { %3212 = vmatpush.xpose.msk.msrb.mxu0 %vm135_vm2, %v1650_v17 }
 0xc6e   :  { %3213 = vmatpush.xpose.msk.msrb.mxu0 %vm135_vm2, %v1648_v48 }
 0xc71   :  { %3214 = vmatmul.msk.f32.vlgmr.msrb.gmra.mxu0 %vm135_vm2, %v1634_v42  ;;  %v1922_v11 = vpop.permute.xlu2 %1921  ;;  %v2063_v51 = vpop.permute.xlu1 %2062 }
 0xc79   :  { %3215 = vmatmul.msk.f32.gmra.mxu0 %vm135_vm2, %v1637_v47  ;;  %v1779_v49 = vpop.permute.xlu2 %1778 }
 0xc81   :  { %v1783_v52 = vpop.permute.xlu0 %1782  ;;  %v2059_v4 = vpop.permute.xlu2 %2058 }
 0xc82   :  { %v1924_v35 = vpop.permute.xlu1 %1923  ;;  %3218 = vmatpush.xpose.msk.msrb.mxu1 %vm135_vm2, %v1783_v52 }
 0xc83   :  { %3224 = vmatpush.xpose.msk.msra.mxu0 %vm135_vm2, %v1924_v35 }
 0xc86   :  { %3219 = vmatpush.xpose.msk.msrb.mxu1 %vm135_vm2, %v1781_v46 }
 0xc87   :  { %3225 = vmatpush.xpose.msk.msra.mxu0 %vm135_vm2, %v1922_v11 }
 0xc89   :  { %v1918_v53 = vpop.permute.xlu0 %1917  ;;  %3220 = vmatmul.msk.f32.vlgmr.msrb.gmra.mxu1 %vm135_vm2, %v1777_v24 }
 0xc8a   :  { %3226 = vmatmul.msk.f32.vlgmr.msra.gmra.mxu0 %vm135_vm2, %v1918_v53  ;;  %v1920_v54 = vpop.permute.xlu1 %1919 }
 0xc91   :  { %v2065_v59 = vpop.permute.xlu0 %2064  ;;  %3221 = vmatmul.msk.f32.gmra.mxu1 %vm135_vm2, %v1779_v49 }
 0xc92   :  { %3227 = vmatmul.msk.f32.gmra.mxu0 %vm135_vm2, %v1920_v54  ;;  %3230 = vmatpush.xpose.msk.msra.mxu1 %vm135_vm2, %v2065_v59 }
 0xc93   :  { %v2204_v56 = vpop.permute.xlu2 %2203 }
 0xc94   :  { %3236 = vmatpush.xpose.msk.msrb.mxu0 %vm135_vm2, %v2204_v56 }
 0xc96   :  { %3231 = vmatpush.xpose.msk.msra.mxu1 %vm135_vm2, %v2063_v51 }
 0xc99   :  { %v2061_v23 = vpop.permute.xlu0 %2060  ;;  %3232 = vmatmul.msk.f32.vlgmr.msra.gmra.mxu1 %vm135_vm2, %v2059_v4 }
 0xc9b   :  { %v2334_v19 = vpop.permute.xlu2 %2333 }
 0xca1   :  { %v2202_v0 = vpop.permute.xlu0 %2201  ;;  %3233 = vmatmul.msk.f32.gmra.mxu1 %vm135_vm2, %v2061_v23 }
 0xca2   :  { %3237 = vmatpush.xpose.msk.msrb.mxu0 %vm135_vm2, %v2202_v0 }
 0xca3   :  { %v2476_v1 = vpop.permute.xlu2 %2475 }
 0xca5   :  { %3238 = vmatmul.msk.f32.vlgmr.msrb.gmra.mxu0 %vm135_vm2, %v4336_v37 }
 0xca6   :  { %3248 = vmatpush.xpose.msk.msra.mxu0 %vm135_vm2, %v2476_v1 }
 0xca9   :  { %v2474_v5 = vpop.permute.xlu0 %2473 }
 0xcaa   :  { %3249 = vmatpush.xpose.msk.msra.mxu0 %vm135_vm2, %v2474_v5 }
 0xcab   :  { %v2336_v10 = vpop.permute.xlu1 %2335  ;;  %v2614_v29 = vpop.permute.xlu2 %2613 }
 0xcac   :  { %3242 = vmatpush.xpose.msk.msrb.mxu1 %vm135_vm2, %v2336_v10 }
 0xcad   :  { %3239 = vmatmul.msk.f32.gmra.mxu0 %vm135_vm2, %v4340_v39 }
 0xcb0   :  { %3243 = vmatpush.xpose.msk.msrb.mxu1 %vm135_vm2, %v2334_v19 }
 0xcb1   :  { %v2332_v58 = vpop.permute.xlu0 %2331 }
 0xcb3   :  { %v2330_v32 = vpop.permute.xlu1 %2329  ;;  %v2472_v21 = vpop.permute.xlu2 %2471 }
 0xcb4   :  { %3244 = vmatmul.msk.f32.vlgmr.msrb.gmra.mxu1 %vm135_vm2, %v2330_v32 }
 0xcb9   :  { %v2610_v6 = vpop.permute.xlu0 %2609 }
 0xcbb   :  { %v2616_v8 = vpop.permute.xlu1 %2615  ;;  %v3362_v25 = vpop.permute.xlu2 %3361 }
 0xcbc   :  { %3245 = vmatmul.msk.f32.gmra.mxu1 %vm135_vm2, %v2332_v58  ;;  %v3363_v62 = vunpack.i.l.bf16 %v3362_v25  ;;  %v3364_v28 = vunpack.i.h.bf16 %v3362_v25 }
 0xcbd   :  { %3254 = vmatpush.xpose.msk.msra.mxu1 %vm135_vm2, %v2616_v8 }
 0xcc1   :  { %3255 = vmatpush.xpose.msk.msra.mxu1 %vm135_vm2, %v2614_v29  ;;  %v3352_v9 = vpop.permute.xlu0 %3351 }
 0xcc2   :  { %v3353_v18 = vunpack.i.l.bf16 %v3352_v9  ;;  %v3354_v26 = vunpack.i.h.bf16 %v3352_v9 }
 0xcc3   :  { %v2470_v12 = vpop.permute.xlu1 %2469  ;;  %v3367_v41 = vpop.permute.xlu2 %3366 }
 0xcc4   :  { %1765 = vmatpush.msra.mxu3 %v3353_v18  ;;  %3250 = vmatmul.msk.f32.vlgmr.msra.gmra.mxu0 %vm135_vm2, %v2470_v12  ;;  %v3368_v3 = vunpack.i.l.bf16 %v3367_v41  ;;  %v3369_v42 = vunpack.i.h.bf16 %v3367_v41 }
 0xcc5   :  { %3256 = vmatmul.msk.f32.vlgmr.msra.gmra.mxu1 %vm135_vm2, %v2610_v6 }
 0xcc6   :  { %1766 = vmatpush.msra.mxu3 %v3354_v26 }
 0xcc8   :  { %2039 = vmatpush.msrb.mxu3 %v3363_v62 }
 0xcca   :  { %2040 = vmatpush.msrb.mxu3 %v3364_v28 }
 0xccb   :  { %v2612_v16 = vpop.permute.xlu1 %2611 }
 0xccc   :  { %3251 = vmatmul.msk.f32.gmra.mxu0 %vm135_vm2, %v2472_v21 }
 0xccd   :  { %3257 = vmatmul.msk.f32.gmra.mxu1 %vm135_vm2, %v2612_v16 }
 0xcd3   :  { %v3357_v30 = vpop.permute.xlu1 %3356 }
 0xcd4   :  { %v3358_v63 = vunpack.i.l.bf16 %v3357_v30  ;;  %v3359_v34 = vunpack.i.h.bf16 %v3357_v30 }
 0xcd6   :  { %1898 = vmatpush.msra.mxu2 %v3358_v63 }
 0xcd8   :  { %1899 = vmatpush.msra.mxu2 %v3359_v34 }
 0xcda   :  { %2180 = vmatpush.msrb.mxu2 %v3368_v3 }
 0xcdc   :  { %2181 = vmatpush.msrb.mxu2 %v3369_v42 }
 0xcee   :  { %v1676_v43 = vpop.f32.mrf.mxu0 }
 0xcef   :  { %v1682_v47 = vsel %vm31_vm0, %v1676_v43, -inf }
 0xcf0   :  { %1683 = vmax.xlane.f32.xlu0 %v1682_v47 }
 0xcf6   :  { %v1679_v31 = vpop.f32.mrf.mxu0 }
 0xcf7   :  { %v1685_v40 = vsel %vm31_vm0, %v1679_v31, -inf }
 0xcf8   :  { %1686 = vmax.xlane.f32.xlu1 %v1685_v40 }
 0xd06   :  { %v1809_v44 = vpop.f32.mrf.mxu1 }
 0xd07   :  { %v1815_v46 = vsel %vm31_vm0, %v1809_v44, -inf  ;;  %v1950_v17 = vpop.f32.mrf.mxu0 }
 0xd08   :  { %1816 = vmax.xlane.f32.xlu2 %v1815_v46  ;;  %v1956_v24 = vsel %vm31_vm0, %v1950_v17, -inf }
 0xd0e   :  { %v1812_v48 = vpop.f32.mrf.mxu1 }
 0xd0f   :  { %v1818_v11 = vsel %vm31_vm0, %v1812_v48, -inf  ;;  %v4411_v51 = vpop.f32.mrf.mxu0 }
 0xd10   :  { %1819 = vmax.xlane.f32.xlu0 %v1818_v11  ;;  %1957 = vmax.xlane.f32.xlu2 %v1956_v24  ;;  %v1959_v35 = vsel %vm31_vm0, %v4411_v51, -inf }
 0xd16   :  { %v4413_v49 = vpop.f32.mrf.mxu1 }
 0xd17   :  { %v2097_v52 = vsel %vm31_vm0, %v4413_v49, -inf }
 0xd18   :  { %2098 = vmax.xlane.f32.xlu1 %v2097_v52  ;;  %1960 = vmax.xlane.f32.xlu0 %v1959_v35 }
 0xd1e   :  { %v4419_v53 = vpop.f32.mrf.mxu1 }
 0xd1f   :  { %v2100_v4 = vsel %vm31_vm0, %v4419_v53, -inf }
 0xd20   :  { %2101 = vmax.xlane.f32.xlu2 %v2100_v4 }
 0xd22   :  { %v4423_v54 = vpop.f32.mrf.mxu0 }
 0xd23   :  { %v2236_v59 = vsel %vm31_vm0, %v4423_v54, -inf }
 0xd24   :  { %2237 = vmax.xlane.f32.xlu1 %v2236_v59 }
 0xd2a   :  { %v4427_v56 = vpop.f32.mrf.mxu0 }
 0xd2b   :  { %v2239_v23 = vsel %vm31_vm0, %v4427_v56, -inf }
 0xd2c   :  { %2240 = vmax.xlane.f32.xlu2 %v2239_v23 }
 0xd31   :  { %v4431_v19 = vpop.f32.mrf.mxu1 }
 0xd32   :  { %v2368_v0 = vsel %vm31_vm0, %v4431_v19, -inf }
 0xd33   :  { %2369 = vmax.xlane.f32.xlu0 %v2368_v0 }
 0xd39   :  { %v4435_v1 = vpop.f32.mrf.mxu1 }
 0xd3a   :  { %v2371_v5 = vsel %vm31_vm0, %v4435_v1, -inf }
 0xd3b   :  { %2372 = vmax.xlane.f32.xlu1 %v2371_v5 }
 0xd41   :  { %v4439_v10 = vpop.f32.mrf.mxu0 }
 0xd42   :  { %v4441_v29 = vpop.f32.mrf.mxu1  ;;  %v2508_v58 = vsel %vm31_vm0, %v4439_v10, -inf }
 0xd43   :  { %v2648_v32 = vsel %vm31_vm0, %v4441_v29, -inf  ;;  %2509 = vmax.xlane.f32.xlu0 %v2508_v58 }
 0xd44   :  { %2649 = vmax.xlane.f32.xlu2 %v2648_v32 }
 0xd49   :  { %v4447_v21 = vpop.f32.mrf.mxu0 }
 0xd4a   :  { %v4449_v6 = vpop.f32.mrf.mxu1  ;;  %v2511_v8 = vsel %vm31_vm0, %v4447_v21, -inf }
 0xd4b   :  { %v2651_v9 = vsel %vm31_vm0, %v4449_v6, -inf }
 0xd4c   :  { %2512 = vmax.xlane.f32.xlu2 %v2511_v8  ;;  %2652 = vmax.xlane.f32.xlu1 %v2651_v9 }
 0xd63   :  { %v1684_v25 = vpop.xlane.xlu0 %1683 }
 0xd64   :  { %v1688_v18 = vsub.f32 %v1676_v43, %v1684_v25 }
 0xd66   :  { %v1690_v12 = vmul.f32 1.442695, %v1688_v18 }
 0xd68   :  { %3489 = vpow2.f32 %v1690_v12 }
 0xd6b   :  { %v1687_v28 = vpop.xlane.xlu1 %1686 }
 0xd6c   :  { %v1689_v41 = vsub.f32 %v1679_v31, %v1687_v28 }
 0xd6e   :  { %v4455_v26 = vpop.eup %3489  ;;  %v1692_v34 = vmul.f32 1.442695, %v1689_v41 }
 0xd6f   :  { %v1694_v62 = vsel %vm31_vm0, %v4455_v26, 0.0 }
 0xd70   :  { %1695 = vadd.xlane.f32.xlu1 %v1694_v62 }
 0xd7b   :  { %v1817_v16 = vpop.xlane.xlu2 %1816 }
 0xd7c   :  { %v1821_v30 = vsub.f32 %v1809_v44, %v1817_v16 }
 0xd7e   :  { %v1823_v63 = vmul.f32 1.442695, %v1821_v30 }
 0xd80   :  { %3491 = vpow2.f32 %v1823_v63 }
 0xd81   :  { %3493 = vpow2.f32 %v1692_v34 }
 0xd83   :  { %v1820_v3 = vpop.xlane.xlu0 %1819  ;;  %v1958_v42 = vpop.xlane.xlu2 %1957 }
 0xd84   :  { %v1822_v47 = vsub.f32 %v1812_v48, %v1820_v3  ;;  %v1962_v40 = vsub.f32 %v1950_v17, %v1958_v42 }
 0xd86   :  { %v4459_v43 = vpop.eup %3491  ;;  %v1825_v46 = vmul.f32 1.442695, %v1822_v47  ;;  %v1964_v11 = vmul.f32 1.442695, %v1962_v40 }
 0xd87   :  { %v1827_v24 = vsel %vm31_vm0, %v4459_v43, 0.0  ;;  %v4463_v31 = vpop.eup %3493 }
 0xd88   :  { %3495 = vpow2.f32 %v1825_v46  ;;  %1828 = vadd.xlane.f32.xlu0 %v1827_v24  ;;  %v1697_v0 = vsel %vm31_vm0, %v4463_v31, 0.0 }
 0xd89   :  { %3497 = vpow2.f32 %v1964_v11 }
 0xd8b   :  { %v2099_v44 = vpop.xlane.xlu1 %2098  ;;  %v1961_v52 = vpop.xlane.xlu0 %1960 }
 0xd8c   :  { %v2103_v35 = vsub.f32 %v4413_v49, %v2099_v44  ;;  %v1963_v59 = vsub.f32 %v4411_v51, %v1961_v52 }
 0xd8e   :  { %v4466_v4 = vpop.eup %3495  ;;  %v2105_v17 = vmul.f32 1.442695, %v2103_v35  ;;  %v1966_v49 = vmul.f32 1.442695, %v1963_v59 }
 0xd8f   :  { %v4468_v48 = vpop.eup %3497  ;;  %v1830_v23 = vsel %vm31_vm0, %v4466_v4, 0.0 }
 0xd90   :  { %1831 = vadd.xlane.f32.xlu2 %v1830_v23  ;;  %v1968_v5 = vsel %vm31_vm0, %v4468_v48, 0.0  ;;  %1698 = vadd.xlane.f32.xlu0 %v1697_v0  ;;  %3499 = vpow2.f32 %v2105_v17 }
 0xd91   :  { %1969 = vadd.xlane.f32.xlu1 %v1968_v5  ;;  %3501 = vpow2.f32 %v1966_v49 }
 0xd93   :  { %v2102_v58 = vpop.xlane.xlu2 %2101 }
 0xd94   :  { %v2104_v51 = vsub.f32 %v4419_v53, %v2102_v58 }
 0xd96   :  { %v4477_v32 = vpop.eup %3499  ;;  %v2107_v12 = vmul.f32 1.442695, %v2104_v51 }
 0xd97   :  { %v2238_v8 = vpop.xlane.xlu1 %2237  ;;  %v2109_v25 = vsel %vm31_vm0, %v4477_v32, 0.0  ;;  %v4483_v62 = vpop.eup %3501 }
 0xd98   :  { %v2242_v9 = vsub.f32 %v4423_v54, %v2238_v8  ;;  %2110 = vadd.xlane.f32.xlu2 %v2109_v25  ;;  %v1971_v30 = vsel %vm31_vm0, %v4483_v62, 0.0 }
 0xd9a   :  { %v2244_v18 = vmul.f32 1.442695, %v2242_v9 }
 0xd9c   :  { %3503 = vpow2.f32 %v2244_v18 }
 0xd9d   :  { %3505 = vpow2.f32 %v2107_v12 }
 0xd9f   :  { %v2241_v28 = vpop.xlane.xlu2 %2240 }
 0xda0   :  { %v2243_v16 = vsub.f32 %v4427_v56, %v2241_v28  ;;  %1972 = vadd.xlane.f32.xlu2 %v1971_v30 }
 0xda2   :  { %v4488_v53 = vpop.eup %3503  ;;  %v2246_v54 = vmul.f32 1.442695, %v2243_v16 }
 0xda3   :  { %v2248_v41 = vsel %vm31_vm0, %v4488_v53, 0.0  ;;  %v4492_v63 = vpop.eup %3505 }
 0xda4   :  { %2249 = vadd.xlane.f32.xlu0 %v2248_v41  ;;  %3507 = vpow2.f32 %v2246_v54  ;;  %v2112_v56 = vsel %vm31_vm0, %v4492_v63, 0.0 }
 0xda6   :  { %v2370_v34 = vpop.xlane.xlu0 %2369 }
 0xda7   :  { %v2374_v3 = vsub.f32 %v4431_v19, %v2370_v34  ;;  %v4507_v19 = vpack.i.bf16 %v4336_v37, %v4340_v39 }
 0xda8   :  { %2113 = vadd.xlane.f32.xlu2 %v2112_v56 }
 0xda9   :  { %v2376_v42 = vmul.f32 1.442695, %v2374_v3 }
 0xdaa   :  { %v4497_v47 = vpop.eup %3507 }
 0xdab   :  { %3509 = vpow2.f32 %v2376_v42  ;;  %v2251_v40 = vsel %vm31_vm0, %v4497_v47, 0.0 }
 0xdae   :  { %v2373_v24 = vpop.xlane.xlu1 %2372 }
 0xdaf   :  { %v2375_v37 = vsub.f32 %v4435_v1, %v2373_v24 }
 0xdb0   :  { %2252 = vadd.xlane.f32.xlu2 %v2251_v40 }
 0xdb1   :  { %v4501_v46 = vpop.eup %3509  ;;  %v2378_v39 = vmul.f32 1.442695, %v2375_v37 }
 0xdb2   :  { %v2380_v11 = vsel %vm31_vm0, %v4501_v46, 0.0 }
 0xdb3   :  { %2381 = vadd.xlane.f32.xlu1 %v2380_v11 }
 0xdb6   :  { %v2510_v23 = vpop.xlane.xlu0 %2509 }
 0xdb7   :  { %v2650_v0 = vpop.xlane.xlu2 %2649  ;;  %v2514_v5 = vsub.f32 %v4439_v10, %v2510_v23 }
 0xdb8   :  { %3376 = vrot.lane.b32.xlu0 %v4507_v19, %s3603_s24  ;;  %v2654_v58 = vsub.f32 %v4441_v29, %v2650_v0 }
 0xdba   :  { %v2656_v25 = vmul.f32 1.442695, %v2654_v58 }
 0xdbf   :  { %v2653_v44 = vpop.xlane.xlu1 %2652  ;;  %v2513_v51 = vpop.xlane.xlu2 %2512 }
 0xdc0   :  { %v2655_v52 = vsub.f32 %v4449_v6, %v2653_v44  ;;  %v2516_v6 = vmul.f32 1.442695, %v2514_v5  ;;  %v2515_v1 = vsub.f32 %v4447_v21, %v2513_v51 }
 0xdc2   :  { %v2658_v35 = vmul.f32 1.442695, %v2655_v52  ;;  %v2518_v18 = vmul.f32 1.442695, %v2515_v1 }
 0xdc4   :  { %3511 = vpow2.f32 %v2658_v35 }
 0xdc5   :  { %3513 = vpow2.f32 %v2378_v39 }
 0xdc6   :  { %3515 = vpow2.f32 %v2516_v6 }
 0xdca   :  { %v4512_v17 = vpop.eup %3511 }
 0xdcb   :  { %v2663_v59 = vsel %vm31_vm0, %v4512_v17, 0.0  ;;  %v4520_v49 = vpop.eup %3513 }
 0xdcc   :  { %3371 = vrot.lane.b32.xlu1 %v4507_v19, %s3600_s21  ;;  %2664 = vadd.xlane.f32.xlu2 %v2663_v59  ;;  %v2383_v8 = vsel %vm31_vm0, %v4520_v49, 0.0  ;;  %v4528_v10 = vpop.eup %3515 }
 0xdcd   :  { %v2520_v29 = vsel %vm31_vm0, %v4528_v10, 0.0 }
 0xde2   :  { %2384 = vadd.xlane.f32.xlu0 %v2383_v8 }
 0xde3   :  { %v1696_v9 = vpop.xlane.xlu1 %1695 }
 0xde4   :  { %3517 = vrcp.f32 %v1696_v9  ;;  %3386 = vrot.lane.b32.xlu2 %v4507_v19, %s3609_s16  ;;  %v1711_v54 = vand.u32 2147483648, %v1696_v9  ;;  %v1709_v41 = vand.u32 2147483647, %v1696_v9  ;;  %vm1705_vm3 = vweird.f32 %v1696_v9  ;;  %s3616_s16 = smov 128  }
 0xde5   :  { %3519 = vpow2.f32 %v2656_v25 }
 0xde6   :  { %3521 = vpow2.f32 %v2518_v18  ;;  %v1712_v42 = vor.u32 1.1754944e-38, %v1711_v54  ;;  %vm1710_vm7 = vcmp.eq.f32.partialorder %v1709_v41, 8.507059e+37 }
 0xdea   :  { %v3518_v12 = vpop.eup %3517  ;;  %2521 = vadd.xlane.f32.xlu0 %v2520_v29 }
 0xdeb   :  { %v1701_v28 = vmul.f32 %v3518_v12, %v1696_v9  ;;  %v4532_v30 = vpop.eup %3519  ;;  %vm1706_vm15 = vweird.f32 %v3518_v12 }
 0xdec   :  { %v2660_v3 = vsel %vm31_vm0, %v4532_v30, 0.0  ;;  %v4536_v56 = vpop.eup %3521  ;;  %vm1707_vm4 = vmor %vm1705_vm3, %vm1706_vm15 }
 0xded   :  { %v1702_v16 = vsub.f32 1.0, %v1701_v28  ;;  %v2523_v24 = vsel %vm31_vm0, %v4536_v56, 0.0 }
 0xdef   :  { %v1703_v21 = vmul.f32 %v3518_v12, %v1702_v16 }
 0xdf1   :  { %v1704_v34 = vadd.f32 %v3518_v12, %v1703_v21 }
 0xdf2   :  { %2661 = vadd.xlane.f32.xlu0 %v2660_v3 }
 0xdf3   :  { %v1708_v40 = vsel %vm1707_vm4, %v3518_v12, %v1704_v34 }
 0xdf4   :  { %v1713_v11 = vsel %vm1710_vm7, %v1712_v42, %v1708_v40 }
 0xdf5   :  { %v4541_v44 = vmul.f32 %v4455_v26, %v1713_v11 }
 0xdf6   :  { %2524 = vadd.xlane.f32.xlu1 %v2523_v24 }
 0xdf7   :  { %3216 = vmatmul.msk.f32.vlgmr.msra.gmra.mxu3 %vm31_vm0, %v4541_v44 }
 0xdfb   :  { %v1829_v52 = vpop.xlane.xlu0 %1828 }
 0xdfc   :  { %3523 = vrcp.f32 %v1829_v52  ;;  %v1844_v5 = vand.u32 2147483648, %v1829_v52  ;;  %v1842_v6 = vand.u32 2147483647, %v1829_v52  ;;  %vm1838_vm9 = vweird.f32 %v1829_v52 }
 0xdfe   :  { %v1845_v8 = vor.u32 1.1754944e-38, %v1844_v5  ;;  %vm1843_vm12 = vcmp.eq.f32.partialorder %v1842_v6, 8.507059e+37 }
 0xe02   :  { %v3524_v35 = vpop.eup %3523 }
 0xe03   :  { %v1834_v59 = vmul.f32 %v3524_v35, %v1829_v52  ;;  %v1832_v37 = vpop.xlane.xlu2 %1831  ;;  %v1699_v39 = vpop.xlane.xlu0 %1698  ;;  %vm1839_vm8 = vweird.f32 %v3524_v35 }
 0xe04   :  { %3525 = vrcp.f32 %v1832_v37  ;;  %v4545_v23 = vpop.xlane.xlu1 %1969  ;;  %vm1840_vm11 = vmor %vm1838_vm9, %vm1839_vm8  ;;  %v1859_v54 = vand.u32 2147483648, %v1832_v37  ;;  %v1857_v41 = vand.u32 2147483647, %v1832_v37  ;;  %v1726_v11 = vand.u32 2147483648, %v1699_v39 }
 0xe05   :  { %v1835_v0 = vsub.f32 1.0, %v1834_v59  ;;  %3527 = vrcp.f32 %v1699_v39  ;;  %vm1853_vm3 = vweird.f32 %v1832_v37  ;;  %v1724_v52 = vand.u32 2147483647, %v1699_v39 }
 0xe06   :  { %3529 = vrcp.f32 %v4545_v23  ;;  %3381 = vrot.lane.b32.xlu0 %v4507_v19, %s3608_s15  ;;  %v1860_v59 = vor.u32 1.1754944e-38, %v1859_v54  ;;  %vm1720_vm4 = vweird.f32 %v1699_v39  ;;  %vm1858_vm9 = vcmp.eq.f32.partialorder %v1857_v41, 8.507059e+37 }
 0xe07   :  { %v1836_v26 = vmul.f32 %v3524_v35, %v1835_v0 }
 0xe09   :  { %v1837_v58 = vadd.f32 %v3524_v35, %v1836_v26  ;;  %v1727_v26 = vor.u32 1.1754944e-38, %v1726_v11 }
 0xe0a   :  { %v3526_v51 = vpop.eup %3525 }
 0xe0b   :  { %v3528_v9 = vpop.eup %3527  ;;  %v1841_v25 = vsel %vm1840_vm11, %v3524_v35, %v1837_v58  ;;  %v1849_v1 = vmul.f32 %v3526_v51, %v1832_v37  ;;  %v2111_v28 = vpop.xlane.xlu2 %2110  ;;  %vm1854_vm14 = vweird.f32 %v3526_v51 }
 0xe0c   :  { %v4550_v18 = vpop.eup %3529  ;;  %v1846_v29 = vsel %vm1843_vm12, %v1845_v8, %v1841_v25  ;;  %v1716_v12 = vmul.f32 %v3528_v9, %v1699_v39  ;;  %3531 = vrcp.f32 %v2111_v28  ;;  %vm1721_vm15 = vweird.f32 %v3528_v9  ;;  %vm1855_vm7 = vmor %vm1853_vm3, %vm1854_vm14 }
 0xe0d   :  { %v1850_v16 = vsub.f32 1.0, %v1849_v1  ;;  %v1975_v19 = vmul.f32 %v4550_v18, %v4545_v23  ;;  %v4555_v42 = vmul.f32 %v4459_v43, %v1846_v29  ;;  %vm1722_vm8 = vmor %vm1720_vm4, %vm1721_vm15  ;;  %vm1980_vm11 = vweird.f32 %v4550_v18 }
 0xe0e   :  { %v1717_v21 = vsub.f32 1.0, %v1716_v12  ;;  %vm1725_vm12 = vcmp.eq.f32.partialorder %v1724_v52, 8.507059e+37  ;;  %v1985_v1 = vand.u32 2147483648, %v4545_v23  ;;  %vm1979_vm14 = vweird.f32 %v4545_v23 }
 0xe0f   :  { %v1851_v34 = vmul.f32 %v3526_v51, %v1850_v16  ;;  %v1976_v3 = vsub.f32 1.0, %v1975_v19  ;;  %3222 = vmatmul.msk.f32.vlgmr.msra.gmra.mxu2 %vm31_vm0, %v4555_v42  ;;  %v2126_v16 = vand.u32 2147483648, %v2111_v28  ;;  %vm1981_vm15 = vmor %vm1979_vm14, %vm1980_vm11  ;;  %v2124_v54 = vand.u32 2147483647, %v2111_v28 }
 0xe10   :  { %v1718_v40 = vmul.f32 %v3528_v9, %v1717_v21  ;;  %vm2120_vm4 = vweird.f32 %v2111_v28 }
 0xe11   :  { %v1977_v24 = vmul.f32 %v4550_v18, %v1976_v3  ;;  %v1852_v35 = vadd.f32 %v3526_v51, %v1851_v34 }
 0xe12   :  { %v1719_v0 = vadd.f32 %v3528_v9, %v1718_v40  ;;  %v3532_v5 = vpop.eup %3531 }
 0xe13   :  { %v1856_v43 = vsel %vm1855_vm7, %v3526_v51, %v1852_v35  ;;  %v2116_v6 = vmul.f32 %v3532_v5, %v2111_v28  ;;  %v1973_v58 = vpop.xlane.xlu2 %1972  ;;  %v1978_v25 = vadd.f32 %v4550_v18, %v1977_v24  ;;  %v1983_v51 = vand.u32 2147483647, %v4545_v23 }
 0xe14   :  { %v1723_v8 = vsel %vm1722_vm8, %v3528_v9, %v1719_v0  ;;  %v1861_v37 = vsel %vm1858_vm9, %v1860_v59, %v1856_v43  ;;  %3533 = vrcp.f32 %v1973_v58  ;;  %vm2121_vm3 = vweird.f32 %v3532_v5 }
 0xe15   :  { %v2117_v39 = vsub.f32 1.0, %v2116_v6  ;;  %v1728_v29 = vsel %vm1725_vm12, %v1727_v26, %v1723_v8  ;;  %v4564_v12 = vmul.f32 %v4466_v4, %v1861_v37  ;;  %v1982_v21 = vsel %vm1981_vm15, %v4550_v18, %v1978_v25  ;;  %vm2122_vm8 = vmor %vm2120_vm4, %vm2121_vm3 }
 0xe16   :  { %v4569_v9 = vmul.f32 %v4463_v31, %v1728_v29  ;;  %v1986_v4 = vor.u32 1.1754944e-38, %v1985_v1  ;;  %vm1984_vm7 = vcmp.eq.f32.partialorder %v1983_v51, 8.507059e+37  ;;  %v2127_v31 = vor.u32 1.1754944e-38, %v2126_v16 }
 0xe17   :  { %v2118_v19 = vmul.f32 %v3532_v5, %v2117_v39  ;;  %3223 = vmatmul.msk.f32.gmra.mxu2 %vm31_vm0, %v4564_v12  ;;  %vm2125_vm9 = vcmp.eq.f32.partialorder %v2124_v54, 8.507059e+37  ;;  %v2000_v28 = vand.u32 2147483648, %v1973_v58  ;;  %v4582_v0 = vpop.xlane.xlu0 %2249  ;;  %vm1994_vm12 = vweird.f32 %v1973_v58 }
 0xe18   :  { %3217 = vmatmul.msk.f32.gmra.mxu3 %vm31_vm0, %v4569_v9  ;;  %v1987_v34 = vsel %vm1984_vm7, %v1986_v4, %v1982_v21 }
 0xe19   :  { %v2119_v41 = vadd.f32 %v3532_v5, %v2118_v19  ;;  %v4580_v35 = vmul.f32 %v4468_v48, %v1987_v34  ;;  %v2001_v48 = vor.u32 1.1754944e-38, %v2000_v28 }
 0xe1a   :  { %v3534_v23 = vpop.eup %3533 }
 0xe1b   :  { %v2123_v3 = vsel %vm2122_vm8, %v3532_v5, %v2119_v41  ;;  %v1990_v40 = vmul.f32 %v3534_v23, %v1973_v58  ;;  %v2114_v11 = vpop.xlane.xlu2 %2113  ;;  %vm1995_vm11 = vweird.f32 %v3534_v23  ;;  %v1998_v5 = vand.u32 2147483647, %v1973_v58 }
 0xe1c   :  { %v2128_v24 = vsel %vm2125_vm9, %v2127_v31, %v2123_v3  ;;  %3535 = vrcp.f32 %v2114_v11  ;;  %vm1996_vm14 = vmor %vm1994_vm12, %vm1995_vm11  ;;  %v2141_v1 = vand.u32 2147483648, %v2114_v11  ;;  %v2139_v51 = vand.u32 2147483647, %v2114_v11 }
 0xe1d   :  { %v1991_v18 = vsub.f32 1.0, %v1990_v40  ;;  %v4577_v52 = vmul.f32 %v4477_v32, %v2128_v24  ;;  %3537 = vrcp.f32 %v4582_v0  ;;  %vm1999_vm15 = vcmp.eq.f32.partialorder %v1998_v5, 8.507059e+37 }
 0xe1e   :  { %vm2135_vm4 = vweird.f32 %v2114_v11  ;;  %v2142_v21 = vor.u32 1.1754944e-38, %v2141_v1  ;;  %vm2140_vm8 = vcmp.eq.f32.partialorder %v2139_v51, 8.507059e+37  ;;  %v2263_v51 = vand.u32 2147483647, %v4582_v0 }
 0xe1f   :  { %v1992_v59 = vmul.f32 %v3534_v23, %v1991_v18  ;;  %3234 = vmatmul.msk.f32.vlgmr.msrb.gmra.mxu2 %vm31_vm0, %v4577_v52 }
 0xe20   :  { %3228 = vmatmul.msk.f32.vlgmr.msrb.gmra.mxu3 %vm31_vm0, %v4580_v35 }
 0xe21   :  { %v1993_v43 = vadd.f32 %v3534_v23, %v1992_v59 }
 0xe22   :  { %v3536_v26 = vpop.eup %3535 }
 0xe23   :  { %v2131_v32 = vmul.f32 %v3536_v26, %v2114_v11  ;;  %v1997_v6 = vsel %vm1996_vm14, %v3534_v23, %v1993_v43  ;;  %v4589_v29 = vpop.xlane.xlu2 %2252  ;;  %vm2136_vm3 = vweird.f32 %v3536_v26  ;;  %v3538_v58 = vpop.eup %3537 }
 0xe24   :  { %v2002_v25 = vsel %vm1999_vm15, %v2001_v48, %v1997_v6  ;;  %vm2137_vm7 = vmor %vm2135_vm4, %vm2136_vm3  ;;  %v2255_v41 = vmul.f32 %v3538_v58, %v4582_v0  ;;  %vm2260_vm15 = vweird.f32 %v3538_v58  ;;  %vm2259_vm3 = vweird.f32 %v4582_v0 }
 0xe25   :  { %v2132_v8 = vsub.f32 1.0, %v2131_v32  ;;  %v4592_v16 = vmul.f32 %v4483_v62, %v2002_v25  ;;  %vm2261_vm4 = vmor %vm2259_vm3, %vm2260_vm15 }
 0xe26   :  { %v2382_v37 = vpop.xlane.xlu1 %2381  ;;  %v2256_v11 = vsub.f32 1.0, %v2255_v41 }
 0xe27   :  { %3539 = vrcp.f32 %v2382_v37  ;;  %v2133_v39 = vmul.f32 %v3536_v26, %v2132_v8  ;;  %v2397_v59 = vand.u32 2147483648, %v2382_v37  ;;  %v2395_v5 = vand.u32 2147483647, %v2382_v37 }
 0xe28   :  { %3541 = vrcp.f32 %v4589_v29  ;;  %3229 = vmatmul.msk.f32.gmra.mxu3 %vm31_vm0, %v4592_v16  ;;  %v2257_v43 = vmul.f32 %v3538_v58, %v2256_v11  ;;  %vm2391_vm11 = vweird.f32 %v2382_v37 }
 0xe29   :  { %v2134_v54 = vadd.f32 %v3536_v26, %v2133_v39  ;;  %v2398_v32 = vor.u32 1.1754944e-38, %v2397_v59  ;;  %vm2396_vm14 = vcmp.eq.f32.partialorder %v2395_v5, 8.507059e+37  ;;  %v2265_v39 = vand.u32 2147483648, %v4582_v0 }
 0xe2a   :  { %v3377_v19 = vpop.permute.xlu0 %3376  ;;  %v2258_v8 = vadd.f32 %v3538_v58, %v2257_v43 }
 0xe2b   :  { %v3378_v4 = vunpack.i.l.bf16 %v3377_v19  ;;  %v2138_v23 = vsel %vm2137_vm7, %v3536_v26, %v2134_v54  ;;  %v3379_v34 = vunpack.i.h.bf16 %v3377_v19  ;;  %v2266_v54 = vor.u32 1.1754944e-38, %v2265_v39 }
 0xe2c   :  { %v2143_v62 = vsel %vm2140_vm8, %v2142_v21, %v2138_v23  ;;  %vm2264_vm7 = vcmp.eq.f32.partialorder %v2263_v51, 8.507059e+37 }
 0xe2d   :  { %v3540_v31 = vpop.eup %3539  ;;  %2450 = vmatpush.msra.mxu2 %v3378_v4  ;;  %v4599_v40 = vmul.f32 %v4492_v63, %v2143_v62 }
 0xe2e   :  { %v2387_v3 = vmul.f32 %v3540_v31, %v2382_v37  ;;  %v3542_v18 = vpop.eup %3541  ;;  %vm2392_vm9 = vweird.f32 %v3540_v31  ;;  %v2262_v37 = vsel %vm2261_vm4, %v3538_v58, %v2258_v8  ;;  %v2278_v58 = vand.u32 2147483647, %v4589_v29 }
 0xe2f   :  { %2451 = vmatpush.msra.mxu2 %v3379_v34  ;;  %v2270_v26 = vmul.f32 %v3542_v18, %v4589_v29  ;;  %vm2393_vm12 = vmor %vm2391_vm11, %vm2392_vm9  ;;  %v2267_v4 = vsel %vm2264_vm7, %v2266_v54, %v2262_v37  ;;  %vm2275_vm8 = vweird.f32 %v3542_v18  ;;  %vm2274_vm9 = vweird.f32 %v4589_v29 }
 0xe30   :  { %v2388_v24 = vsub.f32 1.0, %v2387_v3  ;;  %3235 = vmatmul.msk.f32.gmra.mxu2 %vm31_vm0, %v4599_v40  ;;  %v4617_v0 = vmul.f32 %v4488_v53, %v2267_v4  ;;  %vm2276_vm11 = vmor %vm2274_vm9, %vm2275_vm8 }
 0xe31   :  { %v2271_v25 = vsub.f32 1.0, %v2270_v26 }
 0xe32   :  { %v2389_v28 = vmul.f32 %v3540_v31, %v2388_v24 }
 0xe33   :  { %v2272_v19 = vmul.f32 %v3542_v18, %v2271_v25 }
 0xe34   :  { %v2390_v48 = vadd.f32 %v3540_v31, %v2389_v28 }
 0xe36   :  { %v2394_v63 = vsel %vm2393_vm12, %v3540_v31, %v2390_v48  ;;  %v2280_v31 = vand.u32 2147483648, %v4589_v29  ;;  %vm2279_vm12 = vcmp.eq.f32.partialorder %v2278_v58, 8.507059e+37 }
 0xe37   :  { %v2399_v6 = vsel %vm2396_vm14, %v2398_v32, %v2394_v63 }
 0xe38   :  { %v4605_v1 = vmul.f32 %v4501_v46, %v2399_v6  ;;  %v2273_v46 = vadd.f32 %v3542_v18, %v2272_v19  ;;  %v2281_v3 = vor.u32 1.1754944e-38, %v2280_v31 }
 0xe3a   :  { %3246 = vmatmul.msk.f32.vlgmr.msra.gmra.mxu2 %vm31_vm0, %v4605_v1  ;;  %v2277_v62 = vsel %vm2276_vm11, %v3542_v18, %v2273_v46 }
 0xe3b   :  { %v2282_v11 = vsel %vm2279_vm12, %v2281_v3, %v2277_v62 }
 0xe3c   :  { %v4623_v28 = vmul.f32 %v4497_v47, %v2282_v11 }
 0xe3e   :  { %v3372_v21 = vpop.permute.xlu1 %3371 }
 0xe3f   :  { %v3373_v41 = vunpack.i.l.bf16 %v3372_v21  ;;  %v4612_v23 = vpop.xlane.xlu2 %2664  ;;  %v3374_v34 = vunpack.i.h.bf16 %v3372_v21 }
 0xe41   :  { %2318 = vmatpush.msra.mxu3 %v3373_v41 }
 0xe43   :  { %2319 = vmatpush.msra.mxu3 %v3374_v34 }
 0xe44   :  { %3240 = vmatmul.msk.f32.vlgmr.msra.gmra.mxu3 %vm31_vm0, %v4617_v0 }
 0xe47   :  { %v3387_v24 = vpop.permute.xlu2 %3386 }
 0xe48   :  { %v3388_v59 = vunpack.i.l.bf16 %v3387_v24  ;;  %v3389_v5 = vunpack.i.h.bf16 %v3387_v24 }
 0xe4a   :  { %2730 = vmatpush.msrb.mxu2 %v3388_v59 }
 0xe4c   :  { %3241 = vmatmul.msk.f32.gmra.mxu3 %vm31_vm0, %v4623_v28  ;;  %2731 = vmatpush.msrb.mxu2 %v3389_v5 }
 0xe55   :  { %v2385_v53 = vpop.xlane.xlu0 %2384 }
 0xe56   :  { %3543 = vrcp.f32 %v2385_v53  ;;  %v2412_v32 = vand.u32 2147483648, %v2385_v53  ;;  %v2410_v47 = vand.u32 2147483647, %v2385_v53  ;;  %vm2406_vm15 = vweird.f32 %v2385_v53 }
 0xe58   :  { %v2413_v25 = vor.u32 1.1754944e-38, %v2412_v32  ;;  %vm2411_vm4 = vcmp.eq.f32.partialorder %v2410_v47, 8.507059e+37 }
 0xe5c   :  { %v3544_v29 = vpop.eup %3543 }
 0xe5d   :  { %v2402_v43 = vmul.f32 %v3544_v29, %v2385_v53  ;;  %v2522_v26 = vpop.xlane.xlu0 %2521  ;;  %vm2407_vm14 = vweird.f32 %v3544_v29 }
 0xe5e   :  { %3545 = vrcp.f32 %v2522_v26  ;;  %vm2408_vm3 = vmor %vm2406_vm15, %vm2407_vm14  ;;  %vm2531_vm11 = vweird.f32 %v2522_v26 }
 0xe5f   :  { %3547 = vrcp.f32 %v4612_v23  ;;  %v2403_v18 = vsub.f32 1.0, %v2402_v43 }
 0xe61   :  { %v2404_v48 = vmul.f32 %v3544_v29, %v2403_v18 }
 0xe63   :  { %v2405_v63 = vadd.f32 %v3544_v29, %v2404_v48  ;;  %v2535_v48 = vand.u32 2147483647, %v2522_v26 }
 0xe64   :  { %v3546_v6 = vpop.eup %3545 }
 0xe65   :  { %v4628_v8 = vpop.eup %3547  ;;  %v2662_v39 = vpop.xlane.xlu0 %2661  ;;  %v2409_v51 = vsel %vm2408_vm3, %v3544_v29, %v2405_v63  ;;  %v2527_v37 = vmul.f32 %v3546_v6, %v2522_v26  ;;  %vm2532_vm8 = vweird.f32 %v3546_v6  ;;  %v2537_v29 = vand.u32 2147483648, %v2522_v26 }
 0xe66   :  { %3549 = vrcp.f32 %v2662_v39  ;;  %v2414_v19 = vsel %vm2411_vm4, %v2413_v25, %v2409_v51  ;;  %v2682_v54 = vmul.f32 %v4628_v8, %v4612_v23  ;;  %v2677_v24 = vand.u32 2147483648, %v2662_v39  ;;  %vm2533_vm15 = vmor %vm2531_vm11, %vm2532_vm8 }
 0xe67   :  { %v4633_v21 = vmul.f32 %v4520_v49, %v2414_v19  ;;  %v2528_v41 = vsub.f32 1.0, %v2527_v37  ;;  %v2675_v49 = vand.u32 2147483647, %v2662_v39  ;;  %vm2671_vm9 = vweird.f32 %v2662_v39 }
 0xe68   :  { %v2683_v31 = vsub.f32 1.0, %v2682_v54  ;;  %v2678_v32 = vor.u32 1.1754944e-38, %v2677_v24  ;;  %vm2687_vm14 = vweird.f32 %v4628_v8  ;;  %v2692_v25 = vand.u32 2147483648, %v4612_v23 }
 0xe69   :  { %v4635_v4 = vpop.xlane.xlu1 %2524  ;;  %3247 = vmatmul.msk.f32.gmra.mxu2 %vm31_vm0, %v4633_v21  ;;  %v2529_v58 = vmul.f32 %v3546_v6, %v2528_v41  ;;  %vm2676_vm3 = vcmp.eq.f32.partialorder %v2675_v49, 8.507059e+37  ;;  %vm2686_vm4 = vweird.f32 %v4612_v23  ;;  %v2538_v54 = vor.u32 1.1754944e-38, %v2537_v29  ;;  %v3261_v41 = vld [vmem:[%s5074_s3 + $0xc8] sm:$0xff] }
 0xe6a   :  { %3551 = vrcp.f32 %v4635_v4  ;;  %v2684_v11 = vmul.f32 %v4628_v8, %v2683_v31  ;;  %vm2536_vm8 = vcmp.eq.f32.partialorder %v2535_v48, 8.507059e+37  ;;  %v2550_v49 = vand.u32 2147483647, %v4635_v4 }
 0xe6b   :  { %v2530_v53 = vadd.f32 %v3546_v6, %v2529_v58 }
 0xe6c   :  { %v3550_v46 = vpop.eup %3549  ;;  %v2685_v47 = vadd.f32 %v4628_v8, %v2684_v11 }
 0xe6d   :  { %v2667_v34 = vmul.f32 %v3550_v46, %v2662_v39  ;;  %vm2672_vm7 = vweird.f32 %v3550_v46  ;;  %v2534_v51 = vsel %vm2533_vm15, %v3546_v6, %v2530_v53  ;;  %v2690_v39 = vand.u32 2147483647, %v4612_v23 }
 0xe6e   :  { %vm2673_vm12 = vmor %vm2671_vm9, %vm2672_vm7  ;;  %v2539_v31 = vsel %vm2536_vm8, %v2538_v54, %v2534_v51  ;;  %v2693_v23 = vor.u32 1.1754944e-38, %v2692_v25  ;;  %vm2551_vm15 = vcmp.eq.f32.partialorder %v2550_v49, 8.507059e+37 }
 0xe6f   :  { %v2668_v62 = vsub.f32 1.0, %v2667_v34  ;;  %vm4650_vm7 = vmor %vm2686_vm4, %vm2687_vm14  ;;  %vm2691_vm11 = vcmp.eq.f32.partialorder %v2690_v39, 8.507059e+37  ;;  %v4663_v24 = vmul.f32 %v4528_v10, %v2539_v31  ;;  %v3262_v39 = vld [vmem:[%s5074_s3 + $0xd0] sm:$0xff] }
 0xe70   :  { %v3552_v3 = vpop.eup %3551  ;;  %v2689_v6 = vsel %vm4650_vm7, %v4628_v8, %v2685_v47  ;;  %vm491_vm7 = vcmask 392448  }
 0xe71   :  { %v2669_v59 = vmul.f32 %v3550_v46, %v2668_v62  ;;  %v2542_v5 = vmul.f32 %v3552_v3, %v4635_v4  ;;  %vm2547_vm9 = vweird.f32 %v3552_v3 }
 0xe73   :  { %v2670_v43 = vadd.f32 %v3550_v46, %v2669_v59  ;;  %v2543_v18 = vsub.f32 1.0, %v2542_v5  ;;  %v2694_v59 = vsel %vm2691_vm11, %v2693_v23, %v2689_v6 }
 0xe74   :  { %v4669_v53 = vmul.f32 %v4512_v17, %v2694_v59 }
 0xe75   :  { %v2674_v63 = vsel %vm2673_vm12, %v3550_v46, %v2670_v43  ;;  %v2544_v19 = vmul.f32 %v3552_v3, %v2543_v18  ;;  %vm2546_vm12 = vweird.f32 %v4635_v4 }
 0xe76   :  { %v2679_v37 = vsel %vm2676_vm3, %v2678_v32, %v2674_v63  ;;  %vm2548_vm14 = vmor %vm2546_vm12, %vm2547_vm9  ;;  %vm633_vm12 = vcmask 523648  }
 0xe77   :  { %v4648_v26 = vmul.f32 %v4532_v30, %v2679_v37  ;;  %v2545_v62 = vadd.f32 %v3552_v3, %v2544_v19  ;;  %v2552_v30 = vand.u32 2147483648, %v4635_v4  ;;  %v3263_v19 = vld [vmem:[%s5074_s3 + $0xd8] sm:$0xff] }
 0xe78   :  { %v3382_v46 = vpop.permute.xlu0 %3381  ;;  %2783 = vmatpush.msrb.mxu0 %v3263_v19 }
 0xe79   :  { %v3383_v34 = vunpack.i.l.bf16 %v3382_v46  ;;  %3258 = vmatmul.msk.f32.vlgmr.msrb.gmra.mxu2 %vm31_vm0, %v4648_v26  ;;  %v3384_v11 = vunpack.i.h.bf16 %v3382_v46  ;;  %v2549_v8 = vsel %vm2548_vm14, %v3552_v3, %v2545_v62  ;;  %v2553_v5 = vor.u32 1.1754944e-38, %v2552_v30  ;;  %v3260_v46 = vld [vmem:[%s5074_s3 + $0xc0] sm:$0xff] }
 0xe7a   :  { %v1768_v58 = vpop.f32.mrf.mxu3  ;;  %2784 = vmatpush.msrb.mxu0 %v3262_v39 }
 0xe7b   :  { %1774 = vst.msk [vmem:[#allocation2] sm:$0xff] %vm135_vm2, %v1768_v58  ;;  %2590 = vmatpush.msrb.mxu3 %v3383_v34  ;;  %v2554_v29 = vsel %vm2551_vm15, %v2553_v5, %v2549_v8 }
 0xe7c   :  { %v4674_v10 = vmul.f32 %v4536_v56, %v2554_v29  ;;  %2785 = vmatpush.msrb.mxu0 %v3261_v41 }
 0xe7d   :  { %2591 = vmatpush.msrb.mxu3 %v3384_v11 }
 0xe7e   :  { %3252 = vmatmul.msk.f32.vlgmr.msrb.gmra.mxu3 %vm31_vm0, %v4663_v24  ;;  %2786 = vmatpush.msrb.mxu0 %v3260_v46 }
 0xe81   :  { %3259 = vmatmul.msk.f32.gmra.mxu2 %vm31_vm0, %v4669_v53 }
 0xe86   :  { %3253 = vmatmul.msk.f32.gmra.mxu3 %vm31_vm0, %v4674_v10 }
 0xe92   :  { %v1901_v4 = vpop.f32.mrf.mxu2 }
 0xe93   :  { %1909 = vrot.lane.b32.xlu0 %v1901_v4, %s3610_s17 }
 0xe9a   :  { %v1904_v3 = vpop.f32.mrf.mxu2 }
 0xe9b   :  { %v1771_v43 = vpop.f32.mrf.mxu3  ;;  %1911 = vrot.lane.b32.xlu2 %v1904_v3, %s3610_s17 }
 0xe9c   :  { %1775 = vst.msk [vmem:[#allocation2 + $0x8] sm:$0xff] %vm135_vm2, %v1771_v43 }
 0xea2   :  { %v2183_v18 = vpop.f32.mrf.mxu2 }
 0xea3   :  { %v2042_v17 = vpop.f32.mrf.mxu3 }
 0xea4   :  { %2050 = vrot.lane.b32.xlu0 %v2042_v17, %s3611_s29 }
 0xeab   :  { %v2045_v48 = vpop.f32.mrf.mxu3 }
 0xeac   :  { %2191 = vrot.lane.b32.xlu0 %v2183_v18, %s3612_s30  ;;  %v3400_v18 = vld [vmem:[%s5075_s4 + $0xa] ss:$0 sm:$0xff] }
 0xeb3   :  { %v2186_v56 = vpop.f32.mrf.mxu2 }
 0xeb4   :  { %2193 = vrot.lane.b32.xlu1 %v2186_v56, %s3612_s30  ;;  %2052 = vrot.lane.b32.xlu0 %v2045_v48, %s3611_s29 }
 0xebd   :  { %v2453_v32 = vpop.f32.mrf.mxu2 }
 0xebe   :  { %2461 = vrot.lane.b32.xlu2 %v2453_v32, %s3610_s17 }
 0xec7   :  { %v2321_v47 = vpop.f32.mrf.mxu3 }
 0xec8   :  { %2327 = vst.msk [vmem:[#allocation2 + $0x10] sm:$0xff] %vm135_vm2, %v2321_v47 }
 0xecf   :  { %v2324_v63 = vpop.f32.mrf.mxu3 }
 0xed0   :  { %2328 = vst.msk [vmem:[#allocation2 + $0x18] sm:$0xff] %vm135_vm2, %v2324_v63 }
 0xeec   :  { %v2456_v25 = vpop.f32.mrf.mxu2 }
 0xef5   :  { %v1912_v51 = vpop.permute.xlu2 %1911 }
 0xef6   :  { %1916 = vst.msk [vmem:[#allocation2 + $0x8] sm:$0xff] %vm393_vm13, %v1912_v51 }
 0xefc   :  { %v2733_v37 = vpop.f32.mrf.mxu2 }
 0xefd   :  { %2741 = vrot.lane.b32.xlu2 %v2733_v37, %s3612_s30 }
 0xf01   :  { %v2593_v54 = vpop.f32.mrf.mxu3 }
 0xf02   :  { %2601 = vrot.lane.b32.xlu0 %v2593_v54, %s3611_s29 }
 0xf04   :  { %v2736_v6 = vpop.f32.mrf.mxu2 }
 0xf05   :  { %v1910_v31 = vpop.permute.xlu0 %1909 }
 0xf06   :  { %1915 = vst.msk [vmem:[#allocation2] sm:$0xff] %vm393_vm13, %v1910_v31 }
 0xf09   :  { %v2596_v34 = vpop.f32.mrf.mxu3 }
 0xf0a   :  { %2463 = vrot.lane.b32.xlu0 %v2456_v25, %s3610_s17  ;;  %2603 = vrot.lane.b32.xlu2 %v2596_v34, %s3611_s29 }
 0xf12   :  { %2743 = vrot.lane.b32.xlu0 %v2736_v6, %s3612_s30 }
 0xf16   :  { %v2051_v23 = vpop.permute.xlu0 %2050 }
 0xf17   :  { %2056 = vst.msk [vmem:[#allocation2] sm:$0xff] %vm535_vm5, %v2051_v23 }
 0xf18   :  { %v2462_v58 = vpop.permute.xlu2 %2461 }
 0xf19   :  { %2467 = vst.msk [vmem:[#allocation2 + $0x10] sm:$0xff] %vm393_vm13, %v2462_v58 }
 0xf1e   :  { %v2192_v62 = vpop.permute.xlu0 %2191 }
 0xf1f   :  { %2197 = vst.msk [vmem:[#allocation2] sm:$0xff] %vm677_vm6, %v2192_v62 }
 0xf26   :  { %v2194_v30 = vpop.permute.xlu1 %2193  ;;  %v2053_v11 = vpop.permute.xlu0 %2052  ;;  %v2749_v59 = vld [vmem:[#allocation2] sm:$0xff] }
 0xf27   :  { %2057 = vst.msk [vmem:[#allocation2 + $0x8] sm:$0xff] %vm535_vm5, %v2053_v11  ;;  %3264 = vmatmul.msk.f32.vlgmr.msrb.gmra.mxu0 %vm87_vm1, %v2749_v59 }
 0xf28   :  { %2198 = vst.msk [vmem:[#allocation2 + $0x8] sm:$0xff] %vm677_vm6, %v2194_v30 }
 0xf2f   :  { %v2750_v49 = vld [vmem:[#allocation2 + $0x8] sm:$0xff] }
 0xf30   :  { %3265 = vmatmul.msk.f32.gmra.mxu0 %vm87_vm1, %v2750_v49 }
 0xf57   :  { %v2742_v5 = vpop.permute.xlu2 %2741 }
 0xf64   :  { %v2604_v4 = vpop.permute.xlu2 %2603 }
 0xf74   :  { %v2602_v8 = vpop.permute.xlu0 %2601 }
 0xf75   :  { %2607 = vst.msk [vmem:[#allocation2 + $0x10] sm:$0xff] %vm535_vm5, %v2602_v8 }
 0xf76   :  { %2747 = vst.msk [vmem:[#allocation2 + $0x10] sm:$0xff] %vm677_vm6, %v2742_v5 }
 0xf7c   :  { %v2464_v29 = vpop.permute.xlu0 %2463 }
 0xf7d   :  { %2468 = vst.msk [vmem:[#allocation2 + $0x18] sm:$0xff] %vm393_vm13, %v2464_v29  ;;  %v2751_v43 = vld [vmem:[#allocation2 + $0x10] sm:$0xff]  ;;  %v3271_v29 = vld [vmem:[%s5074_s3 + $0xf8] sm:$0xff] }
 0xf7e   :  { %2608 = vst.msk [vmem:[#allocation2 + $0x18] sm:$0xff] %vm535_vm5, %v2604_v4  ;;  %3266 = vmatmul.msk.f32.gmra.mxu0 %vm87_vm1, %v2751_v43  ;;  %2934 = vmatpush.msra.mxu3 %v3271_v29  ;;  %v3269_v4 = vld [vmem:[%s5074_s3 + $0xe8] sm:$0xff]  ;;  %v3268_v43 = vld [vmem:[%s5074_s3 + $0xe0] sm:$0xff]  ;;  %vm349_vm5 = vcmask 261248   ;;  %v3283_v29 = vld [vmem:[%s5074_s3 + $0x138] sm:$0xff] }
 0xf7f   :  { %2985 = vmatpush.msrb.mxu1 %v3283_v29 }
 0xf84   :  { %v2744_v3 = vpop.permute.xlu0 %2743 }
 0xf85   :  { %2748 = vst.msk [vmem:[#allocation2 + $0x18] sm:$0xff] %vm677_vm6, %v2744_v3 }
 0xf8c   :  { %v2752_v17 = vld [vmem:[#allocation2 + $0x18] sm:$0xff] }
 0xf8d   :  { %3267 = vmatmul.msk.f32.gmra.mxu0 %vm87_vm1, %v2752_v17 }
 0xfa4   :  { %v2788_v56 = vpop.f32.mrf.mxu0 }
 0xfa5   :  { %v2789_v48 = vadd.f32 %v3400_v18, %v2788_v56 }
 0xfa7   :  { %v2800_v32 = vadd.f32 %v2789_v48, %v4284_v22 }
 0xfa9   :  { %v2806_v47 = vsel %vm87_vm1, %v2800_v32, 0.0 }
 0xfaa   :  { %2807 = vadd.xlane.f32.xlu1 %v2806_v47 }
 0xfad   :  { %v2791_v63 = vpop.f32.mrf.mxu0 }
 0xfae   :  { %v2792_v25 = vadd.f32 %v3400_v18, %v2791_v63 }
 0xfb0   :  { %v2801_v51 = vadd.f32 %v2792_v25, %v4294_v57 }
 0xfb2   :  { %v2809_v37 = vsel %vm87_vm1, %v2801_v51, 0.0 }
 0xfb3   :  { %2810 = vadd.xlane.f32.xlu2 %v2809_v37 }
 0xffb   :  { %v2794_v19 = vpop.f32.mrf.mxu0 }
 0xffc   :  { %v2795_v39 = vadd.f32 %v3400_v18, %v2794_v19 }
 0xffe   :  { %v2802_v54 = vadd.f32 %v2795_v39, %v4305_v20 }
0x1000   :  { %v2812_v41 = vsel %vm87_vm1, %v2802_v54, 0.0 }
0x1001   :  { %2813 = vadd.xlane.f32.xlu0 %v2812_v41 }
0x100a   :  { %v2797_v46 = vpop.f32.mrf.mxu0 }
0x100b   :  { %v2798_v31 = vadd.f32 %v3400_v18, %v2797_v46 }
0x100d   :  { %v2803_v22 = vadd.f32 %v2798_v31, %v4315_v33 }
0x100f   :  { %v2815_v34 = vsel %vm87_vm1, %v2803_v22, 0.0 }
0x1010   :  { %2816 = vadd.xlane.f32.xlu2 %v2815_v34 }
0x101d   :  { %v2808_v6 = vpop.xlane.xlu1 %2807 }
0x101e   :  { %v2818_v57 = vmul.f32 %v2808_v6, %v4135_v14 }
0x1020   :  { %v4733_v23 = vsub.f32 %v2800_v32, %v2818_v57 }
0x1022   :  { %v2826_v58 = vmul.f32 %v4733_v23, %v4733_v23 }
0x1024   :  { %v2830_v20 = vsel %vm87_vm1, %v2826_v58, 0.0 }
0x1025   :  { %2831 = vadd.xlane.f32.xlu1 %v2830_v20 }
0x1026   :  { %v2811_v62 = vpop.xlane.xlu2 %2810 }
0x1027   :  { %v2819_v30 = vmul.f32 %v2811_v62, %v4135_v14 }
0x1029   :  { %v4739_v11 = vsub.f32 %v2801_v51, %v2819_v30 }
0x102b   :  { %v2827_v33 = vmul.f32 %v4739_v11, %v4739_v11 }
0x102d   :  { %v2833_v59 = vsel %vm87_vm1, %v2827_v33, 0.0 }
0x102e   :  { %2834 = vadd.xlane.f32.xlu0 %v2833_v59 }
0x1042   :  { %343 = vrot.lane.b32.xlu0 %v3853_v2, %s3611_s29 }
0x104a   :  { %487 = vrot.lane.b32.xlu0 %v3974_v45, %s3614_s13 }
0x1052   :  { %1033 = vrot.lane.b32.xlu0 %v4007_v36, %s3614_s13 }
0x105a   :  { %1035 = vrot.lane.b32.xlu0 %v4086_v50, %s3614_s13 }
0x1062   :  { %1732 = vrot.lane.b32.xlu0 %v4541_v44, %s3600_s21 }
0x106a   :  { %2288 = vrot.lane.b32.xlu0 %v4623_v28, %s3600_s21 }
0x1072   :  { %1865 = vrot.lane.b32.xlu0 %v4555_v42, %s3604_s25 }
0x1074   :  { %v2814_v2 = vpop.xlane.xlu0 %2813 }
0x1075   :  { %v2820_v49 = vmul.f32 %v2814_v2, %v4135_v14 }
0x1077   :  { %v4759_v8 = vsub.f32 %v2802_v54, %v2820_v49 }
0x1079   :  { %v2828_v45 = vmul.f32 %v4759_v8, %v4759_v8 }
0x107a   :  { %2420 = vrot.lane.b32.xlu0 %v4633_v21, %s3604_s25  ;;  %v3270_v21 = vld [vmem:[%s5074_s3 + $0xf0] sm:$0xff] }
0x107b   :  { %v2836_v36 = vsel %vm87_vm1, %v2828_v45, 0.0  ;;  %2935 = vmatpush.msra.mxu3 %v3270_v21 }
0x107c   :  { %2837 = vadd.xlane.f32.xlu2 %v2836_v36 }
0x107d   :  { %2936 = vmatpush.msra.mxu3 %v3269_v4 }
0x107f   :  { %2937 = vmatpush.msra.mxu3 %v3268_v43 }
0x1083   :  { %v2817_v50 = vpop.xlane.xlu2 %2816 }
0x1084   :  { %v2821_v44 = vmul.f32 %v2817_v50, %v4135_v14 }
0x1086   :  { %v4767_v28 = vsub.f32 %v2803_v22, %v2821_v44 }
0x1088   :  { %v2829_v42 = vmul.f32 %v4767_v28, %v4767_v28 }
0x108a   :  { %v2839_v5 = vsel %vm87_vm1, %v2829_v42, 0.0 }
0x108b   :  { %2840 = vadd.xlane.f32.xlu1 %v2839_v5 }
0x1094   :  { %345 = vrot.lane.b32.xlu2 %v3860_v15, %s3611_s29 }
0x1098   :  { %v2832_v3 = vpop.xlane.xlu1 %2831 }
0x1099   :  { %v2842_v17 = vmul.f32 %v2832_v3, %v4135_v14 }
0x109b   :  { %v2846_v18 = vadd.f32 1e-05, %v2842_v17 }
0x109c   :  { %627 = vrot.lane.b32.xlu2 %v4024_v55, %s3608_s15 }
0x109d   :  { %3553 = vrsqrt.f32 %v2846_v18  ;;  %vm2856_vm2 = vweird.f32 %v2846_v18 }
0x10a1   :  { %v2835_v56 = vpop.xlane.xlu0 %2834 }
0x10a2   :  { %v2843_v15 = vmul.f32 %v2835_v56, %v4135_v14 }
0x10a3   :  { %v3554_v48 = vpop.eup %3553 }
0x10a4   :  { %485 = vrot.lane.b32.xlu1 %v3964_v13, %s3614_s13  ;;  %893 = vrot.lane.b32.xlu2 %v4055_v60, %s3611_s29  ;;  %v2851_v32 = vmul.f32 %v3554_v48, %v2846_v18  ;;  %v2847_v47 = vadd.f32 1e-05, %v2843_v15  ;;  %vm2857_vm0 = vweird.f32 %v3554_v48  ;;  %v4801_v13 = vld [vmem:[%s5075_s4 + $0xb] ss:$0 sm:$0xff]  ;;  %v3282_v15 = vld [vmem:[%s5074_s3 + $0x130] sm:$0xff] }
0x10a5   :  { %vm2858_vm13 = vmor %vm2856_vm2, %vm2857_vm0  ;;  %2986 = vmatpush.msrb.mxu1 %v3282_v15  ;;  %vm1738_vm2 = vcmask 654848  }
0x10a6   :  { %v2852_v63 = vmul.f32 %v3554_v48, %v2851_v32  ;;  %3555 = vrsqrt.f32 %v2847_v47  ;;  %vm2866_vm3 = vweird.f32 %v2847_v47 }
0x10a8   :  { %v2853_v25 = vmul.f32 0.5, %v2852_v63 }
0x10aa   :  { %v2854_v51 = vsub.f32 1.5, %v2853_v25 }
0x10ac   :  { %629 = vrot.lane.b32.xlu1 %v4042_v38, %s3608_s15  ;;  %1173 = vrot.lane.b32.xlu2 %v4073_v7, %s3608_s15  ;;  %v3556_v55 = vpop.eup %3555  ;;  %v2855_v37 = vmul.f32 %v3554_v48, %v2854_v51  ;;  %v4807_v38 = vld [vmem:[%s5075_s4 + $0xc] ss:$0 sm:$0xff]  ;;  %v3279_v51 = vld [vmem:[%s5074_s3 + $0x118] sm:$0xff] }
0x10ad   :  { %v2861_v60 = vmul.f32 %v3556_v55, %v2847_v47  ;;  %vm2867_vm6 = vweird.f32 %v3556_v55  ;;  %v3280_v47 = vld [vmem:[%s5074_s3 + $0x120] sm:$0xff] }
0x10ae   :  { %v2859_v19 = vsel %vm2858_vm13, %v3554_v48, %v2855_v37  ;;  %vm2868_vm4 = vmor %vm2866_vm3, %vm2867_vm6  ;;  %v3281_v48 = vld [vmem:[%s5074_s3 + $0x128] sm:$0xff]  ;;  %vm1871_vm13 = vcmask 786048  }
0x10af   :  { %v2890_v39 = vmul.f32 %v2859_v19, %v4733_v23  ;;  %v2862_v54 = vmul.f32 %v3556_v55, %v2861_v60  ;;  %2987 = vmatpush.msrb.mxu1 %v3281_v48 }
0x10b1   :  { %v2895_v7 = vmul.f32 %v4801_v13, %v2890_v39  ;;  %v2863_v41 = vmul.f32 0.5, %v2862_v54  ;;  %2988 = vmatpush.msrb.mxu1 %v3280_v47  ;;  %v3277_v39 = vld [vmem:[%s5074_s3 + $0x108] sm:$0xff]  ;;  %v3276_v54 = vld [vmem:[%s5074_s3 + $0x100] sm:$0xff] }
0x10b3   :  { %v2864_v46 = vsub.f32 1.5, %v2863_v41  ;;  %v4811_v31 = vadd.f32 %v4807_v38, %v2895_v7  ;;  %2989 = vmatpush.msrb.mxu1 %v3279_v51 }
0x10b4   :  { %895 = vrot.lane.b32.xlu1 %v4067_v61, %s3611_s29  ;;  %2286 = vrot.lane.b32.xlu2 %v4617_v0, %s3600_s21  ;;  %v344_v22 = vpop.permute.xlu0 %343  ;;  %s3120_s29 = sshll.u32 %s5076_s5, 4  ;;  %s3121_s29 = int_to_ptr.hbm [resolvable:$true] %s3120_s29 }
0x10b5   :  { %v2865_v34 = vmul.f32 %v3556_v55, %v2864_v46  ;;  %350 = vst.msk [vmem:[%s5077_s6] sm:$0xff] %vm349_vm5, %v344_v22  ;;  %3272 = vmatmul.msk.f32.vlgmr.msra.gmra.mxu3 %vm87_vm1, %v4811_v31 }
0x10b7   :  { %v2869_v6 = vsel %vm2868_vm4, %v3556_v55, %v2865_v34 }
0x10b8   :  { %v2891_v57 = vmul.f32 %v2869_v6, %v4739_v11  ;;  %v3403_v6 = vld [vmem:[%s5075_s4 + $0xd] ss:$0 sm:$0xff] }
0x10ba   :  { %v2896_v61 = vmul.f32 %v4801_v13, %v2891_v57 }
0x10bc   :  { %1175 = vrot.lane.b32.xlu1 %v4080_v27, %s3608_s15  ;;  %2418 = vrot.lane.b32.xlu2 %v4605_v1, %s3604_s25  ;;  %v4830_v0 = vadd.f32 %v4807_v38, %v2896_v61  ;;  %v488_v27 = vpop.permute.xlu0 %487 }
0x10be   :  { %3273 = vmatmul.msk.f32.gmra.mxu3 %vm87_vm1, %v4830_v0 }
0x10c4   :  { %1734 = vrot.lane.b32.xlu1 %v4569_v9, %s3600_s21  ;;  %2008 = vrot.lane.b32.xlu2 %v4592_v16, %s3599_s20  ;;  %v1034_v58 = vpop.permute.xlu0 %1033 }
0x10cc   :  { %1867 = vrot.lane.b32.xlu1 %v4564_v12, %s3604_s25  ;;  %s3615_s25 = smov [#allocation3]  }
0x10cd   :  { %s3118_s11 = sshll.u32 %s3615_s25, 4  ;;  %s3119_s11 = int_to_ptr.vmem [resolvable:$true] %s3118_s11 }
0x10d4   :  { %2006 = vrot.lane.b32.xlu1 %v4580_v35, %s3599_s20  ;;  %v4851_v35 = vpop.permute.xlu0 %1035 }
0x10dc   :  { %v1733_v50 = vpop.permute.xlu0 %1732 }
0x10e4   :  { %v2289_v18 = vpop.permute.xlu0 %2288 }
0x10ec   :  { %v1866_v19 = vpop.permute.xlu0 %1865 }
0x10ef   :  { %v2838_v1 = vpop.xlane.xlu2 %2837 }
0x10f0   :  { %v2844_v23 = vmul.f32 %v2838_v1, %v4135_v14 }
0x10f2   :  { %v2848_v20 = vadd.f32 1e-05, %v2844_v23 }
0x10f4   :  { %3557 = vrsqrt.f32 %v2848_v20  ;;  %vm2876_vm9 = vweird.f32 %v2848_v20  ;;  %v2421_v22 = vpop.permute.xlu0 %2420 }
0x10f7   :  { %v346_v62 = vpop.permute.xlu2 %345 }
0x10f8   :  { %351 = vst.msk [vmem:[%s5077_s6 + $0x8] sm:$0xff] %vm349_vm5, %v346_v62 }
0x10f9   :  { %493 = vst.msk [vmem:[%s5077_s6 + $0x8] sm:$0xff] %vm491_vm7, %v488_v27 }
0x10fa   :  { %v3558_v12 = vpop.eup %3557 }
0x10fb   :  { %v2871_v9 = vmul.f32 %v3558_v12, %v2848_v20  ;;  %vm2877_vm8 = vweird.f32 %v3558_v12 }
0x10fc   :  { %vm2878_vm11 = vmor %vm2876_vm9, %vm2877_vm8 }
0x10fd   :  { %v2872_v16 = vmul.f32 %v3558_v12, %v2871_v9 }
0x10fe   :  { %v2841_v30 = vpop.xlane.xlu1 %2840 }
0x10ff   :  { %v2873_v11 = vmul.f32 0.5, %v2872_v16  ;;  %v2845_v33 = vmul.f32 %v2841_v30, %v4135_v14  ;;  %v628_v59 = vpop.permute.xlu2 %627 }
0x1101   :  { %v2874_v2 = vsub.f32 1.5, %v2873_v11  ;;  %v2849_v49 = vadd.f32 1e-05, %v2845_v33 }
0x1103   :  { %v2875_v45 = vmul.f32 %v3558_v12, %v2874_v2  ;;  %3559 = vrsqrt.f32 %v2849_v49  ;;  %vm2886_vm15 = vweird.f32 %v2849_v49 }
0x1105   :  { %v2879_v36 = vsel %vm2878_vm11, %v3558_v12, %v2875_v45 }
0x1106   :  { %v2892_v44 = vmul.f32 %v2879_v36, %v4759_v8 }
0x1107   :  { %v894_v42 = vpop.permute.xlu2 %893 }
0x1108   :  { %899 = vst.msk [vmem:[%s5077_s6 + $0x10] sm:$0xff] %vm349_vm5, %v894_v42  ;;  %v2897_v5 = vmul.f32 %v4801_v13, %v2892_v44 }
0x1109   :  { %v3560_v21 = vpop.eup %3559  ;;  %1039 = vst.msk [vmem:[%s5077_s6 + $0x10] sm:$0xff] %vm491_vm7, %v1034_v58 }
0x110a   :  { %v2881_v8 = vmul.f32 %v3560_v21, %v2849_v49  ;;  %v4868_v4 = vadd.f32 %v4807_v38, %v2897_v5  ;;  %vm2887_vm14 = vweird.f32 %v3560_v21 }
0x110b   :  { %vm2888_vm0 = vmor %vm2886_vm15, %vm2887_vm14 }
0x110c   :  { %v2882_v43 = vmul.f32 %v3560_v21, %v2881_v8  ;;  %3274 = vmatmul.msk.f32.gmra.mxu3 %vm87_vm1, %v4868_v4 }
0x110e   :  { %v2883_v3 = vmul.f32 0.5, %v2882_v43 }
0x110f   :  { %v1174_v17 = vpop.permute.xlu2 %1173 }
0x1110   :  { %v2884_v56 = vsub.f32 1.5, %v2883_v3  ;;  %1179 = vst.msk [vmem:[%s5077_s6 + $0x10] sm:$0xff] %vm633_vm12, %v1174_v17 }
0x1112   :  { %v2885_v32 = vmul.f32 %v3560_v21, %v2884_v56 }
0x1114   :  { %v2889_v63 = vsel %vm2888_vm0, %v3560_v21, %v2885_v32 }
0x1115   :  { %v2893_v25 = vmul.f32 %v2889_v63, %v4767_v28 }
0x1116   :  { %v486_v55 = vpop.permute.xlu1 %485 }
0x1117   :  { %492 = vst.msk [vmem:[%s5077_s6] sm:$0xff] %vm491_vm7, %v486_v55  ;;  %v2287_v37 = vpop.permute.xlu2 %2286  ;;  %v2898_v60 = vmul.f32 %v4801_v13, %v2893_v25  ;;  %v3278_v13 = vld [vmem:[%s5074_s3 + $0x110] sm:$0xff] }
0x1118   :  { %634 = vst.msk [vmem:[%s5077_s6] sm:$0xff] %vm633_vm12, %v628_v59  ;;  %2990 = vmatpush.msrb.mxu1 %v3278_v13  ;;  %v3404_v59 = vld [vmem:[%s5075_s4 + $0xe] ss:$0 sm:$0xff] }
0x1119   :  { %2292 = vst.msk [vmem:[%s5077_s6 + $0x10] sm:$0xff] %vm1738_vm2, %v2287_v37  ;;  %v4903_v28 = vadd.f32 %v4807_v38, %v2898_v60 }
0x111a   :  { %1739 = vst.msk [vmem:[%s5077_s6] sm:$0xff] %vm1738_vm2, %v1733_v50  ;;  %2991 = vmatpush.msrb.mxu1 %v3277_v39 }
0x111b   :  { %3275 = vmatmul.msk.f32.gmra.mxu3 %vm87_vm1, %v4903_v28  ;;  %1872 = vst.msk [vmem:[%s5077_s6] sm:$0xff] %vm1871_vm13, %v1866_v19 }
0x111c   :  { %2992 = vmatpush.msrb.mxu1 %v3276_v54 }
0x111e   :  { %v630_v38 = vpop.permute.xlu1 %629 }
0x111f   :  { %635 = vst.msk [vmem:[%s5077_s6 + $0x8] sm:$0xff] %vm633_vm12, %v630_v38  ;;  %v2419_v7 = vpop.permute.xlu2 %2418 }
0x1120   :  { %2424 = vst.msk [vmem:[%s5077_s6 + $0x10] sm:$0xff] %vm1871_vm13, %v2419_v7 }
0x1126   :  { %v896_v41 = vpop.permute.xlu1 %895 }
0x1127   :  { %900 = vst.msk [vmem:[%s5077_s6 + $0x18] sm:$0xff] %vm349_vm5, %v896_v41  ;;  %vm2012_vm5 = vcmask 917248   ;;  %v2009_v23 = vpop.permute.xlu2 %2008 }
0x1128   :  { %1040 = vst.msk [vmem:[%s5077_s6 + $0x18] sm:$0xff] %vm491_vm7, %v4851_v35 }
0x112e   :  { %v1176_v46 = vpop.permute.xlu1 %1175 }
0x112f   :  { %1180 = vst.msk [vmem:[%s5077_s6 + $0x18] sm:$0xff] %vm633_vm12, %v1176_v46 }
0x1130   :  { %2293 = vst.msk [vmem:[%s5077_s6 + $0x18] sm:$0xff] %vm1738_vm2, %v2289_v18 }
0x1131   :  { %2425 = vst.msk [vmem:[%s5077_s6 + $0x18] sm:$0xff] %vm1871_vm13, %v2421_v22 }
0x1136   :  { %v1735_v34 = vpop.permute.xlu1 %1734 }
0x1137   :  { %1740 = vst.msk [vmem:[%s5077_s6 + $0x8] sm:$0xff] %vm1738_vm2, %v1735_v34 }
0x1138   :  { %v2939_v57 = vpop.f32.mrf.mxu3 }
0x1139   :  { %v2940_v61 = vadd.f32 %v3403_v6, %v2939_v57 }
0x113b   :  { %v2951_v27 = vmax.f32 %v2940_v61, 0.0 }
0x113d   :  { %3284 = vmatmul.msk.f32.vlgmr.msrb.gmra.mxu1 %vm1447_vm10, %v2951_v27  ;;  %v5031_v27 = vld [vmem:[%s5075_s4 + $0xf] ss:$0 sm:$0xff] }
0x113e   :  { %v1868_v1 = vpop.permute.xlu1 %1867 }
0x113f   :  { %1873 = vst.msk [vmem:[%s5077_s6 + $0x8] sm:$0xff] %vm1871_vm13, %v1868_v1 }
0x1140   :  { %2014 = vst.msk [vmem:[%s5077_s6 + $0x8] sm:$0xff] %vm2012_vm5, %v2009_v23  ;;  %v5036_v23 = vld [vmem:[%s5075_s4 + $0x10] ss:$0 sm:$0xff] }
0x1141   :  { %v2942_v58 = vpop.f32.mrf.mxu3 }
0x1142   :  { %v2943_v20 = vadd.f32 %v3403_v6, %v2942_v58 }
0x1144   :  { %v2952_v62 = vmax.f32 %v2943_v20, 0.0 }
0x1146   :  { %v2007_v12 = vpop.permute.xlu1 %2006  ;;  %3285 = vmatmul.msk.f32.gmra.mxu1 %vm1447_vm10, %v2952_v62 }
0x1147   :  { %2013 = vst.msk [vmem:[%s5077_s6] sm:$0xff] %vm2012_vm5, %v2007_v12 }
0x118f   :  { %v2945_v9 = vpop.f32.mrf.mxu3 }
0x1190   :  { %v2946_v35 = vadd.f32 %v3403_v6, %v2945_v9 }
0x1192   :  { %v2953_v16 = vmax.f32 %v2946_v35, 0.0 }
0x1194   :  { %3286 = vmatmul.msk.f32.gmra.mxu1 %vm1447_vm10, %v2953_v16 }
0x119e   :  { %v2948_v30 = vpop.f32.mrf.mxu3 }
0x119f   :  { %v2949_v11 = vadd.f32 %v3403_v6, %v2948_v30 }
0x11a1   :  { %v2954_v33 = vmax.f32 %v2949_v11, 0.0 }
0x11a3   :  { %3287 = vmatmul.msk.f32.gmra.mxu1 %vm1447_vm10, %v2954_v33  ;;  %vm2153_vm10 = vcmask 1048448  }
0x11ba   :  { %v2994_v2 = vpop.f32.mrf.mxu1 }
0x11bb   :  { %v2995_v49 = vadd.f32 %v3404_v59, %v2994_v2 }
0x11bd   :  { %v3006_v45 = vadd.f32 %v2995_v49, %v4811_v31 }
0x11bf   :  { %v3012_v36 = vsel %vm87_vm1, %v3006_v45, 0.0 }
0x11c0   :  { %3013 = vadd.xlane.f32.xlu0 %v3012_v36 }
0x11c3   :  { %v2997_v50 = vpop.f32.mrf.mxu1 }
0x11c4   :  { %v2998_v44 = vadd.f32 %v3404_v59, %v2997_v50 }
0x11c6   :  { %v3007_v42 = vadd.f32 %v2998_v44, %v4830_v0 }
0x11c8   :  { %v3015_v5 = vsel %vm87_vm1, %v3007_v42, 0.0 }
0x11c9   :  { %3016 = vadd.xlane.f32.xlu2 %v3015_v5 }
0x11e1   :  { %2147 = vrot.lane.b32.xlu2 %v4577_v52, %s3607_s12 }
0x1211   :  { %v3000_v29 = vpop.f32.mrf.mxu1 }
0x1212   :  { %v3001_v21 = vadd.f32 %v3404_v59, %v3000_v29 }
0x1214   :  { %v3008_v8 = vadd.f32 %v3001_v21, %v4868_v4 }
0x1216   :  { %v3018_v43 = vsel %vm87_vm1, %v3008_v8, 0.0 }
0x1217   :  { %3019 = vadd.xlane.f32.xlu1 %v3018_v43 }
0x1220   :  { %v3003_v31 = vpop.f32.mrf.mxu1 }
0x1221   :  { %v3004_v3 = vadd.f32 %v3404_v59, %v3003_v31 }
0x1223   :  { %v3009_v17 = vadd.f32 %v3004_v3, %v4903_v28 }
0x1225   :  { %v3021_v18 = vsel %vm87_vm1, %v3009_v17, 0.0 }
0x1226   :  { %3022 = vadd.xlane.f32.xlu0 %v3021_v18 }
0x1230   :  { %2560 = vrot.lane.b32.xlu1 %v4674_v10, %s3599_s20 }
0x1233   :  { %v3014_v0 = vpop.xlane.xlu0 %3013 }
0x1234   :  { %v3024_v52 = vmul.f32 %v3014_v0, %v4135_v14 }
0x1236   :  { %v3028_v56 = vsub.f32 %v3006_v45, %v3024_v52 }
0x1238   :  { %v3032_v15 = vmul.f32 %v3028_v56, %v3028_v56 }
0x123a   :  { %2558 = vrot.lane.b32.xlu0 %v4663_v24, %s3599_s20  ;;  %v3036_v4 = vsel %vm87_vm1, %v3032_v15, 0.0 }
0x123b   :  { %3037 = vadd.xlane.f32.xlu2 %v3036_v4 }
0x123c   :  { %v3017_v48 = vpop.xlane.xlu2 %3016 }
0x123d   :  { %v3025_v10 = vmul.f32 %v3017_v48, %v4135_v14 }
0x123f   :  { %v3029_v47 = vsub.f32 %v3007_v42, %v3025_v10 }
0x1241   :  { %v3033_v63 = vmul.f32 %v3029_v47, %v3029_v47 }
0x1243   :  { %v3039_v25 = vsel %vm87_vm1, %v3033_v63, 0.0 }
0x1244   :  { %v2148_v32 = vpop.permute.xlu2 %2147 }
0x1245   :  { %2154 = vst.msk [vmem:[%s5077_s6] sm:$0xff] %vm2153_vm10, %v2148_v32 }
0x125a   :  { %3040 = vadd.xlane.f32.xlu1 %v3039_v25 }
0x1273   :  { %2698 = vrot.lane.b32.xlu1 %v4648_v26, %s3607_s12 }
0x128a   :  { %v3020_v24 = vpop.xlane.xlu1 %3019 }
0x128b   :  { %v3026_v51 = vmul.f32 %v3020_v24, %v4135_v14 }
0x128d   :  { %v5004_v55 = vsub.f32 %v3008_v8, %v3026_v51 }
0x128f   :  { %v3034_v37 = vmul.f32 %v5004_v55, %v5004_v55 }
0x1291   :  { %v3042_v60 = vsel %vm87_vm1, %v3034_v37, 0.0 }
0x1292   :  { %3043 = vadd.xlane.f32.xlu0 %v3042_v60 }
0x1299   :  { %v3023_v28 = vpop.xlane.xlu0 %3022 }
0x129a   :  { %v3027_v19 = vmul.f32 %v3023_v28, %v4135_v14 }
0x129c   :  { %v5010_v13 = vsub.f32 %v3009_v17, %v3027_v19 }
0x129e   :  { %v3035_v39 = vmul.f32 %v5010_v13, %v5010_v13 }
0x12a0   :  { %v3045_v26 = vsel %vm87_vm1, %v3035_v39, 0.0 }
0x12a1   :  { %3046 = vadd.xlane.f32.xlu2 %v3045_v26 }
0x12a2   :  { %v2561_v54 = vpop.permute.xlu1 %2560 }
0x12a3   :  { %2565 = vst.msk [vmem:[%s5077_s6 + $0x18] sm:$0xff] %vm2012_vm5, %v2561_v54 }
0x12a6   :  { %2149 = vrot.lane.b32.xlu0 %v4599_v40, %s3607_s12 }
0x12ac   :  { %v2559_v38 = vpop.permute.xlu0 %2558 }
0x12ad   :  { %2564 = vst.msk [vmem:[%s5077_s6 + $0x10] sm:$0xff] %vm2012_vm5, %v2559_v38 }
0x12ae   :  { %v3038_v7 = vpop.xlane.xlu2 %3037 }
0x12af   :  { %v3048_v41 = vmul.f32 %v3038_v7, %v4135_v14 }
0x12b1   :  { %v3052_v46 = vadd.f32 1e-05, %v3048_v41 }
0x12b3   :  { %3561 = vrsqrt.f32 %v3052_v46  ;;  %vm3062_vm3 = vweird.f32 %v3052_v46 }
0x12b9   :  { %2700 = vrot.lane.b32.xlu2 %v4669_v53, %s3607_s12  ;;  %v3562_v22 = vpop.eup %3561 }
0x12ba   :  { %v3057_v34 = vmul.f32 %v3562_v22, %v3052_v46  ;;  %vm3063_vm6 = vweird.f32 %v3562_v22 }
0x12bb   :  { %vm3064_vm4 = vmor %vm3062_vm3, %vm3063_vm6 }
0x12bc   :  { %v3058_v6 = vmul.f32 %v3562_v22, %v3057_v34 }
0x12be   :  { %v3059_v57 = vmul.f32 0.5, %v3058_v6 }
0x12c0   :  { %v3060_v61 = vsub.f32 1.5, %v3059_v57 }
0x12c2   :  { %v3061_v40 = vmul.f32 %v3562_v22, %v3060_v61 }
0x12c4   :  { %v3065_v1 = vsel %vm3064_vm4, %v3562_v22, %v3061_v40 }
0x12c5   :  { %v3096_v53 = vmul.f32 %v3065_v1, %v3028_v56 }
0x12c7   :  { %v3101_v58 = vmul.f32 %v5031_v27, %v3096_v53 }
0x12c9   :  { %v3106_v20 = vadd.f32 %v5036_v23, %v3101_v58 }
0x12cb   :  { %3110 = vst.msk [vmem:[#allocation3] sm:$0xff] %vm87_vm1, %v3106_v20 }
0x12cd   :  { %v3041_v62 = vpop.xlane.xlu1 %3040 }
0x12ce   :  { %v3049_v12 = vmul.f32 %v3041_v62, %v4135_v14 }
0x12d0   :  { %v3053_v9 = vadd.f32 1e-05, %v3049_v12 }
0x12d2   :  { %3563 = vrsqrt.f32 %v3053_v9  ;;  %vm3072_vm8 = vweird.f32 %v3053_v9 }
0x12d8   :  { %v3564_v35 = vpop.eup %3563 }
0x12d9   :  { %v3067_v16 = vmul.f32 %v3564_v35, %v3053_v9  ;;  %vm3073_vm7 = vweird.f32 %v3564_v35 }
0x12da   :  { %vm3074_vm9 = vmor %vm3072_vm8, %vm3073_vm7 }
0x12db   :  { %v3068_v30 = vmul.f32 %v3564_v35, %v3067_v16 }
0x12dd   :  { %v3069_v11 = vmul.f32 0.5, %v3068_v30 }
0x12df   :  { %v3070_v33 = vsub.f32 1.5, %v3069_v11 }
0x12e1   :  { %v3071_v59 = vmul.f32 %v3564_v35, %v3070_v33 }
0x12e3   :  { %v3075_v2 = vsel %vm3074_vm9, %v3564_v35, %v3071_v59 }
0x12e4   :  { %v3097_v49 = vmul.f32 %v3075_v2, %v3029_v47 }
0x12e5   :  { %v2699_v45 = vpop.permute.xlu1 %2698 }
0x12e6   :  { %v3102_v36 = vmul.f32 %v5031_v27, %v3097_v49  ;;  %2704 = vst.msk [vmem:[%s5077_s6 + $0x10] sm:$0xff] %vm2153_vm10, %v2699_v45 }
0x12e8   :  { %v3107_v50 = vadd.f32 %v5036_v23, %v3102_v36 }
0x12ea   :  { %3111 = vst.msk [vmem:[#allocation3 + $0x8] sm:$0xff] %vm87_vm1, %v3107_v50 }
0x1305   :  { %v3044_v44 = vpop.xlane.xlu0 %3043 }
0x1306   :  { %v3050_v42 = vmul.f32 %v3044_v44, %v4135_v14 }
0x1308   :  { %v3054_v5 = vadd.f32 1e-05, %v3050_v42 }
0x130a   :  { %3565 = vrsqrt.f32 %v3054_v5  ;;  %vm3082_vm12 = vweird.f32 %v3054_v5 }
0x1310   :  { %v3566_v29 = vpop.eup %3565 }
0x1311   :  { %v3077_v21 = vmul.f32 %v3566_v29, %v3054_v5  ;;  %vm3083_vm11 = vweird.f32 %v3566_v29 }
0x1312   :  { %vm3084_vm14 = vmor %vm3082_vm12, %vm3083_vm11 }
0x1313   :  { %v3078_v8 = vmul.f32 %v3566_v29, %v3077_v21 }
0x1314   :  { %v3047_v43 = vpop.xlane.xlu2 %3046 }
0x1315   :  { %v3079_v31 = vmul.f32 0.5, %v3078_v8  ;;  %v3051_v3 = vmul.f32 %v3047_v43, %v4135_v14 }
0x1317   :  { %v3080_v17 = vsub.f32 1.5, %v3079_v31  ;;  %v3055_v18 = vadd.f32 1e-05, %v3051_v3 }
0x1318   :  { %v2150_v0 = vpop.permute.xlu0 %2149 }
0x1319   :  { %v3081_v52 = vmul.f32 %v3566_v29, %v3080_v17  ;;  %3567 = vrsqrt.f32 %v3055_v18  ;;  %2155 = vst.msk [vmem:[%s5077_s6 + $0x8] sm:$0xff] %vm2153_vm10, %v2150_v0  ;;  %vm3092_vm0 = vweird.f32 %v3055_v18 }
0x131b   :  { %v3085_v56 = vsel %vm3084_vm14, %v3566_v29, %v3081_v52 }
0x131c   :  { %v3098_v15 = vmul.f32 %v3085_v56, %v5004_v55  ;;  %v2701_v4 = vpop.permute.xlu2 %2700 }
0x131d   :  { %2705 = vst.msk [vmem:[%s5077_s6 + $0x18] sm:$0xff] %vm2153_vm10, %v2701_v4 }
0x131e   :  { %v3103_v14 = vmul.f32 %v5031_v27, %v3098_v15 }
0x131f   :  { %v3568_v48 = vpop.eup %3567 }
0x1320   :  { %v3108_v32 = vadd.f32 %v5036_v23, %v3103_v14  ;;  %v3087_v10 = vmul.f32 %v3568_v48, %v3055_v18  ;;  %vm3093_vm15 = vweird.f32 %v3568_v48 }
0x1321   :  { %vm3094_vm2 = vmor %vm3092_vm0, %vm3093_vm15 }
0x1322   :  { %3112 = vst.msk [vmem:[#allocation3 + $0x10] sm:$0xff] %vm87_vm1, %v3108_v32  ;;  %v3088_v47 = vmul.f32 %v3568_v48, %v3087_v10 }
0x1324   :  { %v3089_v63 = vmul.f32 0.5, %v3088_v47 }
0x1326   :  { %v3090_v25 = vsub.f32 1.5, %v3089_v63 }
0x1328   :  { %v3091_v24 = vmul.f32 %v3568_v48, %v3090_v25 }
0x132a   :  { %v3095_v51 = vsel %vm3094_vm2, %v3568_v48, %v3091_v24 }
0x132b   :  { %v3099_v55 = vmul.f32 %v3095_v51, %v5010_v13 }
0x132d   :  { %v3104_v37 = vmul.f32 %v5031_v27, %v3099_v55 }
0x132f   :  { %v3109_v60 = vadd.f32 %v5036_v23, %v3104_v37 }
0x1331   :  { %3113 = vst.msk [vmem:[#allocation3 + $0x18] sm:$0xff] %vm87_vm1, %v3109_v60 }
0x1332   :  { %3126 = dma.vmem_to_hbm [thread:$0]  %s3119_s11, 512, %s3121_s29, [#allocation4], %s3616_s16, %s3616_s16, %s3610_s17  }
0x1333   :  { %3597 = dma.done.wait [#allocation4], 512  }
0x1334   :  { %3598 = vsyncadd [#allocation4], 4294966784 }
0x1335   :  { %3135 = vsyncpa [#allocation4], 1 }

</bundles_post_ra>
